<compile_context>
chip_gen: v7x
topology: tpu7x:2x2x1
jax: 0.10.0
libtpu: 0.0.40
codegen_flags: <defaults>
</compile_context>

<pallas_src>
import math

import jax
import jax.numpy as jnp
from jax import lax
from jax.experimental import pallas as pl
from jax.experimental.pallas import tpu as pltpu

# ----------------------------- model config (small, synthetic) -----------------
VOCAB = 16          # shared src/tgt vocab
D_MODEL = 32        # "dim" in the original module (512 there; small here)
N_HEADS = 4
D_K = D_V = 8
D_FF = 64
N_LAYERS = 2
PAD_ID = 0
MAX_LEN = 16
LOGITS_PAD = 128    # vocab projection padded to a full lane width for unmasked stores

# ----------------------------- in-kernel building blocks -----------------------


def _layernorm(x, g, b):
    """x: (S, D) f32; g/b: (1, D) f32. PyTorch nn.LayerNorm(d_model) semantics (eps=1e-5)."""
    mean = jnp.mean(x, axis=-1, keepdims=True)
    var = jnp.mean(jnp.square(x - mean), axis=-1, keepdims=True)
    return (x - mean) * lax.rsqrt(var + 1e-5) * g + b


def _mha_block(x_q, xq_b, xkv_b, bias, w_q, w_k, w_v, w_o, g, b):
    """Fused MHA sublayer (all heads batched) + residual + LayerNorm.

    x_q:   (Sq, D)  f32  residual stream
    xq_b:  (H, Sq, D) bf16  query activations broadcast over heads
    xkv_b: (H, Sk, D) bf16  key/value activations broadcast over heads
    bias:  (Sq, Sk) f32 additive attention bias (0 / -1e9), shared by all heads
    w_q/w_k: (H, D, Dk) bf16   w_v: (H, D, Dv) bf16   w_o: (H*Dv, D) bf16
    g, b:  (1, D) f32 LayerNorm params
    Returns (layernormed output (Sq, D) f32, lane-dense attention slab (Sq, H*Sk) f32).
    """
    H = N_HEADS
    # Head-batched projections (MXU, f32 accumulation).
    q = jnp.einsum('hsd,hdk->hsk', xq_b, w_q, preferred_element_type=jnp.float32)
    k = jnp.einsum('hsd,hdk->hsk', xkv_b, w_k, preferred_element_type=jnp.float32)
    v = jnp.einsum('hsd,hdk->hsk', xkv_b, w_v, preferred_element_type=jnp.float32)

    # Batched scores + single additive mask bias; softmax fully in f32.
    scores = jnp.einsum('hqd,hkd->hqk', q.astype(jnp.bfloat16), k.astype(jnp.bfloat16),
                        preferred_element_type=jnp.float32)
    scores = scores * jnp.float32(1.0 / math.sqrt(D_K)) + bias          # (H, Sq, Sk)
    m = jnp.max(scores, axis=-1, keepdims=True)
    p = jnp.exp(scores - m)
    attn = p * pl.reciprocal(jnp.sum(p, axis=-1, keepdims=True), approx=True)

    # Batched context, then lane-concatenate heads for one 32-wide output projection.
    ctx = jnp.einsum('hqk,hkd->hqd', attn.astype(jnp.bfloat16), v.astype(jnp.bfloat16),
                     preferred_element_type=jnp.float32)                # (H, Sq, Dv)
    ctx_cat = jnp.concatenate([ctx[h] for h in range(H)], axis=-1)      # (Sq, H*Dv)
    out = x_q + jnp.dot(ctx_cat.astype(jnp.bfloat16), w_o,
                        preferred_element_type=jnp.float32)

    attn_cat = jnp.concatenate([attn[h] for h in range(H)], axis=-1)    # (Sq, H*Sk) lane-dense
    return _layernorm(out, g, b), attn_cat


def _ffn_block(x, w1, w2, g, b):
    """Fused position-wise FFN: W1 + ReLU + W2 + residual + LayerNorm (bf16 MXU, f32 math)."""
    h = jnp.maximum(jnp.dot(x.astype(jnp.bfloat16), w1,
                            preferred_element_type=jnp.float32), 0.0)
    y = jnp.dot(h.astype(jnp.bfloat16), w2, preferred_element_type=jnp.float32) + x
    return _layernorm(y, g, b)


# ----------------------------- fused whole-stack kernels -----------------------


def _encoder_stack_kernel(x_ref, ids_ref,
                          a_wq, a_wk, a_wv, a_wo, a_g, a_b,
                          f_w1, f_w2, f_g, f_b,
                          o_ref, attn_ref):
    x = x_ref[0]                       # (S, D) f32
    S = x.shape[0]
    ids = ids_ref[0]                   # (1, S) int32
    bias = jnp.broadcast_to(
        jnp.where(ids == PAD_ID, jnp.float32(-1e9), jnp.float32(0.0)), (S, S))

    for l in range(N_LAYERS):
        xq_b = jnp.broadcast_to(x.astype(jnp.bfloat16)[None], (N_HEADS, S, D_MODEL))
        x, attn = _mha_block(x, xq_b, xq_b, bias,
                             a_wq[l], a_wk[l], a_wv[l], a_wo[l], a_g[l], a_b[l])
        attn_ref[0, l] = attn
        x = _ffn_block(x, f_w1[l], f_w2[l], f_g[l], f_b[l])

    o_ref[0] = x


def _decoder_stack_kernel(x_ref, tgt_ids_ref, src_ids_ref, enc_ref,
                          s_wq, s_wk, s_wv, s_wo, s_g, s_b,
                          c_wq, c_wk, c_wv, c_wo, c_g, c_b,
                          f_w1, f_w2, f_g, f_b, wp_ref,
                          logits_ref, self_attn_ref, enc_attn_ref):
    x = x_ref[0]                       # (T, D) f32
    enc = enc_ref[0]                   # (S, D) f32
    T, S = x.shape[0], enc.shape[0]
    tgt_ids = tgt_ids_ref[0]           # (1, T) int32
    src_ids = src_ids_ref[0]           # (1, S) int32

    neg = jnp.float32(-1e9)
    self_bias = jnp.broadcast_to(
        jnp.where(tgt_ids == PAD_ID, neg, jnp.float32(0.0)), (T, T))
    qi = lax.broadcasted_iota(jnp.int32, (T, T), 0)
    ki = lax.broadcasted_iota(jnp.int32, (T, T), 1)
    self_bias = jnp.where(ki > qi, neg, self_bias)                 # causal + key pad
    cross_bias = jnp.broadcast_to(
        jnp.where(src_ids == PAD_ID, neg, jnp.float32(0.0)), (T, S))

    # Hoisted: encoder memory broadcast over heads is constant across layers.
    enc_b = jnp.broadcast_to(enc.astype(jnp.bfloat16)[None], (N_HEADS, S, D_MODEL))

    for l in range(N_LAYERS):
        xq_b = jnp.broadcast_to(x.astype(jnp.bfloat16)[None], (N_HEADS, T, D_MODEL))
        x, sa = _mha_block(x, xq_b, xq_b, self_bias,
                           s_wq[l], s_wk[l], s_wv[l], s_wo[l], s_g[l], s_b[l])
        self_attn_ref[0, l] = sa
        xq_b = jnp.broadcast_to(x.astype(jnp.bfloat16)[None], (N_HEADS, T, D_MODEL))
        x, ea = _mha_block(x, xq_b, enc_b, cross_bias,
                           c_wq[l], c_wk[l], c_wv[l], c_wo[l], c_g[l], c_b[l])
        enc_attn_ref[0, l] = ea
        x = _ffn_block(x, f_w1[l], f_w2[l], f_g[l], f_b[l])

    # Fused vocab projection (N padded to 128 lanes → unmasked stores).
    logits_ref[0] = jnp.dot(x.astype(jnp.bfloat16), wp_ref[...],
                            preferred_element_type=jnp.float32)


# ----------------------------- pallas_call wrappers -----------------------------


def _const_specs(arrays):
    """Whole-array blocks, same block every grid step (stacked weights / LN params)."""
    specs = []
    for a in arrays:
        specs.append(pl.BlockSpec(a.shape, lambda b, nd=a.ndim: (0,) * nd))
    return specs


def encoder_forward(p, src_ids):
    B, S = src_ids.shape
    x = jnp.take(p["emb"], src_ids, axis=0) + p["pos"][None, :S, :]
    ids = src_ids.reshape(B, 1, S).astype(jnp.int32)
    ap, fp = p["self_attn"], p["ffn"]
    weights = (ap["wq"], ap["wk"], ap["wv"], ap["wo"], ap["ln_g"], ap["ln_b"],
               fp["w1"], fp["w2"], fp["ln_g"], fp["ln_b"])
    enc_out, attn = pl.pallas_call(
        _encoder_stack_kernel,
        grid=(B,),
        in_specs=[pl.BlockSpec((1, S, D_MODEL), lambda b: (b, 0, 0)),
                  pl.BlockSpec((1, 1, S), lambda b: (b, 0, 0)),
                  *_const_specs(weights)],
        out_specs=[pl.BlockSpec((1, S, D_MODEL), lambda b: (b, 0, 0)),
                   pl.BlockSpec((1, N_LAYERS, S, N_HEADS * S), lambda b: (b, 0, 0, 0))],
        out_shape=[jax.ShapeDtypeStruct((B, S, D_MODEL), jnp.float32),
                   jax.ShapeDtypeStruct((B, N_LAYERS, S, N_HEADS * S), jnp.float32)],
        compiler_params=pltpu.CompilerParams(dimension_semantics=("parallel",)),
    )(x, ids, *weights)
    # Unpack lane-dense slab (B, L, S, H*S) → per-layer (B, H, S, S) in plain JAX.
    attn = attn.reshape(B, N_LAYERS, S, N_HEADS, S).transpose(0, 1, 3, 2, 4)
    return enc_out, [attn[:, l] for l in range(N_LAYERS)]


def decoder_forward(p, tgt_ids, src_ids, enc_out, w_proj):
    B, T = tgt_ids.shape
    S = enc_out.shape[1]
    x = jnp.take(p["emb"], tgt_ids, axis=0) + p["pos"][None, :T, :]
    t_ids = tgt_ids.reshape(B, 1, T).astype(jnp.int32)
    s_ids = src_ids.reshape(B, 1, S).astype(jnp.int32)
    sp, cp, fp = p["self_attn"], p["enc_attn"], p["ffn"]
    weights = (sp["wq"], sp["wk"], sp["wv"], sp["wo"], sp["ln_g"], sp["ln_b"],
               cp["wq"], cp["wk"], cp["wv"], cp["wo"], cp["ln_g"], cp["ln_b"],
               fp["w1"], fp["w2"], fp["ln_g"], fp["ln_b"], w_proj)
    logits, sa, ea = pl.pallas_call(
        _decoder_stack_kernel,
        grid=(B,),
        in_specs=[pl.BlockSpec((1, T, D_MODEL), lambda b: (b, 0, 0)),
                  pl.BlockSpec((1, 1, T), lambda b: (b, 0, 0)),
                  pl.BlockSpec((1, 1, S), lambda b: (b, 0, 0)),
                  pl.BlockSpec((1, S, D_MODEL), lambda b: (b, 0, 0)),
                  *_const_specs(weights)],
        out_specs=[pl.BlockSpec((1, T, LOGITS_PAD), lambda b: (b, 0, 0)),
                   pl.BlockSpec((1, N_LAYERS, T, N_HEADS * T), lambda b: (b, 0, 0, 0)),
                   pl.BlockSpec((1, N_LAYERS, T, N_HEADS * S), lambda b: (b, 0, 0, 0))],
        out_shape=[jax.ShapeDtypeStruct((B, T, LOGITS_PAD), jnp.float32),
                   jax.ShapeDtypeStruct((B, N_LAYERS, T, N_HEADS * T), jnp.float32),
                   jax.ShapeDtypeStruct((B, N_LAYERS, T, N_HEADS * S), jnp.float32)],
        compiler_params=pltpu.CompilerParams(dimension_semantics=("parallel",)),
    )(x, t_ids, s_ids, enc_out, *weights)
    sa = sa.reshape(B, N_LAYERS, T, N_HEADS, T).transpose(0, 1, 3, 2, 4)
    ea = ea.reshape(B, N_LAYERS, T, N_HEADS, S).transpose(0, 1, 3, 2, 4)
    logits = logits[:, :, :VOCAB]
    return (logits,
            [sa[:, l] for l in range(N_LAYERS)],
            [ea[:, l] for l in range(N_LAYERS)])


def transformer_forward(params, source, target):
    """Mirrors Transformer.forward: (dec_logits, enc_self_attn, dec_self_attns, dec_enc_attns)."""
    enc_out, enc_self_attns = encoder_forward(params["encoder"], source)
    dec_logits, dec_self_attns, dec_enc_attns = decoder_forward(
        params["decoder"], target, source, enc_out, params["projection"])
    return dec_logits, enc_self_attns, dec_self_attns, dec_enc_attns


# ----------------------------- deterministic parameter init --------------------


def sinusoid_pos_encoding(max_len, d_model):
    position = jnp.arange(max_len, dtype=jnp.float32)[:, None]
    div = jnp.exp(jnp.arange(0, d_model, 2, dtype=jnp.float32)
                  * (-math.log(10000.0) / d_model))
    pe = jnp.zeros((max_len, d_model), jnp.float32)
    pe = pe.at[:, 0::2].set(jnp.sin(position * div))
    pe = pe.at[:, 1::2].set(jnp.cos(position * div))
    return pe


def init_params(key):
    keys = iter(jax.random.split(key, 64))

    def nrm(shape, dtype=jnp.bfloat16):
        return (jax.random.normal(next(keys), shape, jnp.float32) * 0.02).astype(dtype)

    def mha_stack():
        # Per-head weight layouts (L, H, D, Dk/Dv); output projection (L, H*Dv, D). bf16.
        return dict(
            wq=nrm((N_LAYERS, N_HEADS, D_MODEL, D_K)),
            wk=nrm((N_LAYERS, N_HEADS, D_MODEL, D_K)),
            wv=nrm((N_LAYERS, N_HEADS, D_MODEL, D_V)),
            wo=nrm((N_LAYERS, N_HEADS * D_V, D_MODEL)),
            ln_g=jnp.ones((N_LAYERS, 1, D_MODEL), jnp.float32),
            ln_b=jnp.zeros((N_LAYERS, 1, D_MODEL), jnp.float32),
        )

    def ffn_stack():
        return dict(
            w1=nrm((N_LAYERS, D_MODEL, D_FF)),
            w2=nrm((N_LAYERS, D_FF, D_MODEL)),
            ln_g=jnp.ones((N_LAYERS, 1, D_MODEL), jnp.float32),
            ln_b=jnp.zeros((N_LAYERS, 1, D_MODEL), jnp.float32),
        )

    pos = sinusoid_pos_encoding(MAX_LEN, D_MODEL)
    encoder = dict(emb=nrm((VOCAB, D_MODEL), jnp.float32), pos=pos,
                   self_attn=mha_stack(), ffn=ffn_stack())
    decoder = dict(emb=nrm((VOCAB, D_MODEL), jnp.float32), pos=pos,
                   self_attn=mha_stack(), enc_attn=mha_stack(), ffn=ffn_stack())
    # projection = nn.Linear(dim, vocab, bias=False); stored (dim, vocab), zero-padded to 128 lanes.
    w_proj = jax.random.normal(next(keys), (D_MODEL, VOCAB), jnp.float32) * 0.02
    projection = jnp.zeros((D_MODEL, LOGITS_PAD), jnp.bfloat16).at[:, :VOCAB].set(
        w_proj.astype(jnp.bfloat16))
    return dict(encoder=encoder, decoder=decoder, projection=projection)


# ----------------------------- main ---------------------------------------------

if __name__ == "__main__":
    B, SRC_LEN, TGT_LEN = 2, 8, 8

    key = jax.random.PRNGKey(0)
    pkey, skey, tkey = jax.random.split(key, 3)

    params = init_params(pkey)
    source = jax.random.randint(skey, (B, SRC_LEN), 1, VOCAB)
    target = jax.random.randint(tkey, (B, TGT_LEN), 1, VOCAB)
    # add a little padding so the pad masks actually do something
    source = source.at[:, -2:].set(PAD_ID)
    target = target.at[:, -1:].set(PAD_ID)

    fwd = jax.jit(transformer_forward)
    dec_logits, enc_self_attns, dec_self_attns, dec_enc_attns = fwd(params, source, target)
    jax.block_until_ready(dec_logits)

    assert dec_logits.shape == (B, TGT_LEN, VOCAB)
    assert enc_self_attns[0].shape == (B, N_HEADS, SRC_LEN, SRC_LEN)
    assert dec_self_attns[0].shape == (B, N_HEADS, TGT_LEN, TGT_LEN)
    assert dec_enc_attns[0].shape == (B, N_HEADS, TGT_LEN, SRC_LEN)
    assert bool(jnp.all(jnp.isfinite(dec_logits)))
    # attention rows sum to ~1 (approx EUP reciprocal in the softmax normalization)
    assert bool(jnp.allclose(jnp.sum(enc_self_attns[0], axis=-1), 1.0, atol=5e-3))
    assert bool(jnp.allclose(jnp.sum(dec_self_attns[0], axis=-1), 1.0, atol=5e-3))

    print("KERNEL_OK")
</pallas_src>

<mosaic_0001>
module attributes {stable_mosaic.version = 11 : i64} {
  func.func @_encoder_stack_kernel(%arg0: i32, %arg1: memref<1x8x32xf32, #tpu.memory_space<vmem>>, %arg2: memref<1x1x8xi32, #tpu.memory_space<vmem>>, %arg3: memref<2x4x32x8xbf16, #tpu.memory_space<vmem>>, %arg4: memref<2x4x32x8xbf16, #tpu.memory_space<vmem>>, %arg5: memref<2x4x32x8xbf16, #tpu.memory_space<vmem>>, %arg6: memref<2x32x32xbf16, #tpu.memory_space<vmem>>, %arg7: memref<2x1x32xf32, #tpu.memory_space<vmem>>, %arg8: memref<2x1x32xf32, #tpu.memory_space<vmem>>, %arg9: memref<2x32x64xbf16, #tpu.memory_space<vmem>>, %arg10: memref<2x64x32xbf16, #tpu.memory_space<vmem>>, %arg11: memref<2x1x32xf32, #tpu.memory_space<vmem>>, %arg12: memref<2x1x32xf32, #tpu.memory_space<vmem>>, %arg13: memref<1x8x32xf32, #tpu.memory_space<vmem>>, %arg14: memref<1x2x8x32xf32, #tpu.memory_space<vmem>>) attributes {dimension_semantics = [#tpu.dimension_semantics<parallel>], iteration_bounds = array<i64: 2>, scalar_prefetch = 0 : i64, scratch_operands = 0 : i64, tpu.core_type = #tpu.core_type<tc>, window_params = [{transform_indices = @transform_0, window_bounds = array<i64: 1, 8, 32>}, {transform_indices = @transform_1, window_bounds = array<i64: 1, 1, 8>}, {pipeline_mode = #tpu.pipeline_mode<synchronous>, transform_indices = @transform_2, window_bounds = array<i64: 2, 4, 32, 8>}, {pipeline_mode = #tpu.pipeline_mode<synchronous>, transform_indices = @transform_3, window_bounds = array<i64: 2, 4, 32, 8>}, {pipeline_mode = #tpu.pipeline_mode<synchronous>, transform_indices = @transform_4, window_bounds = array<i64: 2, 4, 32, 8>}, {pipeline_mode = #tpu.pipeline_mode<synchronous>, transform_indices = @transform_5, window_bounds = array<i64: 2, 32, 32>}, {pipeline_mode = #tpu.pipeline_mode<synchronous>, transform_indices = @transform_6, window_bounds = array<i64: 2, 1, 32>}, {pipeline_mode = #tpu.pipeline_mode<synchronous>, transform_indices = @transform_7, window_bounds = array<i64: 2, 1, 32>}, {pipeline_mode = #tpu.pipeline_mode<synchronous>, transform_indices = @transform_8, window_bounds = array<i64: 2, 32, 64>}, {pipeline_mode = #tpu.pipeline_mode<synchronous>, transform_indices = @transform_9, window_bounds = array<i64: 2, 64, 32>}, {pipeline_mode = #tpu.pipeline_mode<synchronous>, transform_indices = @transform_10, window_bounds = array<i64: 2, 1, 32>}, {pipeline_mode = #tpu.pipeline_mode<synchronous>, transform_indices = @transform_11, window_bounds = array<i64: 2, 1, 32>}, {transform_indices = @transform_12, window_bounds = array<i64: 1, 8, 32>}, {transform_indices = @transform_13, window_bounds = array<i64: 1, 2, 8, 32>}]} {
    %c0 = arith.constant 0 : index
    %c0_0 = arith.constant 0 : index
    %c0_1 = arith.constant 0 : index
    %0 = vector.load %arg1[%c0, %c0_0, %c0_1] : memref<1x8x32xf32, #tpu.memory_space<vmem>>, vector<1x8x32xf32>
    %1 = vector.shape_cast %0 : vector<1x8x32xf32> to vector<8x32xf32>
    %c0_2 = arith.constant 0 : index
    %c0_3 = arith.constant 0 : index
    %c0_4 = arith.constant 0 : index
    %2 = vector.load %arg2[%c0_2, %c0_3, %c0_4] : memref<1x1x8xi32, #tpu.memory_space<vmem>>, vector<1x1x8xi32>
    %3 = vector.shape_cast %2 : vector<1x1x8xi32> to vector<1x8xi32>
    %c0_i32 = arith.constant 0 : i32
    %4 = vector.broadcast %c0_i32 : i32 to vector<1x8xi32>
    %5 = arith.cmpi eq, %3, %4 : vector<1x8xi32>
    %cst = arith.constant -1.000000e+09 : f32
    %cst_5 = arith.constant 0.000000e+00 : f32
    %6 = vector.broadcast %cst : f32 to vector<1x8xf32>
    %7 = vector.broadcast %cst_5 : f32 to vector<1x8xf32>
    %8 = arith.select %5, %6, %7 : vector<1x8xi1>, vector<1x8xf32>
    %9 = vector.shape_cast %8 : vector<1x8xf32> to vector<1x8xf32>
    %10 = vector.broadcast %9 : vector<1x8xf32> to vector<8x8xf32>
    %11 = arith.truncf %1 : vector<8x32xf32> to vector<8x32xbf16>
    %12 = vector.shape_cast %11 : vector<8x32xbf16> to vector<1x8x32xbf16>
    %13 = vector.shape_cast %12 : vector<1x8x32xbf16> to vector<1x8x32xbf16>
    %14 = vector.broadcast %13 : vector<1x8x32xbf16> to vector<4x8x32xbf16>
    %c0_6 = arith.constant 0 : index
    %c0_7 = arith.constant 0 : index
    %c0_8 = arith.constant 0 : index
    %c0_9 = arith.constant 0 : index
    %15 = vector.load %arg3[%c0_6, %c0_7, %c0_8, %c0_9] : memref<2x4x32x8xbf16, #tpu.memory_space<vmem>>, vector<1x4x32x8xbf16>
    %16 = vector.shape_cast %15 : vector<1x4x32x8xbf16> to vector<4x32x8xbf16>
    %c0_10 = arith.constant 0 : index
    %c0_11 = arith.constant 0 : index
    %c0_12 = arith.constant 0 : index
    %c0_13 = arith.constant 0 : index
    %17 = vector.load %arg4[%c0_10, %c0_11, %c0_12, %c0_13] : memref<2x4x32x8xbf16, #tpu.memory_space<vmem>>, vector<1x4x32x8xbf16>
    %18 = vector.shape_cast %17 : vector<1x4x32x8xbf16> to vector<4x32x8xbf16>
    %c0_14 = arith.constant 0 : index
    %c0_15 = arith.constant 0 : index
    %c0_16 = arith.constant 0 : index
    %c0_17 = arith.constant 0 : index
    %19 = vector.load %arg5[%c0_14, %c0_15, %c0_16, %c0_17] : memref<2x4x32x8xbf16, #tpu.memory_space<vmem>>, vector<1x4x32x8xbf16>
    %20 = vector.shape_cast %19 : vector<1x4x32x8xbf16> to vector<4x32x8xbf16>
    %c0_18 = arith.constant 0 : index
    %c0_19 = arith.constant 0 : index
    %c0_20 = arith.constant 0 : index
    %21 = vector.load %arg6[%c0_18, %c0_19, %c0_20] : memref<2x32x32xbf16, #tpu.memory_space<vmem>>, vector<1x32x32xbf16>
    %22 = vector.shape_cast %21 : vector<1x32x32xbf16> to vector<32x32xbf16>
    %c0_21 = arith.constant 0 : index
    %c0_22 = arith.constant 0 : index
    %c0_23 = arith.constant 0 : index
    %23 = vector.load %arg7[%c0_21, %c0_22, %c0_23] : memref<2x1x32xf32, #tpu.memory_space<vmem>>, vector<1x1x32xf32>
    %24 = vector.shape_cast %23 : vector<1x1x32xf32> to vector<1x32xf32>
    %c0_24 = arith.constant 0 : index
    %c0_25 = arith.constant 0 : index
    %c0_26 = arith.constant 0 : index
    %25 = vector.load %arg8[%c0_24, %c0_25, %c0_26] : memref<2x1x32xf32, #tpu.memory_space<vmem>>, vector<1x1x32xf32>
    %26 = vector.shape_cast %25 : vector<1x1x32xf32> to vector<1x32xf32>
    "tpu.trace_start"() <{level = 10 : i32, message = "hsd,hdk->hsk"}> : () -> ()
    %cst_27 = arith.constant dense<0.000000e+00> : vector<4x8x8xf32>
    %27 = tpu.matmul %14, %16, %cst_27 {dimension_numbers = #tpu.dot_dimension_numbers<[2], [1], [1], [2], [0, 0, 0, 1, 1, 2], [0], [0]>} : vector<4x8x32xbf16>, vector<4x32x8xbf16>, vector<4x8x8xf32> -> vector<4x8x8xf32>
    %cst_28 = arith.constant dense<0.000000e+00> : vector<4x8x8xf32>
    %28 = tpu.matmul %14, %18, %cst_28 {dimension_numbers = #tpu.dot_dimension_numbers<[2], [1], [1], [2], [0, 0, 0, 1, 1, 2], [0], [0]>} : vector<4x8x32xbf16>, vector<4x32x8xbf16>, vector<4x8x8xf32> -> vector<4x8x8xf32>
    %cst_29 = arith.constant dense<0.000000e+00> : vector<4x8x8xf32>
    %29 = tpu.matmul %14, %20, %cst_29 {dimension_numbers = #tpu.dot_dimension_numbers<[2], [1], [1], [2], [0, 0, 0, 1, 1, 2], [0], [0]>} : vector<4x8x32xbf16>, vector<4x32x8xbf16>, vector<4x8x8xf32> -> vector<4x8x8xf32>
    "tpu.trace_stop"() : () -> ()
    %30 = arith.truncf %27 : vector<4x8x8xf32> to vector<4x8x8xbf16>
    %31 = arith.truncf %28 : vector<4x8x8xf32> to vector<4x8x8xbf16>
    "tpu.trace_start"() <{level = 10 : i32, message = "hqd,hkd->hqk"}> : () -> ()
    %cst_30 = arith.constant dense<0.000000e+00> : vector<4x8x8xf32>
    %32 = tpu.matmul %30, %31, %cst_30 {dimension_numbers = #tpu.dot_dimension_numbers<[2], [2], [1], [1], [0, 0, 0, 1, 1, 1], [0], [0]>} : vector<4x8x8xbf16>, vector<4x8x8xbf16>, vector<4x8x8xf32> -> vector<4x8x8xf32>
    "tpu.trace_stop"() : () -> ()
    %cst_31 = arith.constant 0.353553385 : f32
    %33 = vector.broadcast %cst_31 : f32 to vector<4x8x8xf32>
    %34 = arith.mulf %32, %33 : vector<4x8x8xf32>
    %35 = vector.shape_cast %10 : vector<8x8xf32> to vector<1x8x8xf32>
    %36 = vector.broadcast %35 : vector<1x8x8xf32> to vector<4x8x8xf32>
    %37 = arith.addf %34, %36 : vector<4x8x8xf32>
    %cst_32 = arith.constant dense<0xFF800000> : vector<4x8xf32>
    %38 = vector.multi_reduction <maximumf>, %37, %cst_32 [2] : vector<4x8x8xf32> to vector<4x8xf32>
    %39 = vector.shape_cast %38 : vector<4x8xf32> to vector<4x8x1xf32>
    %40 = vector.broadcast %39 : vector<4x8x1xf32> to vector<4x8x8xf32>
    %41 = arith.subf %37, %40 : vector<4x8x8xf32>
    %42 = math.exp %41 : vector<4x8x8xf32>
    %cst_33 = arith.constant dense<0.000000e+00> : vector<4x8xf32>
    %43 = vector.multi_reduction <add>, %42, %cst_33 [2] : vector<4x8x8xf32> to vector<4x8xf32>
    %44 = vector.shape_cast %43 : vector<4x8xf32> to vector<4x8x1xf32>
    %45 = tpu.reciprocal %44 {approx = true} : vector<4x8x1xf32> -> vector<4x8x1xf32>
    %46 = vector.broadcast %45 : vector<4x8x1xf32> to vector<4x8x8xf32>
    %47 = arith.mulf %42, %46 : vector<4x8x8xf32>
    %48 = arith.truncf %47 : vector<4x8x8xf32> to vector<4x8x8xbf16>
    %49 = arith.truncf %29 : vector<4x8x8xf32> to vector<4x8x8xbf16>
    "tpu.trace_start"() <{level = 10 : i32, message = "hqk,hkd->hqd"}> : () -> ()
    %cst_34 = arith.constant dense<0.000000e+00> : vector<4x8x8xf32>
    %50 = tpu.matmul %48, %49, %cst_34 {dimension_numbers = #tpu.dot_dimension_numbers<[2], [1], [1], [2], [0, 0, 0, 1, 1, 2], [0], [0]>} : vector<4x8x8xbf16>, vector<4x8x8xbf16>, vector<4x8x8xf32> -> vector<4x8x8xf32>
    "tpu.trace_stop"() : () -> ()
    %51 = vector.extract_strided_slice %50 {offsets = [0, 0, 0], sizes = [1, 8, 8], strides = [1, 1, 1]} : vector<4x8x8xf32> to vector<1x8x8xf32>
    %52 = vector.shape_cast %51 : vector<1x8x8xf32> to vector<8x8xf32>
    %53 = vector.extract_strided_slice %50 {offsets = [1, 0, 0], sizes = [1, 8, 8], strides = [1, 1, 1]} : vector<4x8x8xf32> to vector<1x8x8xf32>
    %54 = vector.shape_cast %53 : vector<1x8x8xf32> to vector<8x8xf32>
    %55 = vector.extract_strided_slice %50 {offsets = [2, 0, 0], sizes = [1, 8, 8], strides = [1, 1, 1]} : vector<4x8x8xf32> to vector<1x8x8xf32>
    %56 = vector.shape_cast %55 : vector<1x8x8xf32> to vector<8x8xf32>
    %57 = vector.extract_strided_slice %50 {offsets = [3, 0, 0], sizes = [1, 8, 8], strides = [1, 1, 1]} : vector<4x8x8xf32> to vector<1x8x8xf32>
    %58 = vector.shape_cast %57 : vector<1x8x8xf32> to vector<8x8xf32>
    %59 = tpu.concatenate %52, %54, %56, %58 in 1 : vector<8x8xf32>, vector<8x8xf32>, vector<8x8xf32>, vector<8x8xf32> -> vector<8x32xf32>
    %60 = arith.truncf %59 : vector<8x32xf32> to vector<8x32xbf16>
    %cst_35 = arith.constant dense<0.000000e+00> : vector<8x32xf32>
    %61 = tpu.matmul %60, %22, %cst_35 {dimension_numbers = #tpu.dot_dimension_numbers<[1], [0], [0], [1], [0, 0, 1, 1], [], []>} : vector<8x32xbf16>, vector<32x32xbf16>, vector<8x32xf32> -> vector<8x32xf32>
    %62 = arith.addf %1, %61 : vector<8x32xf32>
    %63 = vector.extract_strided_slice %47 {offsets = [0, 0, 0], sizes = [1, 8, 8], strides = [1, 1, 1]} : vector<4x8x8xf32> to vector<1x8x8xf32>
    %64 = vector.shape_cast %63 : vector<1x8x8xf32> to vector<8x8xf32>
    %65 = vector.extract_strided_slice %47 {offsets = [1, 0, 0], sizes = [1, 8, 8], strides = [1, 1, 1]} : vector<4x8x8xf32> to vector<1x8x8xf32>
    %66 = vector.shape_cast %65 : vector<1x8x8xf32> to vector<8x8xf32>
    %67 = vector.extract_strided_slice %47 {offsets = [2, 0, 0], sizes = [1, 8, 8], strides = [1, 1, 1]} : vector<4x8x8xf32> to vector<1x8x8xf32>
    %68 = vector.shape_cast %67 : vector<1x8x8xf32> to vector<8x8xf32>
    %69 = vector.extract_strided_slice %47 {offsets = [3, 0, 0], sizes = [1, 8, 8], strides = [1, 1, 1]} : vector<4x8x8xf32> to vector<1x8x8xf32>
    %70 = vector.shape_cast %69 : vector<1x8x8xf32> to vector<8x8xf32>
    %71 = tpu.concatenate %64, %66, %68, %70 in 1 : vector<8x8xf32>, vector<8x8xf32>, vector<8x8xf32>, vector<8x8xf32> -> vector<8x32xf32>
    %cst_36 = arith.constant dense<0.000000e+00> : vector<8xf32>
    %72 = vector.multi_reduction <add>, %62, %cst_36 [1] : vector<8x32xf32> to vector<8xf32>
    %73 = vector.shape_cast %72 : vector<8xf32> to vector<8x1xf32>
    %cst_37 = arith.constant 3.200000e+01 : f32
    %74 = vector.broadcast %cst_37 : f32 to vector<8x1xf32>
    %75 = arith.divf %73, %74 : vector<8x1xf32>
    %76 = vector.broadcast %75 : vector<8x1xf32> to vector<8x32xf32>
    %77 = arith.subf %62, %76 : vector<8x32xf32>
    %78 = arith.mulf %77, %77 : vector<8x32xf32>
    %cst_38 = arith.constant dense<0.000000e+00> : vector<8xf32>
    %79 = vector.multi_reduction <add>, %78, %cst_38 [1] : vector<8x32xf32> to vector<8xf32>
    %80 = vector.shape_cast %79 : vector<8xf32> to vector<8x1xf32>
    %cst_39 = arith.constant 3.200000e+01 : f32
    %81 = vector.broadcast %cst_39 : f32 to vector<8x1xf32>
    %82 = arith.divf %80, %81 : vector<8x1xf32>
    %83 = vector.broadcast %75 : vector<8x1xf32> to vector<8x32xf32>
    %84 = arith.subf %62, %83 : vector<8x32xf32>
    %cst_40 = arith.constant 9.99999974E-6 : f32
    %85 = vector.broadcast %cst_40 : f32 to vector<8x1xf32>
    %86 = arith.addf %82, %85 : vector<8x1xf32>
    %87 = math.rsqrt %86 : vector<8x1xf32>
    %88 = vector.broadcast %87 : vector<8x1xf32> to vector<8x32xf32>
    %89 = arith.mulf %84, %88 : vector<8x32xf32>
    %90 = vector.broadcast %24 : vector<1x32xf32> to vector<8x32xf32>
    %91 = arith.mulf %89, %90 : vector<8x32xf32>
    %92 = vector.broadcast %26 : vector<1x32xf32> to vector<8x32xf32>
    %93 = arith.addf %91, %92 : vector<8x32xf32>
    %c0_41 = arith.constant 0 : index
    %c0_42 = arith.constant 0 : index
    %c0_43 = arith.constant 0 : index
    %c0_44 = arith.constant 0 : index
    %94 = vector.load %arg14[%c0_41, %c0_42, %c0_43, %c0_44] : memref<1x2x8x32xf32, #tpu.memory_space<vmem>>, vector<1x1x8x32xf32>
    %95 = vector.shape_cast %94 : vector<1x1x8x32xf32> to vector<8x32xf32>
    %96 = vector.shape_cast %71 : vector<8x32xf32> to vector<1x1x8x32xf32>
    tpu.vector_store %arg14[%c0_41, %c0_42, %c0_43, %c0_44], %96 {strides = array<i32>} : memref<1x2x8x32xf32, #tpu.memory_space<vmem>>, vector<1x1x8x32xf32>,
    %c0_45 = arith.constant 0 : index
    %c0_46 = arith.constant 0 : index
    %c0_47 = arith.constant 0 : index
    %97 = vector.load %arg9[%c0_45, %c0_46, %c0_47] : memref<2x32x64xbf16, #tpu.memory_space<vmem>>, vector<1x32x64xbf16>
    %98 = vector.shape_cast %97 : vector<1x32x64xbf16> to vector<32x64xbf16>
    %c0_48 = arith.constant 0 : index
    %c0_49 = arith.constant 0 : index
    %c0_50 = arith.constant 0 : index
    %99 = vector.load %arg10[%c0_48, %c0_49, %c0_50] : memref<2x64x32xbf16, #tpu.memory_space<vmem>>, vector<1x64x32xbf16>
    %100 = vector.shape_cast %99 : vector<1x64x32xbf16> to vector<64x32xbf16>
    %c0_51 = arith.constant 0 : index
    %c0_52 = arith.constant 0 : index
    %c0_53 = arith.constant 0 : index
    %101 = vector.load %arg11[%c0_51, %c0_52, %c0_53] : memref<2x1x32xf32, #tpu.memory_space<vmem>>, vector<1x1x32xf32>
    %102 = vector.shape_cast %101 : vector<1x1x32xf32> to vector<1x32xf32>
    %c0_54 = arith.constant 0 : index
    %c0_55 = arith.constant 0 : index
    %c0_56 = arith.constant 0 : index
    %103 = vector.load %arg12[%c0_54, %c0_55, %c0_56] : memref<2x1x32xf32, #tpu.memory_space<vmem>>, vector<1x1x32xf32>
    %104 = vector.shape_cast %103 : vector<1x1x32xf32> to vector<1x32xf32>
    %105 = arith.truncf %93 : vector<8x32xf32> to vector<8x32xbf16>
    %cst_57 = arith.constant dense<0.000000e+00> : vector<8x64xf32>
    %106 = tpu.matmul %105, %98, %cst_57 {dimension_numbers = #tpu.dot_dimension_numbers<[1], [0], [0], [1], [0, 0, 1, 1], [], []>} : vector<8x32xbf16>, vector<32x64xbf16>, vector<8x64xf32> -> vector<8x64xf32>
    %cst_58 = arith.constant 0.000000e+00 : f32
    %107 = vector.broadcast %cst_58 : f32 to vector<8x64xf32>
    %108 = arith.maximumf %106, %107 : vector<8x64xf32>
    %109 = arith.truncf %108 : vector<8x64xf32> to vector<8x64xbf16>
    %cst_59 = arith.constant dense<0.000000e+00> : vector<8x32xf32>
    %110 = tpu.matmul %109, %100, %cst_59 {dimension_numbers = #tpu.dot_dimension_numbers<[1], [0], [0], [1], [0, 0, 1, 1], [], []>} : vector<8x64xbf16>, vector<64x32xbf16>, vector<8x32xf32> -> vector<8x32xf32>
    %111 = arith.addf %110, %93 : vector<8x32xf32>
    %cst_60 = arith.constant dense<0.000000e+00> : vector<8xf32>
    %112 = vector.multi_reduction <add>, %111, %cst_60 [1] : vector<8x32xf32> to vector<8xf32>
    %113 = vector.shape_cast %112 : vector<8xf32> to vector<8x1xf32>
    %cst_61 = arith.constant 3.200000e+01 : f32
    %114 = vector.broadcast %cst_61 : f32 to vector<8x1xf32>
    %115 = arith.divf %113, %114 : vector<8x1xf32>
    %116 = vector.broadcast %115 : vector<8x1xf32> to vector<8x32xf32>
    %117 = arith.subf %111, %116 : vector<8x32xf32>
    %118 = arith.mulf %117, %117 : vector<8x32xf32>
    %cst_62 = arith.constant dense<0.000000e+00> : vector<8xf32>
    %119 = vector.multi_reduction <add>, %118, %cst_62 [1] : vector<8x32xf32> to vector<8xf32>
    %120 = vector.shape_cast %119 : vector<8xf32> to vector<8x1xf32>
    %cst_63 = arith.constant 3.200000e+01 : f32
    %121 = vector.broadcast %cst_63 : f32 to vector<8x1xf32>
    %122 = arith.divf %120, %121 : vector<8x1xf32>
    %123 = vector.broadcast %115 : vector<8x1xf32> to vector<8x32xf32>
    %124 = arith.subf %111, %123 : vector<8x32xf32>
    %cst_64 = arith.constant 9.99999974E-6 : f32
    %125 = vector.broadcast %cst_64 : f32 to vector<8x1xf32>
    %126 = arith.addf %122, %125 : vector<8x1xf32>
    %127 = math.rsqrt %126 : vector<8x1xf32>
    %128 = vector.broadcast %127 : vector<8x1xf32> to vector<8x32xf32>
    %129 = arith.mulf %124, %128 : vector<8x32xf32>
    %130 = vector.broadcast %102 : vector<1x32xf32> to vector<8x32xf32>
    %131 = arith.mulf %129, %130 : vector<8x32xf32>
    %132 = vector.broadcast %104 : vector<1x32xf32> to vector<8x32xf32>
    %133 = arith.addf %131, %132 : vector<8x32xf32>
    %134 = arith.truncf %133 : vector<8x32xf32> to vector<8x32xbf16>
    %135 = vector.shape_cast %134 : vector<8x32xbf16> to vector<1x8x32xbf16>
    %136 = vector.shape_cast %135 : vector<1x8x32xbf16> to vector<1x8x32xbf16>
    %137 = vector.broadcast %136 : vector<1x8x32xbf16> to vector<4x8x32xbf16>
    %c1 = arith.constant 1 : index
    %c0_65 = arith.constant 0 : index
    %c0_66 = arith.constant 0 : index
    %c0_67 = arith.constant 0 : index
    %138 = vector.load %arg3[%c1, %c0_65, %c0_66, %c0_67] : memref<2x4x32x8xbf16, #tpu.memory_space<vmem>>, vector<1x4x32x8xbf16>
    %139 = vector.shape_cast %138 : vector<1x4x32x8xbf16> to vector<4x32x8xbf16>
    %c1_68 = arith.constant 1 : index
    %c0_69 = arith.constant 0 : index
    %c0_70 = arith.constant 0 : index
    %c0_71 = arith.constant 0 : index
    %140 = vector.load %arg4[%c1_68, %c0_69, %c0_70, %c0_71] : memref<2x4x32x8xbf16, #tpu.memory_space<vmem>>, vector<1x4x32x8xbf16>
    %141 = vector.shape_cast %140 : vector<1x4x32x8xbf16> to vector<4x32x8xbf16>
    %c1_72 = arith.constant 1 : index
    %c0_73 = arith.constant 0 : index
    %c0_74 = arith.constant 0 : index
    %c0_75 = arith.constant 0 : index
    %142 = vector.load %arg5[%c1_72, %c0_73, %c0_74, %c0_75] : memref<2x4x32x8xbf16, #tpu.memory_space<vmem>>, vector<1x4x32x8xbf16>
    %143 = vector.shape_cast %142 : vector<1x4x32x8xbf16> to vector<4x32x8xbf16>
    %c1_76 = arith.constant 1 : index
    %c0_77 = arith.constant 0 : index
    %c0_78 = arith.constant 0 : index
    %144 = vector.load %arg6[%c1_76, %c0_77, %c0_78] : memref<2x32x32xbf16, #tpu.memory_space<vmem>>, vector<1x32x32xbf16>
    %145 = vector.shape_cast %144 : vector<1x32x32xbf16> to vector<32x32xbf16>
    %c1_79 = arith.constant 1 : index
    %c0_80 = arith.constant 0 : index
    %c0_81 = arith.constant 0 : index
    %146 = vector.load %arg7[%c1_79, %c0_80, %c0_81] : memref<2x1x32xf32, #tpu.memory_space<vmem>>, vector<1x1x32xf32>
    %147 = vector.shape_cast %146 : vector<1x1x32xf32> to vector<1x32xf32>
    %c1_82 = arith.constant 1 : index
    %c0_83 = arith.constant 0 : index
    %c0_84 = arith.constant 0 : index
    %148 = vector.load %arg8[%c1_82, %c0_83, %c0_84] : memref<2x1x32xf32, #tpu.memory_space<vmem>>, vector<1x1x32xf32>
    %149 = vector.shape_cast %148 : vector<1x1x32xf32> to vector<1x32xf32>
    "tpu.trace_start"() <{level = 10 : i32, message = "hsd,hdk->hsk"}> : () -> ()
    %cst_85 = arith.constant dense<0.000000e+00> : vector<4x8x8xf32>
    %150 = tpu.matmul %137, %139, %cst_85 {dimension_numbers = #tpu.dot_dimension_numbers<[2], [1], [1], [2], [0, 0, 0, 1, 1, 2], [0], [0]>} : vector<4x8x32xbf16>, vector<4x32x8xbf16>, vector<4x8x8xf32> -> vector<4x8x8xf32>
    %cst_86 = arith.constant dense<0.000000e+00> : vector<4x8x8xf32>
    %151 = tpu.matmul %137, %141, %cst_86 {dimension_numbers = #tpu.dot_dimension_numbers<[2], [1], [1], [2], [0, 0, 0, 1, 1, 2], [0], [0]>} : vector<4x8x32xbf16>, vector<4x32x8xbf16>, vector<4x8x8xf32> -> vector<4x8x8xf32>
    %cst_87 = arith.constant dense<0.000000e+00> : vector<4x8x8xf32>
    %152 = tpu.matmul %137, %143, %cst_87 {dimension_numbers = #tpu.dot_dimension_numbers<[2], [1], [1], [2], [0, 0, 0, 1, 1, 2], [0], [0]>} : vector<4x8x32xbf16>, vector<4x32x8xbf16>, vector<4x8x8xf32> -> vector<4x8x8xf32>
    "tpu.trace_stop"() : () -> ()
    %153 = arith.truncf %150 : vector<4x8x8xf32> to vector<4x8x8xbf16>
    %154 = arith.truncf %151 : vector<4x8x8xf32> to vector<4x8x8xbf16>
    "tpu.trace_start"() <{level = 10 : i32, message = "hqd,hkd->hqk"}> : () -> ()
    %cst_88 = arith.constant dense<0.000000e+00> : vector<4x8x8xf32>
    %155 = tpu.matmul %153, %154, %cst_88 {dimension_numbers = #tpu.dot_dimension_numbers<[2], [2], [1], [1], [0, 0, 0, 1, 1, 1], [0], [0]>} : vector<4x8x8xbf16>, vector<4x8x8xbf16>, vector<4x8x8xf32> -> vector<4x8x8xf32>
    "tpu.trace_stop"() : () -> ()
    %cst_89 = arith.constant 0.353553385 : f32
    %156 = vector.broadcast %cst_89 : f32 to vector<4x8x8xf32>
    %157 = arith.mulf %155, %156 : vector<4x8x8xf32>
    %158 = vector.shape_cast %10 : vector<8x8xf32> to vector<1x8x8xf32>
    %159 = vector.broadcast %158 : vector<1x8x8xf32> to vector<4x8x8xf32>
    %160 = arith.addf %157, %159 : vector<4x8x8xf32>
    %cst_90 = arith.constant dense<0xFF800000> : vector<4x8xf32>
    %161 = vector.multi_reduction <maximumf>, %160, %cst_90 [2] : vector<4x8x8xf32> to vector<4x8xf32>
    %162 = vector.shape_cast %161 : vector<4x8xf32> to vector<4x8x1xf32>
    %163 = vector.broadcast %162 : vector<4x8x1xf32> to vector<4x8x8xf32>
    %164 = arith.subf %160, %163 : vector<4x8x8xf32>
    %165 = math.exp %164 : vector<4x8x8xf32>
    %cst_91 = arith.constant dense<0.000000e+00> : vector<4x8xf32>
    %166 = vector.multi_reduction <add>, %165, %cst_91 [2] : vector<4x8x8xf32> to vector<4x8xf32>
    %167 = vector.shape_cast %166 : vector<4x8xf32> to vector<4x8x1xf32>
    %168 = tpu.reciprocal %167 {approx = true} : vector<4x8x1xf32> -> vector<4x8x1xf32>
    %169 = vector.broadcast %168 : vector<4x8x1xf32> to vector<4x8x8xf32>
    %170 = arith.mulf %165, %169 : vector<4x8x8xf32>
    %171 = arith.truncf %170 : vector<4x8x8xf32> to vector<4x8x8xbf16>
    %172 = arith.truncf %152 : vector<4x8x8xf32> to vector<4x8x8xbf16>
    "tpu.trace_start"() <{level = 10 : i32, message = "hqk,hkd->hqd"}> : () -> ()
    %cst_92 = arith.constant dense<0.000000e+00> : vector<4x8x8xf32>
    %173 = tpu.matmul %171, %172, %cst_92 {dimension_numbers = #tpu.dot_dimension_numbers<[2], [1], [1], [2], [0, 0, 0, 1, 1, 2], [0], [0]>} : vector<4x8x8xbf16>, vector<4x8x8xbf16>, vector<4x8x8xf32> -> vector<4x8x8xf32>
    "tpu.trace_stop"() : () -> ()
    %174 = vector.extract_strided_slice %173 {offsets = [0, 0, 0], sizes = [1, 8, 8], strides = [1, 1, 1]} : vector<4x8x8xf32> to vector<1x8x8xf32>
    %175 = vector.shape_cast %174 : vector<1x8x8xf32> to vector<8x8xf32>
    %176 = vector.extract_strided_slice %173 {offsets = [1, 0, 0], sizes = [1, 8, 8], strides = [1, 1, 1]} : vector<4x8x8xf32> to vector<1x8x8xf32>
    %177 = vector.shape_cast %176 : vector<1x8x8xf32> to vector<8x8xf32>
    %178 = vector.extract_strided_slice %173 {offsets = [2, 0, 0], sizes = [1, 8, 8], strides = [1, 1, 1]} : vector<4x8x8xf32> to vector<1x8x8xf32>
    %179 = vector.shape_cast %178 : vector<1x8x8xf32> to vector<8x8xf32>
    %180 = vector.extract_strided_slice %173 {offsets = [3, 0, 0], sizes = [1, 8, 8], strides = [1, 1, 1]} : vector<4x8x8xf32> to vector<1x8x8xf32>
    %181 = vector.shape_cast %180 : vector<1x8x8xf32> to vector<8x8xf32>
    %182 = tpu.concatenate %175, %177, %179, %181 in 1 : vector<8x8xf32>, vector<8x8xf32>, vector<8x8xf32>, vector<8x8xf32> -> vector<8x32xf32>
    %183 = arith.truncf %182 : vector<8x32xf32> to vector<8x32xbf16>
    %cst_93 = arith.constant dense<0.000000e+00> : vector<8x32xf32>
    %184 = tpu.matmul %183, %145, %cst_93 {dimension_numbers = #tpu.dot_dimension_numbers<[1], [0], [0], [1], [0, 0, 1, 1], [], []>} : vector<8x32xbf16>, vector<32x32xbf16>, vector<8x32xf32> -> vector<8x32xf32>
    %185 = arith.addf %133, %184 : vector<8x32xf32>
    %186 = vector.extract_strided_slice %170 {offsets = [0, 0, 0], sizes = [1, 8, 8], strides = [1, 1, 1]} : vector<4x8x8xf32> to vector<1x8x8xf32>
    %187 = vector.shape_cast %186 : vector<1x8x8xf32> to vector<8x8xf32>
    %188 = vector.extract_strided_slice %170 {offsets = [1, 0, 0], sizes = [1, 8, 8], strides = [1, 1, 1]} : vector<4x8x8xf32> to vector<1x8x8xf32>
    %189 = vector.shape_cast %188 : vector<1x8x8xf32> to vector<8x8xf32>
    %190 = vector.extract_strided_slice %170 {offsets = [2, 0, 0], sizes = [1, 8, 8], strides = [1, 1, 1]} : vector<4x8x8xf32> to vector<1x8x8xf32>
    %191 = vector.shape_cast %190 : vector<1x8x8xf32> to vector<8x8xf32>
    %192 = vector.extract_strided_slice %170 {offsets = [3, 0, 0], sizes = [1, 8, 8], strides = [1, 1, 1]} : vector<4x8x8xf32> to vector<1x8x8xf32>
    %193 = vector.shape_cast %192 : vector<1x8x8xf32> to vector<8x8xf32>
    %194 = tpu.concatenate %187, %189, %191, %193 in 1 : vector<8x8xf32>, vector<8x8xf32>, vector<8x8xf32>, vector<8x8xf32> -> vector<8x32xf32>
    %cst_94 = arith.constant dense<0.000000e+00> : vector<8xf32>
    %195 = vector.multi_reduction <add>, %185, %cst_94 [1] : vector<8x32xf32> to vector<8xf32>
    %196 = vector.shape_cast %195 : vector<8xf32> to vector<8x1xf32>
    %cst_95 = arith.constant 3.200000e+01 : f32
    %197 = vector.broadcast %cst_95 : f32 to vector<8x1xf32>
    %198 = arith.divf %196, %197 : vector<8x1xf32>
    %199 = vector.broadcast %198 : vector<8x1xf32> to vector<8x32xf32>
    %200 = arith.subf %185, %199 : vector<8x32xf32>
    %201 = arith.mulf %200, %200 : vector<8x32xf32>
    %cst_96 = arith.constant dense<0.000000e+00> : vector<8xf32>
    %202 = vector.multi_reduction <add>, %201, %cst_96 [1] : vector<8x32xf32> to vector<8xf32>
    %203 = vector.shape_cast %202 : vector<8xf32> to vector<8x1xf32>
    %cst_97 = arith.constant 3.200000e+01 : f32
    %204 = vector.broadcast %cst_97 : f32 to vector<8x1xf32>
    %205 = arith.divf %203, %204 : vector<8x1xf32>
    %206 = vector.broadcast %198 : vector<8x1xf32> to vector<8x32xf32>
    %207 = arith.subf %185, %206 : vector<8x32xf32>
    %cst_98 = arith.constant 9.99999974E-6 : f32
    %208 = vector.broadcast %cst_98 : f32 to vector<8x1xf32>
    %209 = arith.addf %205, %208 : vector<8x1xf32>
    %210 = math.rsqrt %209 : vector<8x1xf32>
    %211 = vector.broadcast %210 : vector<8x1xf32> to vector<8x32xf32>
    %212 = arith.mulf %207, %211 : vector<8x32xf32>
    %213 = vector.broadcast %147 : vector<1x32xf32> to vector<8x32xf32>
    %214 = arith.mulf %212, %213 : vector<8x32xf32>
    %215 = vector.broadcast %149 : vector<1x32xf32> to vector<8x32xf32>
    %216 = arith.addf %214, %215 : vector<8x32xf32>
    %c0_99 = arith.constant 0 : index
    %c1_100 = arith.constant 1 : index
    %c0_101 = arith.constant 0 : index
    %c0_102 = arith.constant 0 : index
    %217 = vector.load %arg14[%c0_99, %c1_100, %c0_101, %c0_102] : memref<1x2x8x32xf32, #tpu.memory_space<vmem>>, vector<1x1x8x32xf32>
    %218 = vector.shape_cast %217 : vector<1x1x8x32xf32> to vector<8x32xf32>
    %219 = vector.shape_cast %194 : vector<8x32xf32> to vector<1x1x8x32xf32>
    tpu.vector_store %arg14[%c0_99, %c1_100, %c0_101, %c0_102], %219 {strides = array<i32>} : memref<1x2x8x32xf32, #tpu.memory_space<vmem>>, vector<1x1x8x32xf32>,
    %c1_103 = arith.constant 1 : index
    %c0_104 = arith.constant 0 : index
    %c0_105 = arith.constant 0 : index
    %220 = vector.load %arg9[%c1_103, %c0_104, %c0_105] : memref<2x32x64xbf16, #tpu.memory_space<vmem>>, vector<1x32x64xbf16>
    %221 = vector.shape_cast %220 : vector<1x32x64xbf16> to vector<32x64xbf16>
    %c1_106 = arith.constant 1 : index
    %c0_107 = arith.constant 0 : index
    %c0_108 = arith.constant 0 : index
    %222 = vector.load %arg10[%c1_106, %c0_107, %c0_108] : memref<2x64x32xbf16, #tpu.memory_space<vmem>>, vector<1x64x32xbf16>
    %223 = vector.shape_cast %222 : vector<1x64x32xbf16> to vector<64x32xbf16>
    %c1_109 = arith.constant 1 : index
    %c0_110 = arith.constant 0 : index
    %c0_111 = arith.constant 0 : index
    %224 = vector.load %arg11[%c1_109, %c0_110, %c0_111] : memref<2x1x32xf32, #tpu.memory_space<vmem>>, vector<1x1x32xf32>
    %225 = vector.shape_cast %224 : vector<1x1x32xf32> to vector<1x32xf32>
    %c1_112 = arith.constant 1 : index
    %c0_113 = arith.constant 0 : index
    %c0_114 = arith.constant 0 : index
    %226 = vector.load %arg12[%c1_112, %c0_113, %c0_114] : memref<2x1x32xf32, #tpu.memory_space<vmem>>, vector<1x1x32xf32>
    %227 = vector.shape_cast %226 : vector<1x1x32xf32> to vector<1x32xf32>
    %228 = arith.truncf %216 : vector<8x32xf32> to vector<8x32xbf16>
    %cst_115 = arith.constant dense<0.000000e+00> : vector<8x64xf32>
    %229 = tpu.matmul %228, %221, %cst_115 {dimension_numbers = #tpu.dot_dimension_numbers<[1], [0], [0], [1], [0, 0, 1, 1], [], []>} : vector<8x32xbf16>, vector<32x64xbf16>, vector<8x64xf32> -> vector<8x64xf32>
    %cst_116 = arith.constant 0.000000e+00 : f32
    %230 = vector.broadcast %cst_116 : f32 to vector<8x64xf32>
    %231 = arith.maximumf %229, %230 : vector<8x64xf32>
    %232 = arith.truncf %231 : vector<8x64xf32> to vector<8x64xbf16>
    %cst_117 = arith.constant dense<0.000000e+00> : vector<8x32xf32>
    %233 = tpu.matmul %232, %223, %cst_117 {dimension_numbers = #tpu.dot_dimension_numbers<[1], [0], [0], [1], [0, 0, 1, 1], [], []>} : vector<8x64xbf16>, vector<64x32xbf16>, vector<8x32xf32> -> vector<8x32xf32>
    %234 = arith.addf %233, %216 : vector<8x32xf32>
    %cst_118 = arith.constant dense<0.000000e+00> : vector<8xf32>
    %235 = vector.multi_reduction <add>, %234, %cst_118 [1] : vector<8x32xf32> to vector<8xf32>
    %236 = vector.shape_cast %235 : vector<8xf32> to vector<8x1xf32>
    %cst_119 = arith.constant 3.200000e+01 : f32
    %237 = vector.broadcast %cst_119 : f32 to vector<8x1xf32>
    %238 = arith.divf %236, %237 : vector<8x1xf32>
    %239 = vector.broadcast %238 : vector<8x1xf32> to vector<8x32xf32>
    %240 = arith.subf %234, %239 : vector<8x32xf32>
    %241 = arith.mulf %240, %240 : vector<8x32xf32>
    %cst_120 = arith.constant dense<0.000000e+00> : vector<8xf32>
    %242 = vector.multi_reduction <add>, %241, %cst_120 [1] : vector<8x32xf32> to vector<8xf32>
    %243 = vector.shape_cast %242 : vector<8xf32> to vector<8x1xf32>
    %cst_121 = arith.constant 3.200000e+01 : f32
    %244 = vector.broadcast %cst_121 : f32 to vector<8x1xf32>
    %245 = arith.divf %243, %244 : vector<8x1xf32>
    %246 = vector.broadcast %238 : vector<8x1xf32> to vector<8x32xf32>
    %247 = arith.subf %234, %246 : vector<8x32xf32>
    %cst_122 = arith.constant 9.99999974E-6 : f32
    %248 = vector.broadcast %cst_122 : f32 to vector<8x1xf32>
    %249 = arith.addf %245, %248 : vector<8x1xf32>
    %250 = math.rsqrt %249 : vector<8x1xf32>
    %251 = vector.broadcast %250 : vector<8x1xf32> to vector<8x32xf32>
    %252 = arith.mulf %247, %251 : vector<8x32xf32>
    %253 = vector.broadcast %225 : vector<1x32xf32> to vector<8x32xf32>
    %254 = arith.mulf %252, %253 : vector<8x32xf32>
    %255 = vector.broadcast %227 : vector<1x32xf32> to vector<8x32xf32>
    %256 = arith.addf %254, %255 : vector<8x32xf32>
    %c0_123 = arith.constant 0 : index
    %c0_124 = arith.constant 0 : index
    %c0_125 = arith.constant 0 : index
    %257 = vector.load %arg13[%c0_123, %c0_124, %c0_125] : memref<1x8x32xf32, #tpu.memory_space<vmem>>, vector<1x8x32xf32>
    %258 = vector.shape_cast %257 : vector<1x8x32xf32> to vector<8x32xf32>
    %259 = vector.shape_cast %256 : vector<8x32xf32> to vector<1x8x32xf32>
    tpu.vector_store %arg13[%c0_123, %c0_124, %c0_125], %259 {strides = array<i32>} : memref<1x8x32xf32, #tpu.memory_space<vmem>>, vector<1x8x32xf32>,
    return
  }
  func.func @transform_0(%arg0: i32) -> (i32, i32, i32) {
    %c0_i32 = arith.constant 0 : i32
    %c0_i32_0 = arith.constant 0 : i32
    %c0_i32_1 = arith.constant 0 : i32
    return %arg0, %c0_i32, %c0_i32_0 : i32, i32, i32
  }
  func.func @transform_1(%arg0: i32) -> (i32, i32, i32) {
    %c0_i32 = arith.constant 0 : i32
    %c0_i32_0 = arith.constant 0 : i32
    %c0_i32_1 = arith.constant 0 : i32
    return %arg0, %c0_i32, %c0_i32_0 : i32, i32, i32
  }
  func.func @transform_2(%arg0: i32) -> (i32, i32, i32, i32) {
    %c0_i32 = arith.constant 0 : i32
    %c0_i32_0 = arith.constant 0 : i32
    %c0_i32_1 = arith.constant 0 : i32
    %c0_i32_2 = arith.constant 0 : i32
    %c0_i32_3 = arith.constant 0 : i32
    return %c0_i32, %c0_i32_0, %c0_i32_1, %c0_i32_2 : i32, i32, i32, i32
  }
  func.func @transform_3(%arg0: i32) -> (i32, i32, i32, i32) {
    %c0_i32 = arith.constant 0 : i32
    %c0_i32_0 = arith.constant 0 : i32
    %c0_i32_1 = arith.constant 0 : i32
    %c0_i32_2 = arith.constant 0 : i32
    %c0_i32_3 = arith.constant 0 : i32
    return %c0_i32, %c0_i32_0, %c0_i32_1, %c0_i32_2 : i32, i32, i32, i32
  }
  func.func @transform_4(%arg0: i32) -> (i32, i32, i32, i32) {
    %c0_i32 = arith.constant 0 : i32
    %c0_i32_0 = arith.constant 0 : i32
    %c0_i32_1 = arith.constant 0 : i32
    %c0_i32_2 = arith.constant 0 : i32
    %c0_i32_3 = arith.constant 0 : i32
    return %c0_i32, %c0_i32_0, %c0_i32_1, %c0_i32_2 : i32, i32, i32, i32
  }
  func.func @transform_5(%arg0: i32) -> (i32, i32, i32) {
    %c0_i32 = arith.constant 0 : i32
    %c0_i32_0 = arith.constant 0 : i32
    %c0_i32_1 = arith.constant 0 : i32
    %c0_i32_2 = arith.constant 0 : i32
    return %c0_i32, %c0_i32_0, %c0_i32_1 : i32, i32, i32
  }
  func.func @transform_6(%arg0: i32) -> (i32, i32, i32) {
    %c0_i32 = arith.constant 0 : i32
    %c0_i32_0 = arith.constant 0 : i32
    %c0_i32_1 = arith.constant 0 : i32
    %c0_i32_2 = arith.constant 0 : i32
    return %c0_i32, %c0_i32_0, %c0_i32_1 : i32, i32, i32
  }
  func.func @transform_7(%arg0: i32) -> (i32, i32, i32) {
    %c0_i32 = arith.constant 0 : i32
    %c0_i32_0 = arith.constant 0 : i32
    %c0_i32_1 = arith.constant 0 : i32
    %c0_i32_2 = arith.constant 0 : i32
    return %c0_i32, %c0_i32_0, %c0_i32_1 : i32, i32, i32
  }
  func.func @transform_8(%arg0: i32) -> (i32, i32, i32) {
    %c0_i32 = arith.constant 0 : i32
    %c0_i32_0 = arith.constant 0 : i32
    %c0_i32_1 = arith.constant 0 : i32
    %c0_i32_2 = arith.constant 0 : i32
    return %c0_i32, %c0_i32_0, %c0_i32_1 : i32, i32, i32
  }
  func.func @transform_9(%arg0: i32) -> (i32, i32, i32) {
    %c0_i32 = arith.constant 0 : i32
    %c0_i32_0 = arith.constant 0 : i32
    %c0_i32_1 = arith.constant 0 : i32
    %c0_i32_2 = arith.constant 0 : i32
    return %c0_i32, %c0_i32_0, %c0_i32_1 : i32, i32, i32
  }
  func.func @transform_10(%arg0: i32) -> (i32, i32, i32) {
    %c0_i32 = arith.constant 0 : i32
    %c0_i32_0 = arith.constant 0 : i32
    %c0_i32_1 = arith.constant 0 : i32
    %c0_i32_2 = arith.constant 0 : i32
    return %c0_i32, %c0_i32_0, %c0_i32_1 : i32, i32, i32
  }
  func.func @transform_11(%arg0: i32) -> (i32, i32, i32) {
    %c0_i32 = arith.constant 0 : i32
    %c0_i32_0 = arith.constant 0 : i32
    %c0_i32_1 = arith.constant 0 : i32
    %c0_i32_2 = arith.constant 0 : i32
    return %c0_i32, %c0_i32_0, %c0_i32_1 : i32, i32, i32
  }
  func.func @transform_12(%arg0: i32) -> (i32, i32, i32) {
    %c0_i32 = arith.constant 0 : i32
    %c0_i32_0 = arith.constant 0 : i32
    %c0_i32_1 = arith.constant 0 : i32
    return %arg0, %c0_i32, %c0_i32_0 : i32, i32, i32
  }
  func.func @transform_13(%arg0: i32) -> (i32, i32, i32, i32) {
    %c0_i32 = arith.constant 0 : i32
    %c0_i32_0 = arith.constant 0 : i32
    %c0_i32_1 = arith.constant 0 : i32
    %c0_i32_2 = arith.constant 0 : i32
    return %arg0, %c0_i32, %c0_i32_0, %c0_i32_1 : i32, i32, i32, i32
  }
}

module attributes {stable_mosaic.version = 11 : i64} {
  func.func @_decoder_stack_kernel(%arg0: i32, %arg1: memref<1x8x32xf32, #tpu.memory_space<vmem>>, %arg2: memref<1x1x8xi32, #tpu.memory_space<vmem>>, %arg3: memref<1x1x8xi32, #tpu.memory_space<vmem>>, %arg4: memref<1x8x32xf32, #tpu.memory_space<vmem>>, %arg5: memref<2x4x32x8xbf16, #tpu.memory_space<vmem>>, %arg6: memref<2x4x32x8xbf16, #tpu.memory_space<vmem>>, %arg7: memref<2x4x32x8xbf16, #tpu.memory_space<vmem>>, %arg8: memref<2x32x32xbf16, #tpu.memory_space<vmem>>, %arg9: memref<2x1x32xf32, #tpu.memory_space<vmem>>, %arg10: memref<2x1x32xf32, #tpu.memory_space<vmem>>, %arg11: memref<2x4x32x8xbf16, #tpu.memory_space<vmem>>, %arg12: memref<2x4x32x8xbf16, #tpu.memory_space<vmem>>, %arg13: memref<2x4x32x8xbf16, #tpu.memory_space<vmem>>, %arg14: memref<2x32x32xbf16, #tpu.memory_space<vmem>>, %arg15: memref<2x1x32xf32, #tpu.memory_space<vmem>>, %arg16: memref<2x1x32xf32, #tpu.memory_space<vmem>>, %arg17: memref<2x32x64xbf16, #tpu.memory_space<vmem>>, %arg18: memref<2x64x32xbf16, #tpu.memory_space<vmem>>, %arg19: memref<2x1x32xf32, #tpu.memory_space<vmem>>, %arg20: memref<2x1x32xf32, #tpu.memory_space<vmem>>, %arg21: memref<32x128xbf16, #tpu.memory_space<vmem>>, %arg22: memref<1x8x128xf32, #tpu.memory_space<vmem>>, %arg23: memref<1x2x8x32xf32, #tpu.memory_space<vmem>>, %arg24: memref<1x2x8x32xf32, #tpu.memory_space<vmem>>) attributes {dimension_semantics = [#tpu.dimension_semantics<parallel>], iteration_bounds = array<i64: 2>, scalar_prefetch = 0 : i64, scratch_operands = 0 : i64, tpu.core_type = #tpu.core_type<tc>, window_params = [{transform_indices = @transform_0, window_bounds = array<i64: 1, 8, 32>}, {transform_indices = @transform_1, window_bounds = array<i64: 1, 1, 8>}, {transform_indices = @transform_2, window_bounds = array<i64: 1, 1, 8>}, {transform_indices = @transform_3, window_bounds = array<i64: 1, 8, 32>}, {pipeline_mode = #tpu.pipeline_mode<synchronous>, transform_indices = @transform_4, window_bounds = array<i64: 2, 4, 32, 8>}, {pipeline_mode = #tpu.pipeline_mode<synchronous>, transform_indices = @transform_5, window_bounds = array<i64: 2, 4, 32, 8>}, {pipeline_mode = #tpu.pipeline_mode<synchronous>, transform_indices = @transform_6, window_bounds = array<i64: 2, 4, 32, 8>}, {pipeline_mode = #tpu.pipeline_mode<synchronous>, transform_indices = @transform_7, window_bounds = array<i64: 2, 32, 32>}, {pipeline_mode = #tpu.pipeline_mode<synchronous>, transform_indices = @transform_8, window_bounds = array<i64: 2, 1, 32>}, {pipeline_mode = #tpu.pipeline_mode<synchronous>, transform_indices = @transform_9, window_bounds = array<i64: 2, 1, 32>}, {pipeline_mode = #tpu.pipeline_mode<synchronous>, transform_indices = @transform_10, window_bounds = array<i64: 2, 4, 32, 8>}, {pipeline_mode = #tpu.pipeline_mode<synchronous>, transform_indices = @transform_11, window_bounds = array<i64: 2, 4, 32, 8>}, {pipeline_mode = #tpu.pipeline_mode<synchronous>, transform_indices = @transform_12, window_bounds = array<i64: 2, 4, 32, 8>}, {pipeline_mode = #tpu.pipeline_mode<synchronous>, transform_indices = @transform_13, window_bounds = array<i64: 2, 32, 32>}, {pipeline_mode = #tpu.pipeline_mode<synchronous>, transform_indices = @transform_14, window_bounds = array<i64: 2, 1, 32>}, {pipeline_mode = #tpu.pipeline_mode<synchronous>, transform_indices = @transform_15, window_bounds = array<i64: 2, 1, 32>}, {pipeline_mode = #tpu.pipeline_mode<synchronous>, transform_indices = @transform_16, window_bounds = array<i64: 2, 32, 64>}, {pipeline_mode = #tpu.pipeline_mode<synchronous>, transform_indices = @transform_17, window_bounds = array<i64: 2, 64, 32>}, {pipeline_mode = #tpu.pipeline_mode<synchronous>, transform_indices = @transform_18, window_bounds = array<i64: 2, 1, 32>}, {pipeline_mode = #tpu.pipeline_mode<synchronous>, transform_indices = @transform_19, window_bounds = array<i64: 2, 1, 32>}, {pipeline_mode = #tpu.pipeline_mode<synchronous>, transform_indices = @transform_20, window_bounds = array<i64: 32, 128>}, {transform_indices = @transform_21, window_bounds = array<i64: 1, 8, 128>}, {transform_indices = @transform_22, window_bounds = array<i64: 1, 2, 8, 32>}, {transform_indices = @transform_23, window_bounds = array<i64: 1, 2, 8, 32>}]} {
    %c0 = arith.constant 0 : index
    %c0_0 = arith.constant 0 : index
    %c0_1 = arith.constant 0 : index
    %0 = vector.load %arg1[%c0, %c0_0, %c0_1] : memref<1x8x32xf32, #tpu.memory_space<vmem>>, vector<1x8x32xf32>
    %1 = vector.shape_cast %0 : vector<1x8x32xf32> to vector<8x32xf32>
    %c0_2 = arith.constant 0 : index
    %c0_3 = arith.constant 0 : index
    %c0_4 = arith.constant 0 : index
    %2 = vector.load %arg4[%c0_2, %c0_3, %c0_4] : memref<1x8x32xf32, #tpu.memory_space<vmem>>, vector<1x8x32xf32>
    %3 = vector.shape_cast %2 : vector<1x8x32xf32> to vector<8x32xf32>
    %c0_5 = arith.constant 0 : index
    %c0_6 = arith.constant 0 : index
    %c0_7 = arith.constant 0 : index
    %4 = vector.load %arg2[%c0_5, %c0_6, %c0_7] : memref<1x1x8xi32, #tpu.memory_space<vmem>>, vector<1x1x8xi32>
    %5 = vector.shape_cast %4 : vector<1x1x8xi32> to vector<1x8xi32>
    %c0_8 = arith.constant 0 : index
    %c0_9 = arith.constant 0 : index
    %c0_10 = arith.constant 0 : index
    %6 = vector.load %arg3[%c0_8, %c0_9, %c0_10] : memref<1x1x8xi32, #tpu.memory_space<vmem>>, vector<1x1x8xi32>
    %7 = vector.shape_cast %6 : vector<1x1x8xi32> to vector<1x8xi32>
    %c0_i32 = arith.constant 0 : i32
    %8 = vector.broadcast %c0_i32 : i32 to vector<1x8xi32>
    %9 = arith.cmpi eq, %5, %8 : vector<1x8xi32>
    %cst = arith.constant -1.000000e+09 : f32
    %cst_11 = arith.constant 0.000000e+00 : f32
    %10 = vector.broadcast %cst : f32 to vector<1x8xf32>
    %11 = vector.broadcast %cst_11 : f32 to vector<1x8xf32>
    %12 = arith.select %9, %10, %11 : vector<1x8xi1>, vector<1x8xf32>
    %13 = vector.shape_cast %12 : vector<1x8xf32> to vector<1x8xf32>
    %14 = vector.broadcast %13 : vector<1x8xf32> to vector<8x8xf32>
    %15 = tpu.iota {dimensions = array<i32: 0>} : vector<8x8xi32>
    %16 = tpu.iota {dimensions = array<i32: 1>} : vector<8x8xi32>
    %17 = arith.cmpi sgt, %16, %15 : vector<8x8xi32>
    %cst_12 = arith.constant -1.000000e+09 : f32
    %18 = vector.broadcast %cst_12 : f32 to vector<8x8xf32>
    %19 = arith.select %17, %18, %14 : vector<8x8xi1>, vector<8x8xf32>
    %c0_i32_13 = arith.constant 0 : i32
    %20 = vector.broadcast %c0_i32_13 : i32 to vector<1x8xi32>
    %21 = arith.cmpi eq, %7, %20 : vector<1x8xi32>
    %cst_14 = arith.constant -1.000000e+09 : f32
    %cst_15 = arith.constant 0.000000e+00 : f32
    %22 = vector.broadcast %cst_14 : f32 to vector<1x8xf32>
    %23 = vector.broadcast %cst_15 : f32 to vector<1x8xf32>
    %24 = arith.select %21, %22, %23 : vector<1x8xi1>, vector<1x8xf32>
    %25 = vector.shape_cast %24 : vector<1x8xf32> to vector<1x8xf32>
    %26 = vector.broadcast %25 : vector<1x8xf32> to vector<8x8xf32>
    %27 = arith.truncf %3 : vector<8x32xf32> to vector<8x32xbf16>
    %28 = vector.shape_cast %27 : vector<8x32xbf16> to vector<1x8x32xbf16>
    %29 = vector.shape_cast %28 : vector<1x8x32xbf16> to vector<1x8x32xbf16>
    %30 = vector.broadcast %29 : vector<1x8x32xbf16> to vector<4x8x32xbf16>
    %31 = arith.truncf %1 : vector<8x32xf32> to vector<8x32xbf16>
    %32 = vector.shape_cast %31 : vector<8x32xbf16> to vector<1x8x32xbf16>
    %33 = vector.shape_cast %32 : vector<1x8x32xbf16> to vector<1x8x32xbf16>
    %34 = vector.broadcast %33 : vector<1x8x32xbf16> to vector<4x8x32xbf16>
    %c0_16 = arith.constant 0 : index
    %c0_17 = arith.constant 0 : index
    %c0_18 = arith.constant 0 : index
    %c0_19 = arith.constant 0 : index
    %35 = vector.load %arg5[%c0_16, %c0_17, %c0_18, %c0_19] : memref<2x4x32x8xbf16, #tpu.memory_space<vmem>>, vector<1x4x32x8xbf16>
    %36 = vector.shape_cast %35 : vector<1x4x32x8xbf16> to vector<4x32x8xbf16>
    %c0_20 = arith.constant 0 : index
    %c0_21 = arith.constant 0 : index
    %c0_22 = arith.constant 0 : index
    %c0_23 = arith.constant 0 : index
    %37 = vector.load %arg6[%c0_20, %c0_21, %c0_22, %c0_23] : memref<2x4x32x8xbf16, #tpu.memory_space<vmem>>, vector<1x4x32x8xbf16>
    %38 = vector.shape_cast %37 : vector<1x4x32x8xbf16> to vector<4x32x8xbf16>
    %c0_24 = arith.constant 0 : index
    %c0_25 = arith.constant 0 : index
    %c0_26 = arith.constant 0 : index
    %c0_27 = arith.constant 0 : index
    %39 = vector.load %arg7[%c0_24, %c0_25, %c0_26, %c0_27] : memref<2x4x32x8xbf16, #tpu.memory_space<vmem>>, vector<1x4x32x8xbf16>
    %40 = vector.shape_cast %39 : vector<1x4x32x8xbf16> to vector<4x32x8xbf16>
    %c0_28 = arith.constant 0 : index
    %c0_29 = arith.constant 0 : index
    %c0_30 = arith.constant 0 : index
    %41 = vector.load %arg8[%c0_28, %c0_29, %c0_30] : memref<2x32x32xbf16, #tpu.memory_space<vmem>>, vector<1x32x32xbf16>
    %42 = vector.shape_cast %41 : vector<1x32x32xbf16> to vector<32x32xbf16>
    %c0_31 = arith.constant 0 : index
    %c0_32 = arith.constant 0 : index
    %c0_33 = arith.constant 0 : index
    %43 = vector.load %arg9[%c0_31, %c0_32, %c0_33] : memref<2x1x32xf32, #tpu.memory_space<vmem>>, vector<1x1x32xf32>
    %44 = vector.shape_cast %43 : vector<1x1x32xf32> to vector<1x32xf32>
    %c0_34 = arith.constant 0 : index
    %c0_35 = arith.constant 0 : index
    %c0_36 = arith.constant 0 : index
    %45 = vector.load %arg10[%c0_34, %c0_35, %c0_36] : memref<2x1x32xf32, #tpu.memory_space<vmem>>, vector<1x1x32xf32>
    %46 = vector.shape_cast %45 : vector<1x1x32xf32> to vector<1x32xf32>
    "tpu.trace_start"() <{level = 10 : i32, message = "hsd,hdk->hsk"}> : () -> ()
    %cst_37 = arith.constant dense<0.000000e+00> : vector<4x8x8xf32>
    %47 = tpu.matmul %34, %36, %cst_37 {dimension_numbers = #tpu.dot_dimension_numbers<[2], [1], [1], [2], [0, 0, 0, 1, 1, 2], [0], [0]>} : vector<4x8x32xbf16>, vector<4x32x8xbf16>, vector<4x8x8xf32> -> vector<4x8x8xf32>
    %cst_38 = arith.constant dense<0.000000e+00> : vector<4x8x8xf32>
    %48 = tpu.matmul %34, %38, %cst_38 {dimension_numbers = #tpu.dot_dimension_numbers<[2], [1], [1], [2], [0, 0, 0, 1, 1, 2], [0], [0]>} : vector<4x8x32xbf16>, vector<4x32x8xbf16>, vector<4x8x8xf32> -> vector<4x8x8xf32>
    %cst_39 = arith.constant dense<0.000000e+00> : vector<4x8x8xf32>
    %49 = tpu.matmul %34, %40, %cst_39 {dimension_numbers = #tpu.dot_dimension_numbers<[2], [1], [1], [2], [0, 0, 0, 1, 1, 2], [0], [0]>} : vector<4x8x32xbf16>, vector<4x32x8xbf16>, vector<4x8x8xf32> -> vector<4x8x8xf32>
    "tpu.trace_stop"() : () -> ()
    %50 = arith.truncf %47 : vector<4x8x8xf32> to vector<4x8x8xbf16>
    %51 = arith.truncf %48 : vector<4x8x8xf32> to vector<4x8x8xbf16>
    "tpu.trace_start"() <{level = 10 : i32, message = "hqd,hkd->hqk"}> : () -> ()
    %cst_40 = arith.constant dense<0.000000e+00> : vector<4x8x8xf32>
    %52 = tpu.matmul %50, %51, %cst_40 {dimension_numbers = #tpu.dot_dimension_numbers<[2], [2], [1], [1], [0, 0, 0, 1, 1, 1], [0], [0]>} : vector<4x8x8xbf16>, vector<4x8x8xbf16>, vector<4x8x8xf32> -> vector<4x8x8xf32>
    "tpu.trace_stop"() : () -> ()
    %cst_41 = arith.constant 0.353553385 : f32
    %53 = vector.broadcast %cst_41 : f32 to vector<4x8x8xf32>
    %54 = arith.mulf %52, %53 : vector<4x8x8xf32>
    %55 = vector.shape_cast %19 : vector<8x8xf32> to vector<1x8x8xf32>
    %56 = vector.broadcast %55 : vector<1x8x8xf32> to vector<4x8x8xf32>
    %57 = arith.addf %54, %56 : vector<4x8x8xf32>
    %cst_42 = arith.constant dense<0xFF800000> : vector<4x8xf32>
    %58 = vector.multi_reduction <maximumf>, %57, %cst_42 [2] : vector<4x8x8xf32> to vector<4x8xf32>
    %59 = vector.shape_cast %58 : vector<4x8xf32> to vector<4x8x1xf32>
    %60 = vector.broadcast %59 : vector<4x8x1xf32> to vector<4x8x8xf32>
    %61 = arith.subf %57, %60 : vector<4x8x8xf32>
    %62 = math.exp %61 : vector<4x8x8xf32>
    %cst_43 = arith.constant dense<0.000000e+00> : vector<4x8xf32>
    %63 = vector.multi_reduction <add>, %62, %cst_43 [2] : vector<4x8x8xf32> to vector<4x8xf32>
    %64 = vector.shape_cast %63 : vector<4x8xf32> to vector<4x8x1xf32>
    %65 = tpu.reciprocal %64 {approx = true} : vector<4x8x1xf32> -> vector<4x8x1xf32>
    %66 = vector.broadcast %65 : vector<4x8x1xf32> to vector<4x8x8xf32>
    %67 = arith.mulf %62, %66 : vector<4x8x8xf32>
    %68 = arith.truncf %67 : vector<4x8x8xf32> to vector<4x8x8xbf16>
    %69 = arith.truncf %49 : vector<4x8x8xf32> to vector<4x8x8xbf16>
    "tpu.trace_start"() <{level = 10 : i32, message = "hqk,hkd->hqd"}> : () -> ()
    %cst_44 = arith.constant dense<0.000000e+00> : vector<4x8x8xf32>
    %70 = tpu.matmul %68, %69, %cst_44 {dimension_numbers = #tpu.dot_dimension_numbers<[2], [1], [1], [2], [0, 0, 0, 1, 1, 2], [0], [0]>} : vector<4x8x8xbf16>, vector<4x8x8xbf16>, vector<4x8x8xf32> -> vector<4x8x8xf32>
    "tpu.trace_stop"() : () -> ()
    %71 = vector.extract_strided_slice %70 {offsets = [0, 0, 0], sizes = [1, 8, 8], strides = [1, 1, 1]} : vector<4x8x8xf32> to vector<1x8x8xf32>
    %72 = vector.shape_cast %71 : vector<1x8x8xf32> to vector<8x8xf32>
    %73 = vector.extract_strided_slice %70 {offsets = [1, 0, 0], sizes = [1, 8, 8], strides = [1, 1, 1]} : vector<4x8x8xf32> to vector<1x8x8xf32>
    %74 = vector.shape_cast %73 : vector<1x8x8xf32> to vector<8x8xf32>
    %75 = vector.extract_strided_slice %70 {offsets = [2, 0, 0], sizes = [1, 8, 8], strides = [1, 1, 1]} : vector<4x8x8xf32> to vector<1x8x8xf32>
    %76 = vector.shape_cast %75 : vector<1x8x8xf32> to vector<8x8xf32>
    %77 = vector.extract_strided_slice %70 {offsets = [3, 0, 0], sizes = [1, 8, 8], strides = [1, 1, 1]} : vector<4x8x8xf32> to vector<1x8x8xf32>
    %78 = vector.shape_cast %77 : vector<1x8x8xf32> to vector<8x8xf32>
    %79 = tpu.concatenate %72, %74, %76, %78 in 1 : vector<8x8xf32>, vector<8x8xf32>, vector<8x8xf32>, vector<8x8xf32> -> vector<8x32xf32>
    %80 = arith.truncf %79 : vector<8x32xf32> to vector<8x32xbf16>
    %cst_45 = arith.constant dense<0.000000e+00> : vector<8x32xf32>
    %81 = tpu.matmul %80, %42, %cst_45 {dimension_numbers = #tpu.dot_dimension_numbers<[1], [0], [0], [1], [0, 0, 1, 1], [], []>} : vector<8x32xbf16>, vector<32x32xbf16>, vector<8x32xf32> -> vector<8x32xf32>
    %82 = arith.addf %1, %81 : vector<8x32xf32>
    %83 = vector.extract_strided_slice %67 {offsets = [0, 0, 0], sizes = [1, 8, 8], strides = [1, 1, 1]} : vector<4x8x8xf32> to vector<1x8x8xf32>
    %84 = vector.shape_cast %83 : vector<1x8x8xf32> to vector<8x8xf32>
    %85 = vector.extract_strided_slice %67 {offsets = [1, 0, 0], sizes = [1, 8, 8], strides = [1, 1, 1]} : vector<4x8x8xf32> to vector<1x8x8xf32>
    %86 = vector.shape_cast %85 : vector<1x8x8xf32> to vector<8x8xf32>
    %87 = vector.extract_strided_slice %67 {offsets = [2, 0, 0], sizes = [1, 8, 8], strides = [1, 1, 1]} : vector<4x8x8xf32> to vector<1x8x8xf32>
    %88 = vector.shape_cast %87 : vector<1x8x8xf32> to vector<8x8xf32>
    %89 = vector.extract_strided_slice %67 {offsets = [3, 0, 0], sizes = [1, 8, 8], strides = [1, 1, 1]} : vector<4x8x8xf32> to vector<1x8x8xf32>
    %90 = vector.shape_cast %89 : vector<1x8x8xf32> to vector<8x8xf32>
    %91 = tpu.concatenate %84, %86, %88, %90 in 1 : vector<8x8xf32>, vector<8x8xf32>, vector<8x8xf32>, vector<8x8xf32> -> vector<8x32xf32>
    %cst_46 = arith.constant dense<0.000000e+00> : vector<8xf32>
    %92 = vector.multi_reduction <add>, %82, %cst_46 [1] : vector<8x32xf32> to vector<8xf32>
    %93 = vector.shape_cast %92 : vector<8xf32> to vector<8x1xf32>
    %cst_47 = arith.constant 3.200000e+01 : f32
    %94 = vector.broadcast %cst_47 : f32 to vector<8x1xf32>
    %95 = arith.divf %93, %94 : vector<8x1xf32>
    %96 = vector.broadcast %95 : vector<8x1xf32> to vector<8x32xf32>
    %97 = arith.subf %82, %96 : vector<8x32xf32>
    %98 = arith.mulf %97, %97 : vector<8x32xf32>
    %cst_48 = arith.constant dense<0.000000e+00> : vector<8xf32>
    %99 = vector.multi_reduction <add>, %98, %cst_48 [1] : vector<8x32xf32> to vector<8xf32>
    %100 = vector.shape_cast %99 : vector<8xf32> to vector<8x1xf32>
    %cst_49 = arith.constant 3.200000e+01 : f32
    %101 = vector.broadcast %cst_49 : f32 to vector<8x1xf32>
    %102 = arith.divf %100, %101 : vector<8x1xf32>
    %103 = vector.broadcast %95 : vector<8x1xf32> to vector<8x32xf32>
    %104 = arith.subf %82, %103 : vector<8x32xf32>
    %cst_50 = arith.constant 9.99999974E-6 : f32
    %105 = vector.broadcast %cst_50 : f32 to vector<8x1xf32>
    %106 = arith.addf %102, %105 : vector<8x1xf32>
    %107 = math.rsqrt %106 : vector<8x1xf32>
    %108 = vector.broadcast %107 : vector<8x1xf32> to vector<8x32xf32>
    %109 = arith.mulf %104, %108 : vector<8x32xf32>
    %110 = vector.broadcast %44 : vector<1x32xf32> to vector<8x32xf32>
    %111 = arith.mulf %109, %110 : vector<8x32xf32>
    %112 = vector.broadcast %46 : vector<1x32xf32> to vector<8x32xf32>
    %113 = arith.addf %111, %112 : vector<8x32xf32>
    %c0_51 = arith.constant 0 : index
    %c0_52 = arith.constant 0 : index
    %c0_53 = arith.constant 0 : index
    %c0_54 = arith.constant 0 : index
    %114 = vector.load %arg23[%c0_51, %c0_52, %c0_53, %c0_54] : memref<1x2x8x32xf32, #tpu.memory_space<vmem>>, vector<1x1x8x32xf32>
    %115 = vector.shape_cast %114 : vector<1x1x8x32xf32> to vector<8x32xf32>
    %116 = vector.shape_cast %91 : vector<8x32xf32> to vector<1x1x8x32xf32>
    tpu.vector_store %arg23[%c0_51, %c0_52, %c0_53, %c0_54], %116 {strides = array<i32>} : memref<1x2x8x32xf32, #tpu.memory_space<vmem>>, vector<1x1x8x32xf32>,
    %117 = arith.truncf %113 : vector<8x32xf32> to vector<8x32xbf16>
    %118 = vector.shape_cast %117 : vector<8x32xbf16> to vector<1x8x32xbf16>
    %119 = vector.shape_cast %118 : vector<1x8x32xbf16> to vector<1x8x32xbf16>
    %120 = vector.broadcast %119 : vector<1x8x32xbf16> to vector<4x8x32xbf16>
    %c0_55 = arith.constant 0 : index
    %c0_56 = arith.constant 0 : index
    %c0_57 = arith.constant 0 : index
    %c0_58 = arith.constant 0 : index
    %121 = vector.load %arg11[%c0_55, %c0_56, %c0_57, %c0_58] : memref<2x4x32x8xbf16, #tpu.memory_space<vmem>>, vector<1x4x32x8xbf16>
    %122 = vector.shape_cast %121 : vector<1x4x32x8xbf16> to vector<4x32x8xbf16>
    %c0_59 = arith.constant 0 : index
    %c0_60 = arith.constant 0 : index
    %c0_61 = arith.constant 0 : index
    %c0_62 = arith.constant 0 : index
    %123 = vector.load %arg12[%c0_59, %c0_60, %c0_61, %c0_62] : memref<2x4x32x8xbf16, #tpu.memory_space<vmem>>, vector<1x4x32x8xbf16>
    %124 = vector.shape_cast %123 : vector<1x4x32x8xbf16> to vector<4x32x8xbf16>
    %c0_63 = arith.constant 0 : index
    %c0_64 = arith.constant 0 : index
    %c0_65 = arith.constant 0 : index
    %c0_66 = arith.constant 0 : index
    %125 = vector.load %arg13[%c0_63, %c0_64, %c0_65, %c0_66] : memref<2x4x32x8xbf16, #tpu.memory_space<vmem>>, vector<1x4x32x8xbf16>
    %126 = vector.shape_cast %125 : vector<1x4x32x8xbf16> to vector<4x32x8xbf16>
    %c0_67 = arith.constant 0 : index
    %c0_68 = arith.constant 0 : index
    %c0_69 = arith.constant 0 : index
    %127 = vector.load %arg14[%c0_67, %c0_68, %c0_69] : memref<2x32x32xbf16, #tpu.memory_space<vmem>>, vector<1x32x32xbf16>
    %128 = vector.shape_cast %127 : vector<1x32x32xbf16> to vector<32x32xbf16>
    %c0_70 = arith.constant 0 : index
    %c0_71 = arith.constant 0 : index
    %c0_72 = arith.constant 0 : index
    %129 = vector.load %arg15[%c0_70, %c0_71, %c0_72] : memref<2x1x32xf32, #tpu.memory_space<vmem>>, vector<1x1x32xf32>
    %130 = vector.shape_cast %129 : vector<1x1x32xf32> to vector<1x32xf32>
    %c0_73 = arith.constant 0 : index
    %c0_74 = arith.constant 0 : index
    %c0_75 = arith.constant 0 : index
    %131 = vector.load %arg16[%c0_73, %c0_74, %c0_75] : memref<2x1x32xf32, #tpu.memory_space<vmem>>, vector<1x1x32xf32>
    %132 = vector.shape_cast %131 : vector<1x1x32xf32> to vector<1x32xf32>
    "tpu.trace_start"() <{level = 10 : i32, message = "hsd,hdk->hsk"}> : () -> ()
    %cst_76 = arith.constant dense<0.000000e+00> : vector<4x8x8xf32>
    %133 = tpu.matmul %120, %122, %cst_76 {dimension_numbers = #tpu.dot_dimension_numbers<[2], [1], [1], [2], [0, 0, 0, 1, 1, 2], [0], [0]>} : vector<4x8x32xbf16>, vector<4x32x8xbf16>, vector<4x8x8xf32> -> vector<4x8x8xf32>
    %cst_77 = arith.constant dense<0.000000e+00> : vector<4x8x8xf32>
    %134 = tpu.matmul %30, %124, %cst_77 {dimension_numbers = #tpu.dot_dimension_numbers<[2], [1], [1], [2], [0, 0, 0, 1, 1, 2], [0], [0]>} : vector<4x8x32xbf16>, vector<4x32x8xbf16>, vector<4x8x8xf32> -> vector<4x8x8xf32>
    %cst_78 = arith.constant dense<0.000000e+00> : vector<4x8x8xf32>
    %135 = tpu.matmul %30, %126, %cst_78 {dimension_numbers = #tpu.dot_dimension_numbers<[2], [1], [1], [2], [0, 0, 0, 1, 1, 2], [0], [0]>} : vector<4x8x32xbf16>, vector<4x32x8xbf16>, vector<4x8x8xf32> -> vector<4x8x8xf32>
    "tpu.trace_stop"() : () -> ()
    %136 = arith.truncf %133 : vector<4x8x8xf32> to vector<4x8x8xbf16>
    %137 = arith.truncf %134 : vector<4x8x8xf32> to vector<4x8x8xbf16>
    "tpu.trace_start"() <{level = 10 : i32, message = "hqd,hkd->hqk"}> : () -> ()
    %cst_79 = arith.constant dense<0.000000e+00> : vector<4x8x8xf32>
    %138 = tpu.matmul %136, %137, %cst_79 {dimension_numbers = #tpu.dot_dimension_numbers<[2], [2], [1], [1], [0, 0, 0, 1, 1, 1], [0], [0]>} : vector<4x8x8xbf16>, vector<4x8x8xbf16>, vector<4x8x8xf32> -> vector<4x8x8xf32>
    "tpu.trace_stop"() : () -> ()
    %cst_80 = arith.constant 0.353553385 : f32
    %139 = vector.broadcast %cst_80 : f32 to vector<4x8x8xf32>
    %140 = arith.mulf %138, %139 : vector<4x8x8xf32>
    %141 = vector.shape_cast %26 : vector<8x8xf32> to vector<1x8x8xf32>
    %142 = vector.broadcast %141 : vector<1x8x8xf32> to vector<4x8x8xf32>
    %143 = arith.addf %140, %142 : vector<4x8x8xf32>
    %cst_81 = arith.constant dense<0xFF800000> : vector<4x8xf32>
    %144 = vector.multi_reduction <maximumf>, %143, %cst_81 [2] : vector<4x8x8xf32> to vector<4x8xf32>
    %145 = vector.shape_cast %144 : vector<4x8xf32> to vector<4x8x1xf32>
    %146 = vector.broadcast %145 : vector<4x8x1xf32> to vector<4x8x8xf32>
    %147 = arith.subf %143, %146 : vector<4x8x8xf32>
    %148 = math.exp %147 : vector<4x8x8xf32>
    %cst_82 = arith.constant dense<0.000000e+00> : vector<4x8xf32>
    %149 = vector.multi_reduction <add>, %148, %cst_82 [2] : vector<4x8x8xf32> to vector<4x8xf32>
    %150 = vector.shape_cast %149 : vector<4x8xf32> to vector<4x8x1xf32>
    %151 = tpu.reciprocal %150 {approx = true} : vector<4x8x1xf32> -> vector<4x8x1xf32>
    %152 = vector.broadcast %151 : vector<4x8x1xf32> to vector<4x8x8xf32>
    %153 = arith.mulf %148, %152 : vector<4x8x8xf32>
    %154 = arith.truncf %153 : vector<4x8x8xf32> to vector<4x8x8xbf16>
    %155 = arith.truncf %135 : vector<4x8x8xf32> to vector<4x8x8xbf16>
    "tpu.trace_start"() <{level = 10 : i32, message = "hqk,hkd->hqd"}> : () -> ()
    %cst_83 = arith.constant dense<0.000000e+00> : vector<4x8x8xf32>
    %156 = tpu.matmul %154, %155, %cst_83 {dimension_numbers = #tpu.dot_dimension_numbers<[2], [1], [1], [2], [0, 0, 0, 1, 1, 2], [0], [0]>} : vector<4x8x8xbf16>, vector<4x8x8xbf16>, vector<4x8x8xf32> -> vector<4x8x8xf32>
    "tpu.trace_stop"() : () -> ()
    %157 = vector.extract_strided_slice %156 {offsets = [0, 0, 0], sizes = [1, 8, 8], strides = [1, 1, 1]} : vector<4x8x8xf32> to vector<1x8x8xf32>
    %158 = vector.shape_cast %157 : vector<1x8x8xf32> to vector<8x8xf32>
    %159 = vector.extract_strided_slice %156 {offsets = [1, 0, 0], sizes = [1, 8, 8], strides = [1, 1, 1]} : vector<4x8x8xf32> to vector<1x8x8xf32>
    %160 = vector.shape_cast %159 : vector<1x8x8xf32> to vector<8x8xf32>
    %161 = vector.extract_strided_slice %156 {offsets = [2, 0, 0], sizes = [1, 8, 8], strides = [1, 1, 1]} : vector<4x8x8xf32> to vector<1x8x8xf32>
    %162 = vector.shape_cast %161 : vector<1x8x8xf32> to vector<8x8xf32>
    %163 = vector.extract_strided_slice %156 {offsets = [3, 0, 0], sizes = [1, 8, 8], strides = [1, 1, 1]} : vector<4x8x8xf32> to vector<1x8x8xf32>
    %164 = vector.shape_cast %163 : vector<1x8x8xf32> to vector<8x8xf32>
    %165 = tpu.concatenate %158, %160, %162, %164 in 1 : vector<8x8xf32>, vector<8x8xf32>, vector<8x8xf32>, vector<8x8xf32> -> vector<8x32xf32>
    %166 = arith.truncf %165 : vector<8x32xf32> to vector<8x32xbf16>
    %cst_84 = arith.constant dense<0.000000e+00> : vector<8x32xf32>
    %167 = tpu.matmul %166, %128, %cst_84 {dimension_numbers = #tpu.dot_dimension_numbers<[1], [0], [0], [1], [0, 0, 1, 1], [], []>} : vector<8x32xbf16>, vector<32x32xbf16>, vector<8x32xf32> -> vector<8x32xf32>
    %168 = arith.addf %113, %167 : vector<8x32xf32>
    %169 = vector.extract_strided_slice %153 {offsets = [0, 0, 0], sizes = [1, 8, 8], strides = [1, 1, 1]} : vector<4x8x8xf32> to vector<1x8x8xf32>
    %170 = vector.shape_cast %169 : vector<1x8x8xf32> to vector<8x8xf32>
    %171 = vector.extract_strided_slice %153 {offsets = [1, 0, 0], sizes = [1, 8, 8], strides = [1, 1, 1]} : vector<4x8x8xf32> to vector<1x8x8xf32>
    %172 = vector.shape_cast %171 : vector<1x8x8xf32> to vector<8x8xf32>
    %173 = vector.extract_strided_slice %153 {offsets = [2, 0, 0], sizes = [1, 8, 8], strides = [1, 1, 1]} : vector<4x8x8xf32> to vector<1x8x8xf32>
    %174 = vector.shape_cast %173 : vector<1x8x8xf32> to vector<8x8xf32>
    %175 = vector.extract_strided_slice %153 {offsets = [3, 0, 0], sizes = [1, 8, 8], strides = [1, 1, 1]} : vector<4x8x8xf32> to vector<1x8x8xf32>
    %176 = vector.shape_cast %175 : vector<1x8x8xf32> to vector<8x8xf32>
    %177 = tpu.concatenate %170, %172, %174, %176 in 1 : vector<8x8xf32>, vector<8x8xf32>, vector<8x8xf32>, vector<8x8xf32> -> vector<8x32xf32>
    %cst_85 = arith.constant dense<0.000000e+00> : vector<8xf32>
    %178 = vector.multi_reduction <add>, %168, %cst_85 [1] : vector<8x32xf32> to vector<8xf32>
    %179 = vector.shape_cast %178 : vector<8xf32> to vector<8x1xf32>
    %cst_86 = arith.constant 3.200000e+01 : f32
    %180 = vector.broadcast %cst_86 : f32 to vector<8x1xf32>
    %181 = arith.divf %179, %180 : vector<8x1xf32>
    %182 = vector.broadcast %181 : vector<8x1xf32> to vector<8x32xf32>
    %183 = arith.subf %168, %182 : vector<8x32xf32>
    %184 = arith.mulf %183, %183 : vector<8x32xf32>
    %cst_87 = arith.constant dense<0.000000e+00> : vector<8xf32>
    %185 = vector.multi_reduction <add>, %184, %cst_87 [1] : vector<8x32xf32> to vector<8xf32>
    %186 = vector.shape_cast %185 : vector<8xf32> to vector<8x1xf32>
    %cst_88 = arith.constant 3.200000e+01 : f32
    %187 = vector.broadcast %cst_88 : f32 to vector<8x1xf32>
    %188 = arith.divf %186, %187 : vector<8x1xf32>
    %189 = vector.broadcast %181 : vector<8x1xf32> to vector<8x32xf32>
    %190 = arith.subf %168, %189 : vector<8x32xf32>
    %cst_89 = arith.constant 9.99999974E-6 : f32
    %191 = vector.broadcast %cst_89 : f32 to vector<8x1xf32>
    %192 = arith.addf %188, %191 : vector<8x1xf32>
    %193 = math.rsqrt %192 : vector<8x1xf32>
    %194 = vector.broadcast %193 : vector<8x1xf32> to vector<8x32xf32>
    %195 = arith.mulf %190, %194 : vector<8x32xf32>
    %196 = vector.broadcast %130 : vector<1x32xf32> to vector<8x32xf32>
    %197 = arith.mulf %195, %196 : vector<8x32xf32>
    %198 = vector.broadcast %132 : vector<1x32xf32> to vector<8x32xf32>
    %199 = arith.addf %197, %198 : vector<8x32xf32>
    %c0_90 = arith.constant 0 : index
    %c0_91 = arith.constant 0 : index
    %c0_92 = arith.constant 0 : index
    %c0_93 = arith.constant 0 : index
    %200 = vector.load %arg24[%c0_90, %c0_91, %c0_92, %c0_93] : memref<1x2x8x32xf32, #tpu.memory_space<vmem>>, vector<1x1x8x32xf32>
    %201 = vector.shape_cast %200 : vector<1x1x8x32xf32> to vector<8x32xf32>
    %202 = vector.shape_cast %177 : vector<8x32xf32> to vector<1x1x8x32xf32>
    tpu.vector_store %arg24[%c0_90, %c0_91, %c0_92, %c0_93], %202 {strides = array<i32>} : memref<1x2x8x32xf32, #tpu.memory_space<vmem>>, vector<1x1x8x32xf32>,
    %c0_94 = arith.constant 0 : index
    %c0_95 = arith.constant 0 : index
    %c0_96 = arith.constant 0 : index
    %203 = vector.load %arg17[%c0_94, %c0_95, %c0_96] : memref<2x32x64xbf16, #tpu.memory_space<vmem>>, vector<1x32x64xbf16>
    %204 = vector.shape_cast %203 : vector<1x32x64xbf16> to vector<32x64xbf16>
    %c0_97 = arith.constant 0 : index
    %c0_98 = arith.constant 0 : index
    %c0_99 = arith.constant 0 : index
    %205 = vector.load %arg18[%c0_97, %c0_98, %c0_99] : memref<2x64x32xbf16, #tpu.memory_space<vmem>>, vector<1x64x32xbf16>
    %206 = vector.shape_cast %205 : vector<1x64x32xbf16> to vector<64x32xbf16>
    %c0_100 = arith.constant 0 : index
    %c0_101 = arith.constant 0 : index
    %c0_102 = arith.constant 0 : index
    %207 = vector.load %arg19[%c0_100, %c0_101, %c0_102] : memref<2x1x32xf32, #tpu.memory_space<vmem>>, vector<1x1x32xf32>
    %208 = vector.shape_cast %207 : vector<1x1x32xf32> to vector<1x32xf32>
    %c0_103 = arith.constant 0 : index
    %c0_104 = arith.constant 0 : index
    %c0_105 = arith.constant 0 : index
    %209 = vector.load %arg20[%c0_103, %c0_104, %c0_105] : memref<2x1x32xf32, #tpu.memory_space<vmem>>, vector<1x1x32xf32>
    %210 = vector.shape_cast %209 : vector<1x1x32xf32> to vector<1x32xf32>
    %211 = arith.truncf %199 : vector<8x32xf32> to vector<8x32xbf16>
    %cst_106 = arith.constant dense<0.000000e+00> : vector<8x64xf32>
    %212 = tpu.matmul %211, %204, %cst_106 {dimension_numbers = #tpu.dot_dimension_numbers<[1], [0], [0], [1], [0, 0, 1, 1], [], []>} : vector<8x32xbf16>, vector<32x64xbf16>, vector<8x64xf32> -> vector<8x64xf32>
    %cst_107 = arith.constant 0.000000e+00 : f32
    %213 = vector.broadcast %cst_107 : f32 to vector<8x64xf32>
    %214 = arith.maximumf %212, %213 : vector<8x64xf32>
    %215 = arith.truncf %214 : vector<8x64xf32> to vector<8x64xbf16>
    %cst_108 = arith.constant dense<0.000000e+00> : vector<8x32xf32>
    %216 = tpu.matmul %215, %206, %cst_108 {dimension_numbers = #tpu.dot_dimension_numbers<[1], [0], [0], [1], [0, 0, 1, 1], [], []>} : vector<8x64xbf16>, vector<64x32xbf16>, vector<8x32xf32> -> vector<8x32xf32>
    %217 = arith.addf %216, %199 : vector<8x32xf32>
    %cst_109 = arith.constant dense<0.000000e+00> : vector<8xf32>
    %218 = vector.multi_reduction <add>, %217, %cst_109 [1] : vector<8x32xf32> to vector<8xf32>
    %219 = vector.shape_cast %218 : vector<8xf32> to vector<8x1xf32>
    %cst_110 = arith.constant 3.200000e+01 : f32
    %220 = vector.broadcast %cst_110 : f32 to vector<8x1xf32>
    %221 = arith.divf %219, %220 : vector<8x1xf32>
    %222 = vector.broadcast %221 : vector<8x1xf32> to vector<8x32xf32>
    %223 = arith.subf %217, %222 : vector<8x32xf32>
    %224 = arith.mulf %223, %223 : vector<8x32xf32>
    %cst_111 = arith.constant dense<0.000000e+00> : vector<8xf32>
    %225 = vector.multi_reduction <add>, %224, %cst_111 [1] : vector<8x32xf32> to vector<8xf32>
    %226 = vector.shape_cast %225 : vector<8xf32> to vector<8x1xf32>
    %cst_112 = arith.constant 3.200000e+01 : f32
    %227 = vector.broadcast %cst_112 : f32 to vector<8x1xf32>
    %228 = arith.divf %226, %227 : vector<8x1xf32>
    %229 = vector.broadcast %221 : vector<8x1xf32> to vector<8x32xf32>
    %230 = arith.subf %217, %229 : vector<8x32xf32>
    %cst_113 = arith.constant 9.99999974E-6 : f32
    %231 = vector.broadcast %cst_113 : f32 to vector<8x1xf32>
    %232 = arith.addf %228, %231 : vector<8x1xf32>
    %233 = math.rsqrt %232 : vector<8x1xf32>
    %234 = vector.broadcast %233 : vector<8x1xf32> to vector<8x32xf32>
    %235 = arith.mulf %230, %234 : vector<8x32xf32>
    %236 = vector.broadcast %208 : vector<1x32xf32> to vector<8x32xf32>
    %237 = arith.mulf %235, %236 : vector<8x32xf32>
    %238 = vector.broadcast %210 : vector<1x32xf32> to vector<8x32xf32>
    %239 = arith.addf %237, %238 : vector<8x32xf32>
    %240 = arith.truncf %239 : vector<8x32xf32> to vector<8x32xbf16>
    %241 = vector.shape_cast %240 : vector<8x32xbf16> to vector<1x8x32xbf16>
    %242 = vector.shape_cast %241 : vector<1x8x32xbf16> to vector<1x8x32xbf16>
    %243 = vector.broadcast %242 : vector<1x8x32xbf16> to vector<4x8x32xbf16>
    %c1 = arith.constant 1 : index
    %c0_114 = arith.constant 0 : index
    %c0_115 = arith.constant 0 : index
    %c0_116 = arith.constant 0 : index
    %244 = vector.load %arg5[%c1, %c0_114, %c0_115, %c0_116] : memref<2x4x32x8xbf16, #tpu.memory_space<vmem>>, vector<1x4x32x8xbf16>
    %245 = vector.shape_cast %244 : vector<1x4x32x8xbf16> to vector<4x32x8xbf16>
    %c1_117 = arith.constant 1 : index
    %c0_118 = arith.constant 0 : index
    %c0_119 = arith.constant 0 : index
    %c0_120 = arith.constant 0 : index
    %246 = vector.load %arg6[%c1_117, %c0_118, %c0_119, %c0_120] : memref<2x4x32x8xbf16, #tpu.memory_space<vmem>>, vector<1x4x32x8xbf16>
    %247 = vector.shape_cast %246 : vector<1x4x32x8xbf16> to vector<4x32x8xbf16>
    %c1_121 = arith.constant 1 : index
    %c0_122 = arith.constant 0 : index
    %c0_123 = arith.constant 0 : index
    %c0_124 = arith.constant 0 : index
    %248 = vector.load %arg7[%c1_121, %c0_122, %c0_123, %c0_124] : memref<2x4x32x8xbf16, #tpu.memory_space<vmem>>, vector<1x4x32x8xbf16>
    %249 = vector.shape_cast %248 : vector<1x4x32x8xbf16> to vector<4x32x8xbf16>
    %c1_125 = arith.constant 1 : index
    %c0_126 = arith.constant 0 : index
    %c0_127 = arith.constant 0 : index
    %250 = vector.load %arg8[%c1_125, %c0_126, %c0_127] : memref<2x32x32xbf16, #tpu.memory_space<vmem>>, vector<1x32x32xbf16>
    %251 = vector.shape_cast %250 : vector<1x32x32xbf16> to vector<32x32xbf16>
    %c1_128 = arith.constant 1 : index
    %c0_129 = arith.constant 0 : index
    %c0_130 = arith.constant 0 : index
    %252 = vector.load %arg9[%c1_128, %c0_129, %c0_130] : memref<2x1x32xf32, #tpu.memory_space<vmem>>, vector<1x1x32xf32>
    %253 = vector.shape_cast %252 : vector<1x1x32xf32> to vector<1x32xf32>
    %c1_131 = arith.constant 1 : index
    %c0_132 = arith.constant 0 : index
    %c0_133 = arith.constant 0 : index
    %254 = vector.load %arg10[%c1_131, %c0_132, %c0_133] : memref<2x1x32xf32, #tpu.memory_space<vmem>>, vector<1x1x32xf32>
    %255 = vector.shape_cast %254 : vector<1x1x32xf32> to vector<1x32xf32>
    "tpu.trace_start"() <{level = 10 : i32, message = "hsd,hdk->hsk"}> : () -> ()
    %cst_134 = arith.constant dense<0.000000e+00> : vector<4x8x8xf32>
    %256 = tpu.matmul %243, %245, %cst_134 {dimension_numbers = #tpu.dot_dimension_numbers<[2], [1], [1], [2], [0, 0, 0, 1, 1, 2], [0], [0]>} : vector<4x8x32xbf16>, vector<4x32x8xbf16>, vector<4x8x8xf32> -> vector<4x8x8xf32>
    %cst_135 = arith.constant dense<0.000000e+00> : vector<4x8x8xf32>
    %257 = tpu.matmul %243, %247, %cst_135 {dimension_numbers = #tpu.dot_dimension_numbers<[2], [1], [1], [2], [0, 0, 0, 1, 1, 2], [0], [0]>} : vector<4x8x32xbf16>, vector<4x32x8xbf16>, vector<4x8x8xf32> -> vector<4x8x8xf32>
    %cst_136 = arith.constant dense<0.000000e+00> : vector<4x8x8xf32>
    %258 = tpu.matmul %243, %249, %cst_136 {dimension_numbers = #tpu.dot_dimension_numbers<[2], [1], [1], [2], [0, 0, 0, 1, 1, 2], [0], [0]>} : vector<4x8x32xbf16>, vector<4x32x8xbf16>, vector<4x8x8xf32> -> vector<4x8x8xf32>
    "tpu.trace_stop"() : () -> ()
    %259 = arith.truncf %256 : vector<4x8x8xf32> to vector<4x8x8xbf16>
    %260 = arith.truncf %257 : vector<4x8x8xf32> to vector<4x8x8xbf16>
    "tpu.trace_start"() <{level = 10 : i32, message = "hqd,hkd->hqk"}> : () -> ()
    %cst_137 = arith.constant dense<0.000000e+00> : vector<4x8x8xf32>
    %261 = tpu.matmul %259, %260, %cst_137 {dimension_numbers = #tpu.dot_dimension_numbers<[2], [2], [1], [1], [0, 0, 0, 1, 1, 1], [0], [0]>} : vector<4x8x8xbf16>, vector<4x8x8xbf16>, vector<4x8x8xf32> -> vector<4x8x8xf32>
    "tpu.trace_stop"() : () -> ()
    %cst_138 = arith.constant 0.353553385 : f32
    %262 = vector.broadcast %cst_138 : f32 to vector<4x8x8xf32>
    %263 = arith.mulf %261, %262 : vector<4x8x8xf32>
    %264 = vector.shape_cast %19 : vector<8x8xf32> to vector<1x8x8xf32>
    %265 = vector.broadcast %264 : vector<1x8x8xf32> to vector<4x8x8xf32>
    %266 = arith.addf %263, %265 : vector<4x8x8xf32>
    %cst_139 = arith.constant dense<0xFF800000> : vector<4x8xf32>
    %267 = vector.multi_reduction <maximumf>, %266, %cst_139 [2] : vector<4x8x8xf32> to vector<4x8xf32>
    %268 = vector.shape_cast %267 : vector<4x8xf32> to vector<4x8x1xf32>
    %269 = vector.broadcast %268 : vector<4x8x1xf32> to vector<4x8x8xf32>
    %270 = arith.subf %266, %269 : vector<4x8x8xf32>
    %271 = math.exp %270 : vector<4x8x8xf32>
    %cst_140 = arith.constant dense<0.000000e+00> : vector<4x8xf32>
    %272 = vector.multi_reduction <add>, %271, %cst_140 [2] : vector<4x8x8xf32> to vector<4x8xf32>
    %273 = vector.shape_cast %272 : vector<4x8xf32> to vector<4x8x1xf32>
    %274 = tpu.reciprocal %273 {approx = true} : vector<4x8x1xf32> -> vector<4x8x1xf32>
    %275 = vector.broadcast %274 : vector<4x8x1xf32> to vector<4x8x8xf32>
    %276 = arith.mulf %271, %275 : vector<4x8x8xf32>
    %277 = arith.truncf %276 : vector<4x8x8xf32> to vector<4x8x8xbf16>
    %278 = arith.truncf %258 : vector<4x8x8xf32> to vector<4x8x8xbf16>
    "tpu.trace_start"() <{level = 10 : i32, message = "hqk,hkd->hqd"}> : () -> ()
    %cst_141 = arith.constant dense<0.000000e+00> : vector<4x8x8xf32>
    %279 = tpu.matmul %277, %278, %cst_141 {dimension_numbers = #tpu.dot_dimension_numbers<[2], [1], [1], [2], [0, 0, 0, 1, 1, 2], [0], [0]>} : vector<4x8x8xbf16>, vector<4x8x8xbf16>, vector<4x8x8xf32> -> vector<4x8x8xf32>
    "tpu.trace_stop"() : () -> ()
    %280 = vector.extract_strided_slice %279 {offsets = [0, 0, 0], sizes = [1, 8, 8], strides = [1, 1, 1]} : vector<4x8x8xf32> to vector<1x8x8xf32>
    %281 = vector.shape_cast %280 : vector<1x8x8xf32> to vector<8x8xf32>
    %282 = vector.extract_strided_slice %279 {offsets = [1, 0, 0], sizes = [1, 8, 8], strides = [1, 1, 1]} : vector<4x8x8xf32> to vector<1x8x8xf32>
    %283 = vector.shape_cast %282 : vector<1x8x8xf32> to vector<8x8xf32>
    %284 = vector.extract_strided_slice %279 {offsets = [2, 0, 0], sizes = [1, 8, 8], strides = [1, 1, 1]} : vector<4x8x8xf32> to vector<1x8x8xf32>
    %285 = vector.shape_cast %284 : vector<1x8x8xf32> to vector<8x8xf32>
    %286 = vector.extract_strided_slice %279 {offsets = [3, 0, 0], sizes = [1, 8, 8], strides = [1, 1, 1]} : vector<4x8x8xf32> to vector<1x8x8xf32>
    %287 = vector.shape_cast %286 : vector<1x8x8xf32> to vector<8x8xf32>
    %288 = tpu.concatenate %281, %283, %285, %287 in 1 : vector<8x8xf32>, vector<8x8xf32>, vector<8x8xf32>, vector<8x8xf32> -> vector<8x32xf32>
    %289 = arith.truncf %288 : vector<8x32xf32> to vector<8x32xbf16>
    %cst_142 = arith.constant dense<0.000000e+00> : vector<8x32xf32>
    %290 = tpu.matmul %289, %251, %cst_142 {dimension_numbers = #tpu.dot_dimension_numbers<[1], [0], [0], [1], [0, 0, 1, 1], [], []>} : vector<8x32xbf16>, vector<32x32xbf16>, vector<8x32xf32> -> vector<8x32xf32>
    %291 = arith.addf %239, %290 : vector<8x32xf32>
    %292 = vector.extract_strided_slice %276 {offsets = [0, 0, 0], sizes = [1, 8, 8], strides = [1, 1, 1]} : vector<4x8x8xf32> to vector<1x8x8xf32>
    %293 = vector.shape_cast %292 : vector<1x8x8xf32> to vector<8x8xf32>
    %294 = vector.extract_strided_slice %276 {offsets = [1, 0, 0], sizes = [1, 8, 8], strides = [1, 1, 1]} : vector<4x8x8xf32> to vector<1x8x8xf32>
    %295 = vector.shape_cast %294 : vector<1x8x8xf32> to vector<8x8xf32>
    %296 = vector.extract_strided_slice %276 {offsets = [2, 0, 0], sizes = [1, 8, 8], strides = [1, 1, 1]} : vector<4x8x8xf32> to vector<1x8x8xf32>
    %297 = vector.shape_cast %296 : vector<1x8x8xf32> to vector<8x8xf32>
    %298 = vector.extract_strided_slice %276 {offsets = [3, 0, 0], sizes = [1, 8, 8], strides = [1, 1, 1]} : vector<4x8x8xf32> to vector<1x8x8xf32>
    %299 = vector.shape_cast %298 : vector<1x8x8xf32> to vector<8x8xf32>
    %300 = tpu.concatenate %293, %295, %297, %299 in 1 : vector<8x8xf32>, vector<8x8xf32>, vector<8x8xf32>, vector<8x8xf32> -> vector<8x32xf32>
    %cst_143 = arith.constant dense<0.000000e+00> : vector<8xf32>
    %301 = vector.multi_reduction <add>, %291, %cst_143 [1] : vector<8x32xf32> to vector<8xf32>
    %302 = vector.shape_cast %301 : vector<8xf32> to vector<8x1xf32>
    %cst_144 = arith.constant 3.200000e+01 : f32
    %303 = vector.broadcast %cst_144 : f32 to vector<8x1xf32>
    %304 = arith.divf %302, %303 : vector<8x1xf32>
    %305 = vector.broadcast %304 : vector<8x1xf32> to vector<8x32xf32>
    %306 = arith.subf %291, %305 : vector<8x32xf32>
    %307 = arith.mulf %306, %306 : vector<8x32xf32>
    %cst_145 = arith.constant dense<0.000000e+00> : vector<8xf32>
    %308 = vector.multi_reduction <add>, %307, %cst_145 [1] : vector<8x32xf32> to vector<8xf32>
    %309 = vector.shape_cast %308 : vector<8xf32> to vector<8x1xf32>
    %cst_146 = arith.constant 3.200000e+01 : f32
    %310 = vector.broadcast %cst_146 : f32 to vector<8x1xf32>
    %311 = arith.divf %309, %310 : vector<8x1xf32>
    %312 = vector.broadcast %304 : vector<8x1xf32> to vector<8x32xf32>
    %313 = arith.subf %291, %312 : vector<8x32xf32>
    %cst_147 = arith.constant 9.99999974E-6 : f32
    %314 = vector.broadcast %cst_147 : f32 to vector<8x1xf32>
    %315 = arith.addf %311, %314 : vector<8x1xf32>
    %316 = math.rsqrt %315 : vector<8x1xf32>
    %317 = vector.broadcast %316 : vector<8x1xf32> to vector<8x32xf32>
    %318 = arith.mulf %313, %317 : vector<8x32xf32>
    %319 = vector.broadcast %253 : vector<1x32xf32> to vector<8x32xf32>
    %320 = arith.mulf %318, %319 : vector<8x32xf32>
    %321 = vector.broadcast %255 : vector<1x32xf32> to vector<8x32xf32>
    %322 = arith.addf %320, %321 : vector<8x32xf32>
    %c0_148 = arith.constant 0 : index
    %c1_149 = arith.constant 1 : index
    %c0_150 = arith.constant 0 : index
    %c0_151 = arith.constant 0 : index
    %323 = vector.load %arg23[%c0_148, %c1_149, %c0_150, %c0_151] : memref<1x2x8x32xf32, #tpu.memory_space<vmem>>, vector<1x1x8x32xf32>
    %324 = vector.shape_cast %323 : vector<1x1x8x32xf32> to vector<8x32xf32>
    %325 = vector.shape_cast %300 : vector<8x32xf32> to vector<1x1x8x32xf32>
    tpu.vector_store %arg23[%c0_148, %c1_149, %c0_150, %c0_151], %325 {strides = array<i32>} : memref<1x2x8x32xf32, #tpu.memory_space<vmem>>, vector<1x1x8x32xf32>,
    %326 = arith.truncf %322 : vector<8x32xf32> to vector<8x32xbf16>
    %327 = vector.shape_cast %326 : vector<8x32xbf16> to vector<1x8x32xbf16>
    %328 = vector.shape_cast %327 : vector<1x8x32xbf16> to vector<1x8x32xbf16>
    %329 = vector.broadcast %328 : vector<1x8x32xbf16> to vector<4x8x32xbf16>
    %c1_152 = arith.constant 1 : index
    %c0_153 = arith.constant 0 : index
    %c0_154 = arith.constant 0 : index
    %c0_155 = arith.constant 0 : index
    %330 = vector.load %arg11[%c1_152, %c0_153, %c0_154, %c0_155] : memref<2x4x32x8xbf16, #tpu.memory_space<vmem>>, vector<1x4x32x8xbf16>
    %331 = vector.shape_cast %330 : vector<1x4x32x8xbf16> to vector<4x32x8xbf16>
    %c1_156 = arith.constant 1 : index
    %c0_157 = arith.constant 0 : index
    %c0_158 = arith.constant 0 : index
    %c0_159 = arith.constant 0 : index
    %332 = vector.load %arg12[%c1_156, %c0_157, %c0_158, %c0_159] : memref<2x4x32x8xbf16, #tpu.memory_space<vmem>>, vector<1x4x32x8xbf16>
    %333 = vector.shape_cast %332 : vector<1x4x32x8xbf16> to vector<4x32x8xbf16>
    %c1_160 = arith.constant 1 : index
    %c0_161 = arith.constant 0 : index
    %c0_162 = arith.constant 0 : index
    %c0_163 = arith.constant 0 : index
    %334 = vector.load %arg13[%c1_160, %c0_161, %c0_162, %c0_163] : memref<2x4x32x8xbf16, #tpu.memory_space<vmem>>, vector<1x4x32x8xbf16>
    %335 = vector.shape_cast %334 : vector<1x4x32x8xbf16> to vector<4x32x8xbf16>
    %c1_164 = arith.constant 1 : index
    %c0_165 = arith.constant 0 : index
    %c0_166 = arith.constant 0 : index
    %336 = vector.load %arg14[%c1_164, %c0_165, %c0_166] : memref<2x32x32xbf16, #tpu.memory_space<vmem>>, vector<1x32x32xbf16>
    %337 = vector.shape_cast %336 : vector<1x32x32xbf16> to vector<32x32xbf16>
    %c1_167 = arith.constant 1 : index
    %c0_168 = arith.constant 0 : index
    %c0_169 = arith.constant 0 : index
    %338 = vector.load %arg15[%c1_167, %c0_168, %c0_169] : memref<2x1x32xf32, #tpu.memory_space<vmem>>, vector<1x1x32xf32>
    %339 = vector.shape_cast %338 : vector<1x1x32xf32> to vector<1x32xf32>
    %c1_170 = arith.constant 1 : index
    %c0_171 = arith.constant 0 : index
    %c0_172 = arith.constant 0 : index
    %340 = vector.load %arg16[%c1_170, %c0_171, %c0_172] : memref<2x1x32xf32, #tpu.memory_space<vmem>>, vector<1x1x32xf32>
    %341 = vector.shape_cast %340 : vector<1x1x32xf32> to vector<1x32xf32>
    "tpu.trace_start"() <{level = 10 : i32, message = "hsd,hdk->hsk"}> : () -> ()
    %cst_173 = arith.constant dense<0.000000e+00> : vector<4x8x8xf32>
    %342 = tpu.matmul %329, %331, %cst_173 {dimension_numbers = #tpu.dot_dimension_numbers<[2], [1], [1], [2], [0, 0, 0, 1, 1, 2], [0], [0]>} : vector<4x8x32xbf16>, vector<4x32x8xbf16>, vector<4x8x8xf32> -> vector<4x8x8xf32>
    %cst_174 = arith.constant dense<0.000000e+00> : vector<4x8x8xf32>
    %343 = tpu.matmul %30, %333, %cst_174 {dimension_numbers = #tpu.dot_dimension_numbers<[2], [1], [1], [2], [0, 0, 0, 1, 1, 2], [0], [0]>} : vector<4x8x32xbf16>, vector<4x32x8xbf16>, vector<4x8x8xf32> -> vector<4x8x8xf32>
    %cst_175 = arith.constant dense<0.000000e+00> : vector<4x8x8xf32>
    %344 = tpu.matmul %30, %335, %cst_175 {dimension_numbers = #tpu.dot_dimension_numbers<[2], [1], [1], [2], [0, 0, 0, 1, 1, 2], [0], [0]>} : vector<4x8x32xbf16>, vector<4x32x8xbf16>, vector<4x8x8xf32> -> vector<4x8x8xf32>
    "tpu.trace_stop"() : () -> ()
    %345 = arith.truncf %342 : vector<4x8x8xf32> to vector<4x8x8xbf16>
    %346 = arith.truncf %343 : vector<4x8x8xf32> to vector<4x8x8xbf16>
    "tpu.trace_start"() <{level = 10 : i32, message = "hqd,hkd->hqk"}> : () -> ()
    %cst_176 = arith.constant dense<0.000000e+00> : vector<4x8x8xf32>
    %347 = tpu.matmul %345, %346, %cst_176 {dimension_numbers = #tpu.dot_dimension_numbers<[2], [2], [1], [1], [0, 0, 0, 1, 1, 1], [0], [0]>} : vector<4x8x8xbf16>, vector<4x8x8xbf16>, vector<4x8x8xf32> -> vector<4x8x8xf32>
    "tpu.trace_stop"() : () -> ()
    %cst_177 = arith.constant 0.353553385 : f32
    %348 = vector.broadcast %cst_177 : f32 to vector<4x8x8xf32>
    %349 = arith.mulf %347, %348 : vector<4x8x8xf32>
    %350 = vector.shape_cast %26 : vector<8x8xf32> to vector<1x8x8xf32>
    %351 = vector.broadcast %350 : vector<1x8x8xf32> to vector<4x8x8xf32>
    %352 = arith.addf %349, %351 : vector<4x8x8xf32>
    %cst_178 = arith.constant dense<0xFF800000> : vector<4x8xf32>
    %353 = vector.multi_reduction <maximumf>, %352, %cst_178 [2] : vector<4x8x8xf32> to vector<4x8xf32>
    %354 = vector.shape_cast %353 : vector<4x8xf32> to vector<4x8x1xf32>
    %355 = vector.broadcast %354 : vector<4x8x1xf32> to vector<4x8x8xf32>
    %356 = arith.subf %352, %355 : vector<4x8x8xf32>
    %357 = math.exp %356 : vector<4x8x8xf32>
    %cst_179 = arith.constant dense<0.000000e+00> : vector<4x8xf32>
    %358 = vector.multi_reduction <add>, %357, %cst_179 [2] : vector<4x8x8xf32> to vector<4x8xf32>
    %359 = vector.shape_cast %358 : vector<4x8xf32> to vector<4x8x1xf32>
    %360 = tpu.reciprocal %359 {approx = true} : vector<4x8x1xf32> -> vector<4x8x1xf32>
    %361 = vector.broadcast %360 : vector<4x8x1xf32> to vector<4x8x8xf32>
    %362 = arith.mulf %357, %361 : vector<4x8x8xf32>
    %363 = arith.truncf %362 : vector<4x8x8xf32> to vector<4x8x8xbf16>
    %364 = arith.truncf %344 : vector<4x8x8xf32> to vector<4x8x8xbf16>
    "tpu.trace_start"() <{level = 10 : i32, message = "hqk,hkd->hqd"}> : () -> ()
    %cst_180 = arith.constant dense<0.000000e+00> : vector<4x8x8xf32>
    %365 = tpu.matmul %363, %364, %cst_180 {dimension_numbers = #tpu.dot_dimension_numbers<[2], [1], [1], [2], [0, 0, 0, 1, 1, 2], [0], [0]>} : vector<4x8x8xbf16>, vector<4x8x8xbf16>, vector<4x8x8xf32> -> vector<4x8x8xf32>
    "tpu.trace_stop"() : () -> ()
    %366 = vector.extract_strided_slice %365 {offsets = [0, 0, 0], sizes = [1, 8, 8], strides = [1, 1, 1]} : vector<4x8x8xf32> to vector<1x8x8xf32>
    %367 = vector.shape_cast %366 : vector<1x8x8xf32> to vector<8x8xf32>
    %368 = vector.extract_strided_slice %365 {offsets = [1, 0, 0], sizes = [1, 8, 8], strides = [1, 1, 1]} : vector<4x8x8xf32> to vector<1x8x8xf32>
    %369 = vector.shape_cast %368 : vector<1x8x8xf32> to vector<8x8xf32>
    %370 = vector.extract_strided_slice %365 {offsets = [2, 0, 0], sizes = [1, 8, 8], strides = [1, 1, 1]} : vector<4x8x8xf32> to vector<1x8x8xf32>
    %371 = vector.shape_cast %370 : vector<1x8x8xf32> to vector<8x8xf32>
    %372 = vector.extract_strided_slice %365 {offsets = [3, 0, 0], sizes = [1, 8, 8], strides = [1, 1, 1]} : vector<4x8x8xf32> to vector<1x8x8xf32>
    %373 = vector.shape_cast %372 : vector<1x8x8xf32> to vector<8x8xf32>
    %374 = tpu.concatenate %367, %369, %371, %373 in 1 : vector<8x8xf32>, vector<8x8xf32>, vector<8x8xf32>, vector<8x8xf32> -> vector<8x32xf32>
    %375 = arith.truncf %374 : vector<8x32xf32> to vector<8x32xbf16>
    %cst_181 = arith.constant dense<0.000000e+00> : vector<8x32xf32>
    %376 = tpu.matmul %375, %337, %cst_181 {dimension_numbers = #tpu.dot_dimension_numbers<[1], [0], [0], [1], [0, 0, 1, 1], [], []>} : vector<8x32xbf16>, vector<32x32xbf16>, vector<8x32xf32> -> vector<8x32xf32>
    %377 = arith.addf %322, %376 : vector<8x32xf32>
    %378 = vector.extract_strided_slice %362 {offsets = [0, 0, 0], sizes = [1, 8, 8], strides = [1, 1, 1]} : vector<4x8x8xf32> to vector<1x8x8xf32>
    %379 = vector.shape_cast %378 : vector<1x8x8xf32> to vector<8x8xf32>
    %380 = vector.extract_strided_slice %362 {offsets = [1, 0, 0], sizes = [1, 8, 8], strides = [1, 1, 1]} : vector<4x8x8xf32> to vector<1x8x8xf32>
    %381 = vector.shape_cast %380 : vector<1x8x8xf32> to vector<8x8xf32>
    %382 = vector.extract_strided_slice %362 {offsets = [2, 0, 0], sizes = [1, 8, 8], strides = [1, 1, 1]} : vector<4x8x8xf32> to vector<1x8x8xf32>
    %383 = vector.shape_cast %382 : vector<1x8x8xf32> to vector<8x8xf32>
    %384 = vector.extract_strided_slice %362 {offsets = [3, 0, 0], sizes = [1, 8, 8], strides = [1, 1, 1]} : vector<4x8x8xf32> to vector<1x8x8xf32>
    %385 = vector.shape_cast %384 : vector<1x8x8xf32> to vector<8x8xf32>
    %386 = tpu.concatenate %379, %381, %383, %385 in 1 : vector<8x8xf32>, vector<8x8xf32>, vector<8x8xf32>, vector<8x8xf32> -> vector<8x32xf32>
    %cst_182 = arith.constant dense<0.000000e+00> : vector<8xf32>
    %387 = vector.multi_reduction <add>, %377, %cst_182 [1] : vector<8x32xf32> to vector<8xf32>
    %388 = vector.shape_cast %387 : vector<8xf32> to vector<8x1xf32>
    %cst_183 = arith.constant 3.200000e+01 : f32
    %389 = vector.broadcast %cst_183 : f32 to vector<8x1xf32>
    %390 = arith.divf %388, %389 : vector<8x1xf32>
    %391 = vector.broadcast %390 : vector<8x1xf32> to vector<8x32xf32>
    %392 = arith.subf %377, %391 : vector<8x32xf32>
    %393 = arith.mulf %392, %392 : vector<8x32xf32>
    %cst_184 = arith.constant dense<0.000000e+00> : vector<8xf32>
    %394 = vector.multi_reduction <add>, %393, %cst_184 [1] : vector<8x32xf32> to vector<8xf32>
    %395 = vector.shape_cast %394 : vector<8xf32> to vector<8x1xf32>
    %cst_185 = arith.constant 3.200000e+01 : f32
    %396 = vector.broadcast %cst_185 : f32 to vector<8x1xf32>
    %397 = arith.divf %395, %396 : vector<8x1xf32>
    %398 = vector.broadcast %390 : vector<8x1xf32> to vector<8x32xf32>
    %399 = arith.subf %377, %398 : vector<8x32xf32>
    %cst_186 = arith.constant 9.99999974E-6 : f32
    %400 = vector.broadcast %cst_186 : f32 to vector<8x1xf32>
    %401 = arith.addf %397, %400 : vector<8x1xf32>
    %402 = math.rsqrt %401 : vector<8x1xf32>
    %403 = vector.broadcast %402 : vector<8x1xf32> to vector<8x32xf32>
    %404 = arith.mulf %399, %403 : vector<8x32xf32>
    %405 = vector.broadcast %339 : vector<1x32xf32> to vector<8x32xf32>
    %406 = arith.mulf %404, %405 : vector<8x32xf32>
    %407 = vector.broadcast %341 : vector<1x32xf32> to vector<8x32xf32>
    %408 = arith.addf %406, %407 : vector<8x32xf32>
    %c0_187 = arith.constant 0 : index
    %c1_188 = arith.constant 1 : index
    %c0_189 = arith.constant 0 : index
    %c0_190 = arith.constant 0 : index
    %409 = vector.load %arg24[%c0_187, %c1_188, %c0_189, %c0_190] : memref<1x2x8x32xf32, #tpu.memory_space<vmem>>, vector<1x1x8x32xf32>
    %410 = vector.shape_cast %409 : vector<1x1x8x32xf32> to vector<8x32xf32>
    %411 = vector.shape_cast %386 : vector<8x32xf32> to vector<1x1x8x32xf32>
    tpu.vector_store %arg24[%c0_187, %c1_188, %c0_189, %c0_190], %411 {strides = array<i32>} : memref<1x2x8x32xf32, #tpu.memory_space<vmem>>, vector<1x1x8x32xf32>,
    %c1_191 = arith.constant 1 : index
    %c0_192 = arith.constant 0 : index
    %c0_193 = arith.constant 0 : index
    %412 = vector.load %arg17[%c1_191, %c0_192, %c0_193] : memref<2x32x64xbf16, #tpu.memory_space<vmem>>, vector<1x32x64xbf16>
    %413 = vector.shape_cast %412 : vector<1x32x64xbf16> to vector<32x64xbf16>
    %c1_194 = arith.constant 1 : index
    %c0_195 = arith.constant 0 : index
    %c0_196 = arith.constant 0 : index
    %414 = vector.load %arg18[%c1_194, %c0_195, %c0_196] : memref<2x64x32xbf16, #tpu.memory_space<vmem>>, vector<1x64x32xbf16>
    %415 = vector.shape_cast %414 : vector<1x64x32xbf16> to vector<64x32xbf16>
    %c1_197 = arith.constant 1 : index
    %c0_198 = arith.constant 0 : index
    %c0_199 = arith.constant 0 : index
    %416 = vector.load %arg19[%c1_197, %c0_198, %c0_199] : memref<2x1x32xf32, #tpu.memory_space<vmem>>, vector<1x1x32xf32>
    %417 = vector.shape_cast %416 : vector<1x1x32xf32> to vector<1x32xf32>
    %c1_200 = arith.constant 1 : index
    %c0_201 = arith.constant 0 : index
    %c0_202 = arith.constant 0 : index
    %418 = vector.load %arg20[%c1_200, %c0_201, %c0_202] : memref<2x1x32xf32, #tpu.memory_space<vmem>>, vector<1x1x32xf32>
    %419 = vector.shape_cast %418 : vector<1x1x32xf32> to vector<1x32xf32>
    %420 = arith.truncf %408 : vector<8x32xf32> to vector<8x32xbf16>
    %cst_203 = arith.constant dense<0.000000e+00> : vector<8x64xf32>
    %421 = tpu.matmul %420, %413, %cst_203 {dimension_numbers = #tpu.dot_dimension_numbers<[1], [0], [0], [1], [0, 0, 1, 1], [], []>} : vector<8x32xbf16>, vector<32x64xbf16>, vector<8x64xf32> -> vector<8x64xf32>
    %cst_204 = arith.constant 0.000000e+00 : f32
    %422 = vector.broadcast %cst_204 : f32 to vector<8x64xf32>
    %423 = arith.maximumf %421, %422 : vector<8x64xf32>
    %424 = arith.truncf %423 : vector<8x64xf32> to vector<8x64xbf16>
    %cst_205 = arith.constant dense<0.000000e+00> : vector<8x32xf32>
    %425 = tpu.matmul %424, %415, %cst_205 {dimension_numbers = #tpu.dot_dimension_numbers<[1], [0], [0], [1], [0, 0, 1, 1], [], []>} : vector<8x64xbf16>, vector<64x32xbf16>, vector<8x32xf32> -> vector<8x32xf32>
    %426 = arith.addf %425, %408 : vector<8x32xf32>
    %cst_206 = arith.constant dense<0.000000e+00> : vector<8xf32>
    %427 = vector.multi_reduction <add>, %426, %cst_206 [1] : vector<8x32xf32> to vector<8xf32>
    %428 = vector.shape_cast %427 : vector<8xf32> to vector<8x1xf32>
    %cst_207 = arith.constant 3.200000e+01 : f32
    %429 = vector.broadcast %cst_207 : f32 to vector<8x1xf32>
    %430 = arith.divf %428, %429 : vector<8x1xf32>
    %431 = vector.broadcast %430 : vector<8x1xf32> to vector<8x32xf32>
    %432 = arith.subf %426, %431 : vector<8x32xf32>
    %433 = arith.mulf %432, %432 : vector<8x32xf32>
    %cst_208 = arith.constant dense<0.000000e+00> : vector<8xf32>
    %434 = vector.multi_reduction <add>, %433, %cst_208 [1] : vector<8x32xf32> to vector<8xf32>
    %435 = vector.shape_cast %434 : vector<8xf32> to vector<8x1xf32>
    %cst_209 = arith.constant 3.200000e+01 : f32
    %436 = vector.broadcast %cst_209 : f32 to vector<8x1xf32>
    %437 = arith.divf %435, %436 : vector<8x1xf32>
    %438 = vector.broadcast %430 : vector<8x1xf32> to vector<8x32xf32>
    %439 = arith.subf %426, %438 : vector<8x32xf32>
    %cst_210 = arith.constant 9.99999974E-6 : f32
    %440 = vector.broadcast %cst_210 : f32 to vector<8x1xf32>
    %441 = arith.addf %437, %440 : vector<8x1xf32>
    %442 = math.rsqrt %441 : vector<8x1xf32>
    %443 = vector.broadcast %442 : vector<8x1xf32> to vector<8x32xf32>
    %444 = arith.mulf %439, %443 : vector<8x32xf32>
    %445 = vector.broadcast %417 : vector<1x32xf32> to vector<8x32xf32>
    %446 = arith.mulf %444, %445 : vector<8x32xf32>
    %447 = vector.broadcast %419 : vector<1x32xf32> to vector<8x32xf32>
    %448 = arith.addf %446, %447 : vector<8x32xf32>
    %449 = arith.truncf %448 : vector<8x32xf32> to vector<8x32xbf16>
    %c0_211 = arith.constant 0 : index
    %c0_212 = arith.constant 0 : index
    %450 = vector.load %arg21[%c0_211, %c0_212] : memref<32x128xbf16, #tpu.memory_space<vmem>>, vector<32x128xbf16>
    %cst_213 = arith.constant dense<0.000000e+00> : vector<8x128xf32>
    %451 = tpu.matmul %449, %450, %cst_213 {dimension_numbers = #tpu.dot_dimension_numbers<[1], [0], [0], [1], [0, 0, 1, 1], [], []>} : vector<8x32xbf16>, vector<32x128xbf16>, vector<8x128xf32> -> vector<8x128xf32>
    %c0_214 = arith.constant 0 : index
    %c0_215 = arith.constant 0 : index
    %c0_216 = arith.constant 0 : index
    %452 = vector.load %arg22[%c0_214, %c0_215, %c0_216] : memref<1x8x128xf32, #tpu.memory_space<vmem>>, vector<1x8x128xf32>
    %453 = vector.shape_cast %452 : vector<1x8x128xf32> to vector<8x128xf32>
    %454 = vector.shape_cast %451 : vector<8x128xf32> to vector<1x8x128xf32>
    tpu.vector_store %arg22[%c0_214, %c0_215, %c0_216], %454 {strides = array<i32>} : memref<1x8x128xf32, #tpu.memory_space<vmem>>, vector<1x8x128xf32>,
    return
  }
  func.func @transform_0(%arg0: i32) -> (i32, i32, i32) {
    %c0_i32 = arith.constant 0 : i32
    %c0_i32_0 = arith.constant 0 : i32
    %c0_i32_1 = arith.constant 0 : i32
    return %arg0, %c0_i32, %c0_i32_0 : i32, i32, i32
  }
  func.func @transform_1(%arg0: i32) -> (i32, i32, i32) {
    %c0_i32 = arith.constant 0 : i32
    %c0_i32_0 = arith.constant 0 : i32
    %c0_i32_1 = arith.constant 0 : i32
    return %arg0, %c0_i32, %c0_i32_0 : i32, i32, i32
  }
  func.func @transform_2(%arg0: i32) -> (i32, i32, i32) {
    %c0_i32 = arith.constant 0 : i32
    %c0_i32_0 = arith.constant 0 : i32
    %c0_i32_1 = arith.constant 0 : i32
    return %arg0, %c0_i32, %c0_i32_0 : i32, i32, i32
  }
  func.func @transform_3(%arg0: i32) -> (i32, i32, i32) {
    %c0_i32 = arith.constant 0 : i32
    %c0_i32_0 = arith.constant 0 : i32
    %c0_i32_1 = arith.constant 0 : i32
    return %arg0, %c0_i32, %c0_i32_0 : i32, i32, i32
  }
  func.func @transform_4(%arg0: i32) -> (i32, i32, i32, i32) {
    %c0_i32 = arith.constant 0 : i32
    %c0_i32_0 = arith.constant 0 : i32
    %c0_i32_1 = arith.constant 0 : i32
    %c0_i32_2 = arith.constant 0 : i32
    %c0_i32_3 = arith.constant 0 : i32
    return %c0_i32, %c0_i32_0, %c0_i32_1, %c0_i32_2 : i32, i32, i32, i32
  }
  func.func @transform_5(%arg0: i32) -> (i32, i32, i32, i32) {
    %c0_i32 = arith.constant 0 : i32
    %c0_i32_0 = arith.constant 0 : i32
    %c0_i32_1 = arith.constant 0 : i32
    %c0_i32_2 = arith.constant 0 : i32
    %c0_i32_3 = arith.constant 0 : i32
    return %c0_i32, %c0_i32_0, %c0_i32_1, %c0_i32_2 : i32, i32, i32, i32
  }
  func.func @transform_6(%arg0: i32) -> (i32, i32, i32, i32) {
    %c0_i32 = arith.constant 0 : i32
    %c0_i32_0 = arith.constant 0 : i32
    %c0_i32_1 = arith.constant 0 : i32
    %c0_i32_2 = arith.constant 0 : i32
    %c0_i32_3 = arith.constant 0 : i32
    return %c0_i32, %c0_i32_0, %c0_i32_1, %c0_i32_2 : i32, i32, i32, i32
  }
  func.func @transform_7(%arg0: i32) -> (i32, i32, i32) {
    %c0_i32 = arith.constant 0 : i32
    %c0_i32_0 = arith.constant 0 : i32
    %c0_i32_1 = arith.constant 0 : i32
    %c0_i32_2 = arith.constant 0 : i32
    return %c0_i32, %c0_i32_0, %c0_i32_1 : i32, i32, i32
  }
  func.func @transform_8(%arg0: i32) -> (i32, i32, i32) {
    %c0_i32 = arith.constant 0 : i32
    %c0_i32_0 = arith.constant 0 : i32
    %c0_i32_1 = arith.constant 0 : i32
    %c0_i32_2 = arith.constant 0 : i32
    return %c0_i32, %c0_i32_0, %c0_i32_1 : i32, i32, i32
  }
  func.func @transform_9(%arg0: i32) -> (i32, i32, i32) {
    %c0_i32 = arith.constant 0 : i32
    %c0_i32_0 = arith.constant 0 : i32
    %c0_i32_1 = arith.constant 0 : i32
    %c0_i32_2 = arith.constant 0 : i32
    return %c0_i32, %c0_i32_0, %c0_i32_1 : i32, i32, i32
  }
  func.func @transform_10(%arg0: i32) -> (i32, i32, i32, i32) {
    %c0_i32 = arith.constant 0 : i32
    %c0_i32_0 = arith.constant 0 : i32
    %c0_i32_1 = arith.constant 0 : i32
    %c0_i32_2 = arith.constant 0 : i32
    %c0_i32_3 = arith.constant 0 : i32
    return %c0_i32, %c0_i32_0, %c0_i32_1, %c0_i32_2 : i32, i32, i32, i32
  }
  func.func @transform_11(%arg0: i32) -> (i32, i32, i32, i32) {
    %c0_i32 = arith.constant 0 : i32
    %c0_i32_0 = arith.constant 0 : i32
    %c0_i32_1 = arith.constant 0 : i32
    %c0_i32_2 = arith.constant 0 : i32
    %c0_i32_3 = arith.constant 0 : i32
    return %c0_i32, %c0_i32_0, %c0_i32_1, %c0_i32_2 : i32, i32, i32, i32
  }
  func.func @transform_12(%arg0: i32) -> (i32, i32, i32, i32) {
    %c0_i32 = arith.constant 0 : i32
    %c0_i32_0 = arith.constant 0 : i32
    %c0_i32_1 = arith.constant 0 : i32
    %c0_i32_2 = arith.constant 0 : i32
    %c0_i32_3 = arith.constant 0 : i32
    return %c0_i32, %c0_i32_0, %c0_i32_1, %c0_i32_2 : i32, i32, i32, i32
  }
  func.func @transform_13(%arg0: i32) -> (i32, i32, i32) {
    %c0_i32 = arith.constant 0 : i32
    %c0_i32_0 = arith.constant 0 : i32
    %c0_i32_1 = arith.constant 0 : i32
    %c0_i32_2 = arith.constant 0 : i32
    return %c0_i32, %c0_i32_0, %c0_i32_1 : i32, i32, i32
  }
  func.func @transform_14(%arg0: i32) -> (i32, i32, i32) {
    %c0_i32 = arith.constant 0 : i32
    %c0_i32_0 = arith.constant 0 : i32
    %c0_i32_1 = arith.constant 0 : i32
    %c0_i32_2 = arith.constant 0 : i32
    return %c0_i32, %c0_i32_0, %c0_i32_1 : i32, i32, i32
  }
  func.func @transform_15(%arg0: i32) -> (i32, i32, i32) {
    %c0_i32 = arith.constant 0 : i32
    %c0_i32_0 = arith.constant 0 : i32
    %c0_i32_1 = arith.constant 0 : i32
    %c0_i32_2 = arith.constant 0 : i32
    return %c0_i32, %c0_i32_0, %c0_i32_1 : i32, i32, i32
  }
  func.func @transform_16(%arg0: i32) -> (i32, i32, i32) {
    %c0_i32 = arith.constant 0 : i32
    %c0_i32_0 = arith.constant 0 : i32
    %c0_i32_1 = arith.constant 0 : i32
    %c0_i32_2 = arith.constant 0 : i32
    return %c0_i32, %c0_i32_0, %c0_i32_1 : i32, i32, i32
  }
  func.func @transform_17(%arg0: i32) -> (i32, i32, i32) {
    %c0_i32 = arith.constant 0 : i32
    %c0_i32_0 = arith.constant 0 : i32
    %c0_i32_1 = arith.constant 0 : i32
    %c0_i32_2 = arith.constant 0 : i32
    return %c0_i32, %c0_i32_0, %c0_i32_1 : i32, i32, i32
  }
  func.func @transform_18(%arg0: i32) -> (i32, i32, i32) {
    %c0_i32 = arith.constant 0 : i32
    %c0_i32_0 = arith.constant 0 : i32
    %c0_i32_1 = arith.constant 0 : i32
    %c0_i32_2 = arith.constant 0 : i32
    return %c0_i32, %c0_i32_0, %c0_i32_1 : i32, i32, i32
  }
  func.func @transform_19(%arg0: i32) -> (i32, i32, i32) {
    %c0_i32 = arith.constant 0 : i32
    %c0_i32_0 = arith.constant 0 : i32
    %c0_i32_1 = arith.constant 0 : i32
    %c0_i32_2 = arith.constant 0 : i32
    return %c0_i32, %c0_i32_0, %c0_i32_1 : i32, i32, i32
  }
  func.func @transform_20(%arg0: i32) -> (i32, i32) {
    %c0_i32 = arith.constant 0 : i32
    %c0_i32_0 = arith.constant 0 : i32
    %c0_i32_1 = arith.constant 0 : i32
    return %c0_i32, %c0_i32_0 : i32, i32
  }
  func.func @transform_21(%arg0: i32) -> (i32, i32, i32) {
    %c0_i32 = arith.constant 0 : i32
    %c0_i32_0 = arith.constant 0 : i32
    %c0_i32_1 = arith.constant 0 : i32
    return %arg0, %c0_i32, %c0_i32_0 : i32, i32, i32
  }
  func.func @transform_22(%arg0: i32) -> (i32, i32, i32, i32) {
    %c0_i32 = arith.constant 0 : i32
    %c0_i32_0 = arith.constant 0 : i32
    %c0_i32_1 = arith.constant 0 : i32
    %c0_i32_2 = arith.constant 0 : i32
    return %arg0, %c0_i32, %c0_i32_0, %c0_i32_1 : i32, i32, i32, i32
  }
  func.func @transform_23(%arg0: i32) -> (i32, i32, i32, i32) {
    %c0_i32 = arith.constant 0 : i32
    %c0_i32_0 = arith.constant 0 : i32
    %c0_i32_1 = arith.constant 0 : i32
    %c0_i32_2 = arith.constant 0 : i32
    return %arg0, %c0_i32, %c0_i32_0, %c0_i32_1 : i32, i32, i32, i32
  }
}

</mosaic_0001>

<bundles_post_ra>
// kernel: transformer_forward.2
= control target key start
LH: loop header
LB: loop body
LE: loop exit
PB: predicated region body
PF: predicated region fallthrough
CT: control target
= control target key end

     0   :  { %s4255_s25 = smov 0   ;;  %s4883_s0 = inlined_call_operand.vmem [shape: f32[2,8,32], index: 0, kind: input, shape index: {}]   ;;  %s4884_s1 = inlined_call_operand.vmem [shape: s32[2,1,8], index: 1, kind: input, shape index: {}]   ;;  %s4885_s2 = inlined_call_operand.vmem [shape: bf16[2,4,32,8], index: 2, kind: input, shape index: {}]   ;;  %s4886_s3 = inlined_call_operand.vmem [shape: bf16[2,4,32,8], index: 3, kind: input, shape index: {}]   ;;  %s4887_s4 = inlined_call_operand.vmem [shape: bf16[2,4,32,8], index: 4, kind: input, shape index: {}]   ;;  %s4888_s5 = inlined_call_operand.vmem [shape: bf16[2,32,32], index: 5, kind: input, shape index: {}]   ;;  %s4889_s6 = inlined_call_operand.vmem [shape: f32[2,1,32], index: 6, kind: input, shape index: {}]   ;;  %s4890_s7 = inlined_call_operand.vmem [shape: f32[2,1,32], index: 7, kind: input, shape index: {}]   ;;  %s4891_s8 = inlined_call_operand.vmem [shape: bf16[2,32,64], index: 8, kind: input, shape index: {}]   ;;  %s4892_s9 = inlined_call_operand.vmem [shape: bf16[2,64,32], index: 9, kind: input, shape index: {}]   ;;  %s4893_s10 = inlined_call_operand.vmem [shape: f32[2,1,32], index: 10, kind: input, shape index: {}]   ;;  %s4894_s11 = inlined_call_operand.vmem [shape: f32[2,1,32], index: 11, kind: input, shape index: {}]   ;;  %s4895_s12 = inlined_call_operand.vmem [shape: f32[2,8,32], index: 12, kind: output, shape index: {0}]   ;;  %s4896_s13 = inlined_call_operand.vmem [shape: f32[2,2,8,32], index: 13, kind: output, shape index: {1}]  }
   0x1 LB: > { %s3386_s26 = sadd.s32 4294967295, %s4178_s25   ;;  %p3390_p0 = scmp.ge.s32.totalorder %s4178_s25, 1  ;;  %s4178_s25 = sphi %s4255_s25, %s24_s25  }
   0x2   : > { %p397_p1 = scmp.lt.s32.totalorder %s4178_s25, 3 }
   0x4   : > { %p398_p2 = pnand %p3390_p0, %p397_p1 }
   0x5   : > { %v4068_v0 = vld [vmem:[%s4885_s2] sm:$0xff] (!%p398_p2)   ;;  %v4180_v1 = vmov (!%p398_p2), 0.0   ;;  %v4070_v3 = vld [vmem:[%s4885_s2 + $0x8] sm:$0xff] (!%p398_p2)   ;;  %vm4181_vm0 = vmmov (!%p398_p2), 0   ;;  %p447_p3 = scmp.lt.s32.totalorder (!%p398_p2), %s3386_s26, 1  ;;  %v4072_v5 = vld [vmem:[%s4885_s2 + $0x10] sm:$0xff] (!%p398_p2)  }
   0x6   : > { %401 = sbr.rel (%p398_p2) target bundleno = 4798 (0x12be), region = 68  ;;  %3711 = vmatprep.subr.bf16.mxu1 (!%p398_p2), %v4180_v1  ;;  %3727 = vmatprep.subr.bf16.mxu0 (!%p398_p2), %v4180_v1  ;;  %v4069_v2 = vld [vmem:[%s4885_s2 + $0x20] sm:$0xff] (!%p398_p2)   ;;  %v4071_v4 = vld [vmem:[%s4885_s2 + $0x28] sm:$0xff] (!%p398_p2)   ;;  %vm535_vm1 = vcmask (!%p398_p2), 261120   ;;  %v4074_v9 = vld [vmem:[%s4885_s2 + $0x18] sm:$0xff] (!%p398_p2)   ;;  %vm1159_vm2 = vcmask (!%p398_p2), 64512  }
   0x7   : > { %3712 = vmatpush3.bf16.msra.mxu1 (!%p398_p2), %v4068_v0  ;;  %3715 = vmatprep.mubr.msk.bf16.mxu1 (!%p398_p2), %vm4181_vm0, %v4180_v1  ;;  %v4073_v6 = vld [vmem:[%s4886_s3] sm:$0xff] (!%p398_p2)   ;;  %v4075_v10 = vld [vmem:[%s4886_s3 + $0x8] sm:$0xff] (!%p398_p2)   ;;  %v4076_v11 = vld [vmem:[%s4885_s2 + $0x30] sm:$0xff] (!%p398_p2)   ;;  %vm1413_vm3 = vcmask (!%p398_p2), 1043456   ;;  %s4182_s27 = smov (!%p398_p2), 16   ;;  %s4183_s30 = smov (!%p398_p2), 8  }
   0x8   : > { %3728 = vmatpush3.bf16.msra.mxu0 (!%p398_p2), %v4069_v2  ;;  %3713 = vmatprep.subr.bf16.mxu1 (!%p398_p2), %v4180_v1  ;;  %v4077_v12 = vld [vmem:[%s4886_s3 + $0x20] sm:$0xff] (!%p398_p2)   ;;  %v4078_v13 = vld [vmem:[%s4885_s2 + $0x38] sm:$0xff] (!%p398_p2)   ;;  %v4079_v14 = vld [vmem:[%s4886_s3 + $0x28] sm:$0xff] (!%p398_p2)   ;;  %s4184_s14 = smov (!%p398_p2), 24   ;;  %vm1608_vm5 = vcmask (!%p398_p2), 130048   ;;  %vm1610_vm6 = vcmask (!%p398_p2), 195584  }
   0x9   : > { %3729 = vmatprep.subr.bf16.mxu0 (!%p398_p2), %v4180_v1  ;;  %3731 = vmatprep.mubr.msk.bf16.mxu0 (!%p398_p2), %vm4181_vm0, %v4180_v1  ;;  %v4080_v15 = vld [vmem:[%s4886_s3 + $0x10] sm:$0xff] (!%p398_p2)   ;;  %v4084_v16 = vld [vmem:[%s4887_s4] sm:$0xff] (!%p398_p2)   ;;  %v4081_v17 = vld [vmem:[%s4886_s3 + $0x18] sm:$0xff] (!%p398_p2)   ;;  %vm1809_vm7 = vcmask (!%p398_p2), 523264  }
   0xa   : > { %v4085_v18 = vld [vmem:[%s4887_s4 + $0x8] sm:$0xff] (!%p398_p2)   ;;  %v4082_v19 = vld [vmem:[%s4886_s3 + $0x30] sm:$0xff] (!%p398_p2)   ;;  %v4086_v20 = vld [vmem:[%s4887_s4 + $0x20] sm:$0xff] (!%p398_p2)  }
   0xb   : > { %3714 = vmatpush3.bf16.msra.mxu1 (!%p398_p2), %v4070_v3  ;;  %v4083_v21 = vld [vmem:[%s4886_s3 + $0x38] sm:$0xff] (!%p398_p2)   ;;  %v4087_v22 = vld [vmem:[%s4887_s4 + $0x28] sm:$0xff] (!%p398_p2)   ;;  %v4088_v23 = vld [vmem:[%s4887_s4 + $0x10] sm:$0xff] (!%p398_p2)  }
   0xc   : > { %3730 = vmatpush3.bf16.msra.mxu0 (!%p398_p2), %v4071_v4  ;;  %3719 = vmatprep.subr.bf16.mxu1 (!%p398_p2), %v4180_v1  ;;  %v4089_v24 = vld [vmem:[%s4887_s4 + $0x18] sm:$0xff] (!%p398_p2)   ;;  %v4090_v25 = vld [vmem:[%s4887_s4 + $0x30] sm:$0xff] (!%p398_p2)  }
   0xd   : > { %s4898_s26 = smov (!%p447_p3, %s3386_s26), 1  ;;  %3743 = vmatprep.subr.bf16.mxu0 %v4180_v1  ;;  %v4091_v26 = vld [vmem:[%s4887_s4 + $0x38] sm:$0xff]  }
   0xe   : > { %s3391_s18 = sshll.u32 %s4898_s26, 3  ;;  %s453_s22 = scalar_lea.vmem %s4884_s1, %s4898_s26 }
   0xf   : > { %s450_s23 = scalar_lea.vmem %s4883_s0, %s3391_s18 }
  0x10   : > { %v4298_v7 = vld [vmem:[%s450_s23] sm:$0xff] }
  0x11   : > { %v4303_v8 = vpack.c.bf16 %v4298_v7, %v4298_v7 }
  0x13   : > { %3716 = vmatmul.mubr.msk.bf16.vlgmr.msra.gmra.mrb[0].mxu1 %vm535_vm1, %v4303_v8  ;;  %3732 = vmatmul.mubr.msk.bf16.vlgmr.msra.gmra.mrb[0].mxu0 %vm535_vm1, %v4303_v8 }
  0x14   : > { %3720 = vmatpush3.bf16.msra.mxu1 %v4072_v5  ;;  %3744 = vmatpush3.bf16.msra.mxu0 %v4073_v6 }
  0x15   : > { %3721 = vmatprep.subr.bf16.mxu1 %v4180_v1  ;;  %3745 = vmatprep.subr.bf16.mxu0 %v4180_v1 }
  0x16   : > { %3723 = vmatprep.mubr.msk.bf16.mxu1 %vm4181_vm0, %v4180_v1  ;;  %3747 = vmatprep.mubr.msk.bf16.mxu0 %vm4181_vm0, %v4180_v1 }
  0x18   : > { %3722 = vmatpush3.bf16.msra.mxu1 %v4074_v9  ;;  %3746 = vmatpush3.bf16.msra.mxu0 %v4075_v10 }
  0x19   : > { %3735 = vmatprep.subr.bf16.mxu1 %v4180_v1  ;;  %3759 = vmatprep.subr.bf16.mxu0 %v4180_v1 }
  0x1b   : > { %3724 = vmatmul.mubr.msk.bf16.vlgmr.msra.gmra.mrb[4].mxu1 %vm535_vm1, %v4303_v8  ;;  %3748 = vmatmul.mubr.msk.bf16.vlgmr.msra.gmra.mrb[4].mxu0 %vm535_vm1, %v4303_v8 }
  0x1c   : > { %3736 = vmatpush3.bf16.msra.mxu1 %v4076_v11  ;;  %3760 = vmatpush3.bf16.msra.mxu0 %v4077_v12 }
  0x1d   : > { %3737 = vmatprep.subr.bf16.mxu1 %v4180_v1  ;;  %3761 = vmatprep.subr.bf16.mxu0 %v4180_v1 }
  0x1e   : > { %3739 = vmatprep.mubr.msk.bf16.mxu1 %vm4181_vm0, %v4180_v1  ;;  %3763 = vmatprep.mubr.msk.bf16.mxu0 %vm4181_vm0, %v4180_v1 }
  0x20   : > { %3738 = vmatpush3.bf16.msra.mxu1 %v4078_v13  ;;  %3762 = vmatpush3.bf16.msra.mxu0 %v4079_v14 }
  0x21   : > { %3751 = vmatprep.subr.bf16.mxu1 %v4180_v1  ;;  %3775 = vmatprep.subr.bf16.mxu0 %v4180_v1 }
  0x23   : > { %3740 = vmatmul.mubr.msk.bf16.vlgmr.msra.gmra.mrb[8].mxu1 %vm535_vm1, %v4303_v8  ;;  %3764 = vmatmul.mubr.msk.bf16.vlgmr.msra.gmra.mrb[8].mxu0 %vm535_vm1, %v4303_v8 }
  0x24   : > { %3752 = vmatpush3.bf16.msra.mxu1 %v4080_v15  ;;  %3755 = vmatprep.mubr.msk.bf16.mxu1 %vm4181_vm0, %v4180_v1 }
  0x25   : > { %3753 = vmatprep.subr.bf16.mxu1 %v4180_v1  ;;  %3776 = vmatpush3.bf16.msra.mxu0 %v4084_v16 }
  0x26   : > { %3777 = vmatprep.subr.bf16.mxu0 %v4180_v1  ;;  %3779 = vmatprep.mubr.msk.bf16.mxu0 %vm4181_vm0, %v4180_v1 }
  0x28   : > { %3754 = vmatpush3.bf16.msra.mxu1 %v4081_v17 }
  0x29   : > { %3767 = vmatprep.subr.bf16.mxu1 %v4180_v1  ;;  %3778 = vmatpush3.bf16.msra.mxu0 %v4085_v18 }
  0x2a   : > { %3791 = vmatprep.subr.bf16.mxu0 %v4180_v1 }
  0x2b   : > { %3756 = vmatmul.mubr.msk.bf16.vlgmr.msra.gmra.mrb[12].mxu1 %vm535_vm1, %v4303_v8 }
  0x2c   : > { %3768 = vmatpush3.bf16.msra.mxu1 %v4082_v19  ;;  %3771 = vmatprep.mubr.msk.bf16.mxu1 %vm4181_vm0, %v4180_v1 }
  0x2d   : > { %3769 = vmatprep.subr.bf16.mxu1 %v4180_v1  ;;  %3780 = vmatmul.mubr.msk.bf16.vlgmr.msra.gmra.mrb[12].mxu0 %vm535_vm1, %v4303_v8 }
  0x2e   : > { %3792 = vmatpush3.bf16.msra.mxu0 %v4086_v20  ;;  %3795 = vmatprep.mubr.msk.bf16.mxu0 %vm4181_vm0, %v4180_v1 }
  0x2f   : > { %3793 = vmatprep.subr.bf16.mxu0 %v4180_v1 }
  0x30   : > { %3770 = vmatpush3.bf16.msra.mxu1 %v4083_v21 }
  0x31   : > { %3783 = vmatprep.subr.bf16.mxu1 %v4180_v1 }
  0x32   : > { %3794 = vmatpush3.bf16.msra.mxu0 %v4087_v22 }
  0x33   : > { %3772 = vmatmul.mubr.msk.bf16.vlgmr.msra.gmra.mrb[16].mxu1 %vm535_vm1, %v4303_v8  ;;  %3807 = vmatprep.subr.bf16.mxu0 %v4180_v1 }
  0x34   : > { %3787 = vmatprep.mubr.msk.bf16.mxu1 %vm4181_vm0, %v4180_v1  ;;  %3784 = vmatpush3.bf16.msra.mxu1 %v4088_v23 }
  0x35   : > { %3785 = vmatprep.subr.bf16.mxu1 %v4180_v1  ;;  %3796 = vmatmul.mubr.msk.bf16.vlgmr.msra.gmra.mrb[16].mxu0 %vm535_vm1, %v4303_v8 }
  0x36   : > { %3809 = vmatprep.mubr.msk.bf16.mxu0 %vm4181_vm0, %v4180_v1 }
  0x38   : > { %3786 = vmatpush3.bf16.msra.mxu1 %v4089_v24 }
  0x39   : > { %3799 = vmatprep.subr.bf16.mxu1 %v4180_v1 }
  0x3b   : > { %3788 = vmatmul.mubr.msk.bf16.vlgmr.msra.gmra.mrb[20].mxu1 %vm535_vm1, %v4303_v8 }
  0x3c   : > { %3803 = vmatprep.mubr.msk.bf16.mxu1 %vm4181_vm0, %v4180_v1  ;;  %3800 = vmatpush3.bf16.msra.mxu1 %v4090_v25 }
  0x3d   : > { %3801 = vmatprep.subr.bf16.mxu1 %v4180_v1 }
  0x40   : > { %3802 = vmatpush3.bf16.msra.mxu1 %v4091_v26 }
  0x41   : > { %3813 = vmatprep.subr.bf16.mxu1 %v4180_v1 }
  0x43   : > { %3804 = vmatmul.mubr.msk.bf16.vlgmr.msra.gmra.mrb[24].mxu1 %vm535_vm1, %v4303_v8 }
  0x44   : > { %3815 = vmatprep.mubr.msk.bf16.mxu1 %vm4181_vm0, %v4180_v1 }
  0xe6   : > { %v573_v27 = vpop.f32.mrb[0].mxu1  ;;  %v677_v28 = vpop.f32.mrb[0].mxu0 }
  0xe7   : > { %v3717_v29 = vpop.f32.mrb[1].mxu1  ;;  %v3733_v30 = vpop.f32.mrb[1].mxu0  ;;  %v1151_v47 = vpack.c.bf16 %v573_v27, %v573_v27  ;;  %v1153_v57 = vpack.c.bf16 %v677_v28, %v677_v28 }
  0xe8   : > { %v576_v31 = vpop.f32.mrb[2].mxu1  ;;  %v680_v32 = vpop.f32.mrb[2].mxu0  ;;  %v1349_v29 = vlaneseq  ;;  %v465_v30 = vld [vmem:[%s453_s22] sm:$0x1]  ;;  %s457_s22 = scalar_lea.vmem %s4895_s12, %s3391_s18 }
  0xe9   : > { %v3718_v33 = vpop.f32.mrb[3].mxu1  ;;  %v3734_v34 = vpop.f32.mrb[3].mxu0  ;;  %vm466_vm4 = vcmp.eq.s32.totalorder %v465_v30, 0 }
  0xea   : > { %v1350_v31 = vshrl.u32 %v1349_v29, 7  ;;  %v467_v33 = vsel %vm466_vm4, -1e+09, %v4180_v1 }
  0xec   : > { %v1351_v32 = vsub.s32 0, %v1350_v31 }
  0xee   : > { %v625_v35 = vpop.f32.mrb[4].mxu1  ;;  %v781_v36 = vpop.f32.mrb[4].mxu0  ;;  %v4460_v34 = vrot.slane %v467_v33, %v1351_v32 }
  0xef   : > { %v1155_v37 = vpack.c.bf16 %v781_v36, %v781_v36  ;;  %v3725_v38 = vpop.f32.mrb[5].mxu1  ;;  %v3749_v39 = vpop.f32.mrb[5].mxu0  ;;  %v1152_v8 = vpack.c.bf16 %v625_v35, %v625_v35 }
  0xf0   : > { %v628_v40 = vpop.f32.mrb[6].mxu1  ;;  %v784_v41 = vpop.f32.mrb[6].mxu0 }
  0xf1   : > { %v1164_v42 = vsel %vm1159_vm2, %v1155_v37, 0  ;;  %v3726_v43 = vpop.f32.mrb[7].mxu1  ;;  %v3750_v44 = vpop.f32.mrb[7].mxu0 }
  0xf2   : > { %3808 = vmatpush3.bf16.xpose.msra.mxu0 %v1164_v42 }
  0xf3   : > { %3819 = vmatprep.subr.bf16.mxu0 %v4180_v1 }
  0xf6   : > { %v729_v45 = vpop.f32.mrb[8].mxu1  ;;  %v885_v46 = vpop.f32.mrb[8].mxu0 }
  0xf7   : > { %v1157_v48 = vpack.c.bf16 %v885_v46, %v885_v46  ;;  %v3741_v49 = vpop.f32.mrb[9].mxu1  ;;  %v3765_v50 = vpop.f32.mrb[9].mxu0  ;;  %v1154_v14 = vpack.c.bf16 %v729_v45, %v729_v45 }
  0xf8   : > { %v732_v51 = vpop.f32.mrb[10].mxu1  ;;  %v888_v52 = vpop.f32.mrb[10].mxu0 }
  0xf9   : > { %v1256_v53 = vsel %vm1159_vm2, %v1157_v48, 0  ;;  %v3742_v54 = vpop.f32.mrb[11].mxu1  ;;  %3810 = vmatmul.mubr.msk.bf16.vlgmr.msra.gmra.mrb[20].mxu0 %vm1159_vm2, %v1151_v47  ;;  %v3766_v55 = vpop.f32.mrb[11].mxu0 }
  0xfa   : > { %3820 = vmatpush3.bf16.xpose.msra.mxu0 %v1256_v53  ;;  %3821 = vmatprep.mubr.msk.bf16.mxu0 %vm4181_vm0, %v4180_v1 }
  0xfb   : > { %3831 = vmatprep.subr.bf16.mxu0 %v4180_v1 }
  0xfe   : > { %v833_v56 = vpop.f32.mrb[12].mxu1 }
  0xff   : > { %v1156_v58 = vpack.c.bf16 %v833_v56, %v833_v56  ;;  %v3757_v59 = vpop.f32.mrb[13].mxu1 }
 0x100   : > { %v836_v60 = vpop.f32.mrb[14].mxu1  ;;  %v989_v61 = vpop.f32.mrb[12].mxu0 }
 0x101   : > { %v1210_v62 = vsel %vm1159_vm2, %v1156_v58, 0  ;;  %v3758_v63 = vpop.f32.mrb[15].mxu1  ;;  %3822 = vmatmul.mubr.msk.bf16.vlgmr.msra.gmra.mrb[24].mxu0 %vm1159_vm2, %v1153_v57  ;;  %v1406_v0 = vpack.c.bf16 %v989_v61, %v989_v61  ;;  %v3781_v2 = vpop.f32.mrb[13].mxu0 }
 0x102   : > { %3814 = vmatpush3.bf16.xpose.msra.mxu1 %v1210_v62  ;;  %v992_v3 = vpop.f32.mrb[14].mxu0  ;;  %3833 = vmatprep.mubr.msk.bf16.mxu0 %vm4181_vm0, %v4180_v1 }
 0x103   : > { %3825 = vmatprep.subr.bf16.mxu1 %v4180_v1  ;;  %v1415_v4 = vsel %vm1413_vm3, %v1406_v0, 0  ;;  %v3782_v5 = vpop.f32.mrb[15].mxu0 }
 0x104   : > { %3832 = vmatpush3.bf16.msra.mxu0 %v1415_v4 }
 0x105   : > { %3843 = vmatprep.subr.bf16.mxu0 %v4180_v1 }
 0x106   : > { %v937_v6 = vpop.f32.mrb[16].mxu1 }
 0x107   : > { %v1158_v9 = vpack.c.bf16 %v937_v6, %v937_v6  ;;  %v3773_v10 = vpop.f32.mrb[17].mxu1 }
 0x108   : > { %v940_v11 = vpop.f32.mrb[18].mxu1  ;;  %v4449_v15 = vpop.f32.mrb[16].mxu0 }
 0x109   : > { %v1302_v12 = vsel %vm1159_vm2, %v1158_v9, 0  ;;  %v3774_v13 = vpop.f32.mrb[19].mxu1  ;;  %3816 = vmatmul.mubr.msk.bf16.vlgmr.msra.gmra.mrb[28].mxu1 %vm1159_vm2, %v1152_v8  ;;  %v3797_v16 = vpop.f32.mrb[17].mxu0 }
 0x10a   : > { %3826 = vmatpush3.bf16.xpose.msra.mxu1 %v1302_v12  ;;  %3827 = vmatprep.mubr.msk.bf16.mxu1 %vm4181_vm0, %v4180_v1  ;;  %v1096_v17 = vpop.f32.mrb[18].mxu0 }
 0x10b   : > { %3837 = vmatprep.subr.bf16.mxu1 %v4180_v1  ;;  %v3798_v18 = vpop.f32.mrb[19].mxu0 }
 0x10e   : > { %v1041_v19 = vpop.f32.mrb[20].mxu1 }
 0x10f   : > { %v1407_v20 = vpack.c.bf16 %v1041_v19, %v1041_v19  ;;  %v3789_v21 = vpop.f32.mrb[21].mxu1 }
 0x110   : > { %v1044_v22 = vpop.f32.mrb[22].mxu1 }
 0x111   : > { %3828 = vmatmul.mubr.msk.bf16.vlgmr.msra.gmra.mrb[32].mxu1 %vm1159_vm2, %v1154_v14  ;;  %v1461_v23 = vsel %vm1413_vm3, %v1407_v20, 0  ;;  %v3790_v24 = vpop.f32.mrb[23].mxu1 }
 0x112   : > { %3839 = vmatprep.mubr.msk.bf16.mxu1 %vm4181_vm0, %v4180_v1  ;;  %3838 = vmatpush3.bf16.msra.mxu1 %v1461_v23 }
 0x113   : > { %3849 = vmatprep.subr.bf16.mxu1 %v4180_v1 }
 0x116   : > { %v4453_v25 = vpop.f32.mrb[24].mxu1 }
 0x117   : > { %v3805_v26 = vpop.f32.mrb[25].mxu1 }
 0x118   : > { %v1148_v27 = vpop.f32.mrb[26].mxu1  ;;  %v1408_v26 = vpack.c.bf16 %v4449_v15, %v4449_v15 }
 0x119   : > { %v3806_v28 = vpop.f32.mrb[27].mxu1 }
 0x11a   : > { %v1507_v29 = vsel %vm1413_vm3, %v1408_v26, 0  ;;  %v3442_v26 = vld [vmem:[%s4889_s6] ss:$0 sm:$0xff] }
 0x1cc   : > { %v1200_v35 = vpop.f32.mrb[20].mxu0 }
 0x1cd   : > { %v1344_v36 = vmul.f32 0.35355338, %v1200_v35  ;;  %v3811_v37 = vpop.f32.mrb[21].mxu0 }
 0x1ce   : > { %v1203_v38 = vpop.f32.mrb[22].mxu0 }
 0x1cf   : > { %v3812_v39 = vpop.f32.mrb[23].mxu0  ;;  %v1354_v40 = vadd.f32 %v4460_v34, %v1344_v36  ;;  %v1409_v36 = vpack.c.bf16 %v4453_v25, %v4453_v25 }
 0x1d1   : > { %v1358_v41 = vsel %vm1159_vm2, %v1354_v40, -inf  ;;  %v1553_v39 = vsel %vm1413_vm3, %v1409_v36, 0 }
 0x1d2   : > { %1359 = vmax.xlane.f32.xlu0 %v1358_v41 }
 0x1d4   : > { %v1292_v42 = vpop.f32.mrb[24].mxu0 }
 0x1d5   : > { %v1346_v43 = vmul.f32 0.35355338, %v1292_v42  ;;  %v3823_v44 = vpop.f32.mrb[25].mxu0 }
 0x1d6   : > { %v1295_v45 = vpop.f32.mrb[26].mxu0 }
 0x1d7   : > { %v3824_v46 = vpop.f32.mrb[27].mxu0  ;;  %v1356_v47 = vadd.f32 %v4460_v34, %v1346_v43 }
 0x1d8   : > { %v4092_v46 = vld [vmem:[%s4888_s5] sm:$0xff]  }
 0x1d9   : > { %v1364_v48 = vsel %vm1159_vm2, %v1356_v47, -inf }
 0x1da   : > { %1365 = vmax.xlane.f32.xlu1 %v1364_v48 }
 0x1dc   : > { %v1246_v49 = vpop.f32.mrb[28].mxu1 }
 0x1dd   : > { %v1345_v50 = vmul.f32 0.35355338, %v1246_v49  ;;  %v3817_v51 = vpop.f32.mrb[29].mxu1 }
 0x1de   : > { %v1249_v52 = vpop.f32.mrb[30].mxu1  ;;  %v4093_v51 = vld [vmem:[%s4888_s5 + $0x8] sm:$0xff]  }
 0x1df   : > { %v3818_v53 = vpop.f32.mrb[31].mxu1  ;;  %v1355_v54 = vadd.f32 %v4460_v34, %v1345_v50 }
 0x1e1   : > { %v1361_v55 = vsel %vm1159_vm2, %v1355_v54, -inf }
 0x1e2   : > { %1362 = vmax.xlane.f32.xlu0 %v1361_v55 }
 0x1e4   : > { %v1338_v56 = vpop.f32.mrb[32].mxu1 }
 0x1e5   : > { %v1347_v57 = vmul.f32 0.35355338, %v1338_v56  ;;  %v3829_v58 = vpop.f32.mrb[33].mxu1 }
 0x1e6   : > { %v1341_v59 = vpop.f32.mrb[34].mxu1 }
 0x1e7   : > { %v3830_v60 = vpop.f32.mrb[35].mxu1  ;;  %v1357_v61 = vadd.f32 %v4460_v34, %v1347_v57 }
 0x1e9   : > { %v1367_v62 = vsel %vm1159_vm2, %v1357_v61, -inf }
 0x1ea   : > { %1368 = vmax.xlane.f32.xlu1 %v1367_v62 }
 0x25f   : > { %v1360_v63 = vpop.xlane.xlu0 %1359 }
 0x260   : > { %v1370_v0 = vsub.f32 %v1354_v40, %v1360_v63 }
 0x262   : > { %v1374_v2 = vmul.f32 1.442695, %v1370_v0 }
 0x264   : > { %4132 = vpow2.f32 %v1374_v2 }
 0x267   : > { %v1366_v3 = vpop.xlane.xlu1 %1365 }
 0x268   : > { %v1372_v4 = vsub.f32 %v1356_v47, %v1366_v3 }
 0x26a   : > { %v1378_v5 = vmul.f32 1.442695, %v1372_v4 }
 0x26c   : > { %4134 = vpow2.f32 %v1378_v5 }
 0x26e   : > { %v4133_v6 = vpop.eup %4132 }
 0x26f   : > { %v1363_v8 = vpop.xlane.xlu0 %1362  ;;  %v1382_v9 = vsel %vm1159_vm2, %v4133_v6, 0.0 }
 0x270   : > { %v1371_v10 = vsub.f32 %v1355_v54, %v1363_v8  ;;  %1383 = vadd.xlane.f32.xlu0 %v1382_v9 }
 0x272   : > { %v1376_v11 = vmul.f32 1.442695, %v1371_v10 }
 0x274   : > { %4136 = vpow2.f32 %v1376_v11 }
 0x276   : > { %v4135_v12 = vpop.eup %4134 }
 0x277   : > { %v1369_v13 = vpop.xlane.xlu1 %1368  ;;  %v1388_v14 = vsel %vm1159_vm2, %v4135_v12, 0.0 }
 0x278   : > { %v1373_v16 = vsub.f32 %v1357_v61, %v1369_v13  ;;  %1389 = vadd.xlane.f32.xlu0 %v1388_v14 }
 0x27a   : > { %v1380_v17 = vmul.f32 1.442695, %v1373_v16 }
 0x27c   : > { %4138 = vpow2.f32 %v1380_v17  ;;  %v4094_v17 = vld [vmem:[%s4891_s8] sm:$0xff]  }
 0x27e   : > { %v4137_v18 = vpop.eup %4136 }
 0x27f   : > { %v1385_v19 = vsel %vm1159_vm2, %v4137_v18, 0.0 }
 0x280   : > { %1386 = vadd.xlane.f32.xlu1 %v1385_v19  ;;  %v4097_v19 = vld [vmem:[%s4892_s9 + $0x8] sm:$0xff]  }
 0x286   : > { %v4139_v20 = vpop.eup %4138 }
 0x287   : > { %v1391_v21 = vsel %vm1159_vm2, %v4139_v20, 0.0 }
 0x288   : > { %1392 = vadd.xlane.f32.xlu1 %v1391_v21 }
 0x2fd   : > { %v1384_v22 = vpop.xlane.xlu0 %1383 }
 0x2fe   : > { %4140 = vrcp.f32 %v1384_v22 }
 0x305   : > { %v1390_v23 = vpop.xlane.xlu0 %1389 }
 0x306   : > { %4142 = vrcp.f32 %v1390_v23 }
 0x308   : > { %v4141_v24 = vpop.eup %4140 }
 0x309   : > { %v4476_v27 = vmul.f32 %v4141_v24, %v4133_v6 }
 0x30b   : > { %v1402_v28 = vpack.c.bf16 %v4476_v27, %v4476_v27 }
 0x30d   : > { %3834 = vmatmul.mubr.msk.bf16.vlgmr.msra.gmra.mrb[28].mxu0 %vm1159_vm2, %v1402_v28  ;;  %v1387_v30 = vpop.xlane.xlu1 %1386 }
 0x30e   : > { %3844 = vmatpush3.bf16.msra.mxu0 %v1507_v29  ;;  %4144 = vrcp.f32 %v1387_v30  ;;  %3845 = vmatprep.mubr.msk.bf16.mxu0 %vm4181_vm0, %v4180_v1  ;;  %v3443_v29 = vld [vmem:[%s4890_s7] ss:$0 sm:$0xff] }
 0x30f   : > { %3855 = vmatprep.subr.bf16.mxu0 %v4180_v1 }
 0x310   : > { %v4143_v31 = vpop.eup %4142 }
 0x311   : > { %v4485_v32 = vmul.f32 %v4143_v31, %v4135_v12 }
 0x313   : > { %v1404_v15 = vpack.c.bf16 %v4485_v32, %v4485_v32 }
 0x315   : > { %3846 = vmatmul.mubr.msk.bf16.vlgmr.msra.gmra.mrb[32].mxu0 %vm1159_vm2, %v1404_v15  ;;  %v1393_v33 = vpop.xlane.xlu1 %1392 }
 0x316   : > { %4146 = vrcp.f32 %v1393_v33  ;;  %3859 = vmatprep.mubr.msk.bf16.mxu0 %vm4181_vm0, %v4180_v1  ;;  %3856 = vmatpush3.bf16.msra.mxu0 %v4092_v46  ;;  %v4099_v33 = vld [vmem:[%s4892_s9 + $0x18] sm:$0xff]  }
 0x317   : > { %3857 = vmatprep.subr.bf16.mxu0 %v4180_v1 }
 0x318   : > { %v4145_v35 = vpop.eup %4144 }
 0x319   : > { %v4494_v37 = vmul.f32 %v4145_v35, %v4137_v18  ;;  %v4096_v18 = vld [vmem:[%s4892_s9] sm:$0xff]  }
 0x31a   : > { %3858 = vmatpush3.bf16.msra.mxu0 %v4093_v51 }
 0x31b   : > { %v1403_v38 = vpack.c.bf16 %v4494_v37, %v4494_v37  ;;  %3871 = vmatprep.subr.bf16.mxu0 %v4180_v1 }
 0x31d   : > { %3840 = vmatmul.mubr.msk.bf16.vlgmr.msra.gmra.mrb[36].mxu1 %vm1159_vm2, %v1403_v38 }
 0x31e   : > { %3850 = vmatpush3.bf16.msra.mxu1 %v1553_v39  ;;  %3851 = vmatprep.mubr.msk.bf16.mxu1 %vm4181_vm0, %v4180_v1 }
 0x31f   : > { %3863 = vmatprep.subr.bf16.mxu1 %v4180_v1 }
 0x320   : > { %v4147_v40 = vpop.eup %4146 }
 0x321   : > { %v4503_v41 = vmul.f32 %v4147_v40, %v4139_v20  ;;  %v4098_v20 = vld [vmem:[%s4892_s9 + $0x10] sm:$0xff]  }
 0x323   : > { %v1405_v25 = vpack.c.bf16 %v4503_v41, %v4503_v41 }
 0x325   : > { %3852 = vmatmul.mubr.msk.bf16.vlgmr.msra.gmra.mrb[40].mxu1 %vm1159_vm2, %v1405_v25 }
 0x326   : > { %3867 = vmatprep.mubr.msk.bf16.mxu1 %vm4181_vm0, %v4180_v1  ;;  %3864 = vmatpush3.bf16.msra.mxu1 %v4094_v17  ;;  %v4115_v17 = vld [vmem:[%s4887_s4 + $0x48] sm:$0xff]  }
 0x327   : > { %3865 = vmatprep.subr.bf16.mxu1 %v4180_v1 }
 0x3e0   : > { %v1451_v42 = vpop.f32.mrb[28].mxu0 }
 0x3e1   : > { %v3835_v43 = vpop.f32.mrb[29].mxu0 }
 0x3e2   : > { %v1454_v44 = vpop.f32.mrb[30].mxu0 }
 0x3e3   : > { %v3836_v45 = vpop.f32.mrb[31].mxu0 }
 0x3e8   : > { %v1543_v47 = vpop.f32.mrb[32].mxu0 }
 0x3e9   : > { %v3847_v48 = vpop.f32.mrb[33].mxu0  ;;  %1600 = vrot.lane.b32.xlu1 %v1543_v47, %s4182_s27 }
 0x3ea   : > { %v1546_v49 = vpop.f32.mrb[34].mxu0 }
 0x3eb   : > { %v3848_v50 = vpop.f32.mrb[35].mxu0 }
 0x3f0   : > { %v1497_v52 = vpop.f32.mrb[36].mxu1 }
 0x3f1   : > { %1596 = vrot.lane.b32.xlu0 %v1497_v52, %s4183_s30  ;;  %v3841_v53 = vpop.f32.mrb[37].mxu1 }
 0x3f2   : > { %v1500_v54 = vpop.f32.mrb[38].mxu1  ;;  %v4100_v53 = vld [vmem:[%s4885_s2 + $0x40] sm:$0xff]  }
 0x3f3   : > { %v3842_v55 = vpop.f32.mrb[39].mxu1  ;;  %v4101_v54 = vld [vmem:[%s4885_s2 + $0x60] sm:$0xff]  }
 0x3f4   : > { %v4102_v55 = vld [vmem:[%s4885_s2 + $0x48] sm:$0xff]  }
 0x3f8   : > { %v1589_v56 = vpop.f32.mrb[40].mxu1 }
 0x3f9   : > { %1604 = vrot.lane.b32.xlu1 %v1589_v56, %s4184_s14  ;;  %v3853_v57 = vpop.f32.mrb[41].mxu1  ;;  %v4103_v56 = vld [vmem:[%s4885_s2 + $0x68] sm:$0xff]  }
 0x3fa   : > { %v1592_v58 = vpop.f32.mrb[42].mxu1 }
 0x3fb   : > { %v3854_v59 = vpop.f32.mrb[43].mxu1 }
 0x45b   : > { %v1601_v61 = vpop.permute.xlu1 %1600 }
 0x463   : > { %v1597_v60 = vpop.permute.xlu0 %1596 }
 0x464   : > { %v1607_v62 = vsel %vm1159_vm2, %v1451_v42, %v1597_v60 }
 0x465   : > { %v1609_v63 = vsel %vm1608_vm5, %v1607_v62, %v1601_v61  ;;  %v3452_v61 = vld [vmem:[%s4893_s10] ss:$0 sm:$0xff] }
 0x46b   : > { %v1605_v0 = vpop.permute.xlu1 %1604 }
 0x46c   : > { %v1611_v2 = vsel %vm1610_vm6, %v1609_v63, %v1605_v0  ;;  %v3453_v63 = vld [vmem:[%s4894_s11] ss:$0 sm:$0xff] }
 0x46d   : > { %v1612_v3 = vpack.c.bf16 %v1611_v2, %v1611_v2 }
 0x46f   : > { %3860 = vmatmul.mubr.msk.bf16.vlgmr.msra.gmra.mrb[36].mxu0 %vm535_vm1, %v1612_v3  ;;  %v4104_v3 = vld [vmem:[%s4885_s2 + $0x50] sm:$0xff]  }
 0x470   : > { %3879 = vmatprep.mubr.msk.bf16.mxu0 %vm4181_vm0, %v4180_v1  ;;  %3872 = vmatpush3.bf16.msra.mxu0 %v4096_v18  ;;  %v4117_v18 = vld [vmem:[%s4887_s4 + $0x60] sm:$0xff]  }
 0x471   : > { %3873 = vmatprep.subr.bf16.mxu0 %v4180_v1 }
 0x474   : > { %3874 = vmatpush3.bf16.msra.mxu0 %v4097_v19  ;;  %v4118_v19 = vld [vmem:[%s4886_s3 + $0x78] sm:$0xff]  }
 0x475   : > { %3875 = vmatprep.subr.bf16.mxu0 %v4180_v1 }
 0x478   : > { %3876 = vmatpush3.bf16.msra.mxu0 %v4098_v20  ;;  %v4119_v20 = vld [vmem:[%s4887_s4 + $0x68] sm:$0xff]  }
 0x479   : > { %3877 = vmatprep.subr.bf16.mxu0 %v4180_v1 }
 0x47c   : > { %3878 = vmatpush3.bf16.msra.mxu0 %v4099_v33 }
 0x47d   : > { %3899 = vmatprep.subr.bf16.mxu0 %v4180_v1 }
 0x542   : > { %v1662_v4 = vpop.f32.mrb[36].mxu0 }
 0x543   : > { %v1668_v5 = vadd.f32 %v1662_v4, %v4298_v7  ;;  %v3861_v6 = vpop.f32.mrb[37].mxu0  ;;  %v4095_v7 = vld [vmem:[%s4891_s8 + $0x8] sm:$0xff]   ;;  %v4105_v4 = vld [vmem:[%s4886_s3 + $0x40] sm:$0xff]  }
 0x544   : > { %v1665_v8 = vpop.f32.mrb[38].mxu0  ;;  %3866 = vmatpush3.bf16.msra.mxu1 %v4095_v7  ;;  %v4106_v6 = vld [vmem:[%s4885_s2 + $0x58] sm:$0xff]   ;;  %v4116_v7 = vld [vmem:[%s4886_s3 + $0x70] sm:$0xff]  }
 0x545   : > { %v3862_v9 = vpop.f32.mrb[39].mxu0  ;;  %v1684_v10 = vsel %vm535_vm1, %v1668_v5, 0.0  ;;  %3883 = vmatprep.subr.bf16.mxu1 %v4180_v1  ;;  %v4107_v8 = vld [vmem:[%s4886_s3 + $0x48] sm:$0xff]  }
 0x546   : > { %1685 = vadd.xlane.f32.xlu1 %v1684_v10  ;;  %v4108_v9 = vld [vmem:[%s4885_s2 + $0x70] sm:$0xff]   ;;  %v4109_v10 = vld [vmem:[%s4886_s3 + $0x60] sm:$0xff]  }
 0x5d3   : > { %v1686_v11 = vpop.xlane.xlu1 %1685 }
 0x5d4   : > { %v1688_v12 = vmul.f32 0.03125, %v1686_v11  ;;  %v4110_v11 = vld [vmem:[%s4885_s2 + $0x78] sm:$0xff]  }
 0x5d6   : > { %v1689_v13 = vsub.f32 %v1668_v5, %v1688_v12  ;;  %v4111_v12 = vld [vmem:[%s4886_s3 + $0x68] sm:$0xff]  }
 0x5d8   : > { %v1690_v14 = vmul.f32 %v1689_v13, %v1689_v13 }
 0x5da   : > { %v1691_v16 = vsel %vm535_vm1, %v1690_v14, 0.0  ;;  %v4113_v14 = vld [vmem:[%s4887_s4 + $0x40] sm:$0xff]  }
 0x5db   : > { %1692 = vadd.xlane.f32.xlu0 %v1691_v16  ;;  %v4114_v16 = vld [vmem:[%s4886_s3 + $0x58] sm:$0xff]  }
 0x668   : > { %v1693_v21 = vpop.xlane.xlu0 %1692 }
 0x669   : > { %v1694_v22 = vmul.f32 0.03125, %v1693_v21  ;;  %v4120_v21 = vld [vmem:[%s4887_s4 + $0x50] sm:$0xff]  }
 0x66b   : > { %v1695_v23 = vadd.f32 1e-05, %v1694_v22  ;;  %v4121_v22 = vld [vmem:[%s4887_s4 + $0x58] sm:$0xff]  }
 0x66d   : > { %4148 = vrsqrt.f32 %v1695_v23  ;;  %v4122_v23 = vld [vmem:[%s4887_s4 + $0x70] sm:$0xff]  }
 0x677   : > { %v4149_v24 = vpop.eup %4148 }
 0x678   : > { %v1697_v28 = vmul.f32 %v4149_v24, %v1689_v13  ;;  %v4112_v13 = vld [vmem:[%s4886_s3 + $0x50] sm:$0xff]   ;;  %v4123_v24 = vld [vmem:[%s4887_s4 + $0x78] sm:$0xff]  }
 0x67a   : > { %v1704_v30 = vmul.f32 %v3442_v26, %v1697_v28 }
 0x67c   : > { %v1711_v31 = vadd.f32 %v3443_v29, %v1704_v30 }
 0x67e   : > { %v1727_v15 = vpack.c.bf16 %v1711_v31, %v1711_v31 }
 0x680   : > { %3868 = vmatmul.mubr.msk.bf16.vlgmr.msra.gmra.mrb[44].mxu1 %vm535_vm1, %v1727_v15 }
 0x681   : > { %3887 = vmatprep.mubr.msk.bf16.mxu1 %vm4181_vm0, %v4180_v1  ;;  %3884 = vmatpush3.bf16.msra.mxu1 %v4100_v53 }
 0x682   : > { %3885 = vmatprep.subr.bf16.mxu1 %v4180_v1 }
 0x685   : > { %3886 = vmatpush3.bf16.msra.mxu1 %v4102_v55 }
 0x686   : > { %3891 = vmatprep.subr.bf16.mxu1 %v4180_v1 }
 0x753   : > { %v1777_v35 = vpop.f32.mrb[44].mxu1 }
 0x754   : > { %v1783_v36 = vmax.f32 %v1777_v35, 0.0  ;;  %v3869_v38 = vpop.f32.mrb[45].mxu1 }
 0x755   : > { %v1780_v39 = vpop.f32.mrb[46].mxu1 }
 0x756   : > { %v1784_v40 = vpack.c.bf16 %v1783_v36, %v1783_v36  ;;  %v3870_v25 = vpop.f32.mrb[47].mxu1 }
 0x758   : > { %3880 = vmatmul.mubr.msk.bf16.vlgmr.msra.gmra.mrb[40].mxu0 %vm1809_vm7, %v1784_v40 }
 0x759   : > { %3903 = vmatprep.mubr.msk.bf16.mxu0 %vm4181_vm0, %v4180_v1  ;;  %3900 = vmatpush3.bf16.msra.mxu0 %v4101_v54 }
 0x75a   : > { %3901 = vmatprep.subr.bf16.mxu0 %v4180_v1 }
 0x75d   : > { %3902 = vmatpush3.bf16.msra.mxu0 %v4103_v56 }
 0x75e   : > { %3915 = vmatprep.subr.bf16.mxu0 %v4180_v1 }
 0x82b   : > { %v1847_v42 = vpop.f32.mrb[40].mxu0 }
 0x82c   : > { %v1848_v43 = vadd.f32 %v1847_v42, %v1711_v31  ;;  %v3881_v44 = vpop.f32.mrb[41].mxu0 }
 0x82d   : > { %v1850_v45 = vpop.f32.mrb[42].mxu0 }
 0x82e   : > { %v3882_v46 = vpop.f32.mrb[43].mxu0  ;;  %v1853_v47 = vsel %vm535_vm1, %v1848_v43, 0.0 }
 0x82f   : > { %1854 = vadd.xlane.f32.xlu0 %v1853_v47 }
 0x8bc   : > { %v1855_v48 = vpop.xlane.xlu0 %1854 }
 0x8bd   : > { %v1856_v49 = vmul.f32 0.03125, %v1855_v48 }
 0x8bf   : > { %v1857_v50 = vsub.f32 %v1848_v43, %v1856_v49 }
 0x8c1   : > { %v1858_v51 = vmul.f32 %v1857_v50, %v1857_v50 }
 0x8c3   : > { %v1859_v52 = vsel %vm535_vm1, %v1858_v51, 0.0 }
 0x8c4   : > { %1860 = vadd.xlane.f32.xlu0 %v1859_v52 }
 0x951   : > { %v1861_v57 = vpop.xlane.xlu0 %1860 }
 0x952   : > { %v1862_v58 = vmul.f32 0.03125, %v1861_v57 }
 0x954   : > { %v1863_v59 = vadd.f32 1e-05, %v1862_v58 }
 0x956   : > { %4150 = vrsqrt.f32 %v1863_v59 }
 0x960   : > { %v4151_v60 = vpop.eup %4150 }
 0x961   : > { %v1865_v62 = vmul.f32 %v4151_v60, %v1857_v50 }
 0x963   : > { %v1872_v0 = vmul.f32 %v3452_v61, %v1865_v62 }
 0x965   : > { %v4590_v2 = vadd.f32 %v3453_v63, %v1872_v0 }
 0x967   : > { %v4600_v5 = vpack.c.bf16 %v4590_v2, %v4590_v2 }
 0x969   : > { %3888 = vmatmul.mubr.msk.bf16.vlgmr.msra.gmra.mrb[48].mxu1 %vm535_vm1, %v4600_v5  ;;  %3904 = vmatmul.mubr.msk.bf16.vlgmr.msra.gmra.mrb[44].mxu0 %vm535_vm1, %v4600_v5 }
 0x96a   : > { %3892 = vmatpush3.bf16.msra.mxu1 %v4104_v3  ;;  %3916 = vmatpush3.bf16.msra.mxu0 %v4105_v4 }
 0x96b   : > { %3893 = vmatprep.subr.bf16.mxu1 %v4180_v1  ;;  %3917 = vmatprep.subr.bf16.mxu0 %v4180_v1 }
 0x96c   : > { %3895 = vmatprep.mubr.msk.bf16.mxu1 %vm4181_vm0, %v4180_v1  ;;  %3919 = vmatprep.mubr.msk.bf16.mxu0 %vm4181_vm0, %v4180_v1 }
 0x96e   : > { %3894 = vmatpush3.bf16.msra.mxu1 %v4106_v6  ;;  %3918 = vmatpush3.bf16.msra.mxu0 %v4107_v8 }
 0x96f   : > { %3907 = vmatprep.subr.bf16.mxu1 %v4180_v1  ;;  %3931 = vmatprep.subr.bf16.mxu0 %v4180_v1 }
 0x971   : > { %3896 = vmatmul.mubr.msk.bf16.vlgmr.msra.gmra.mrb[52].mxu1 %vm535_vm1, %v4600_v5  ;;  %3920 = vmatmul.mubr.msk.bf16.vlgmr.msra.gmra.mrb[48].mxu0 %vm535_vm1, %v4600_v5 }
 0x972   : > { %3908 = vmatpush3.bf16.msra.mxu1 %v4108_v9  ;;  %3932 = vmatpush3.bf16.msra.mxu0 %v4109_v10 }
 0x973   : > { %3909 = vmatprep.subr.bf16.mxu1 %v4180_v1  ;;  %3933 = vmatprep.subr.bf16.mxu0 %v4180_v1 }
 0x974   : > { %3911 = vmatprep.mubr.msk.bf16.mxu1 %vm4181_vm0, %v4180_v1  ;;  %3935 = vmatprep.mubr.msk.bf16.mxu0 %vm4181_vm0, %v4180_v1 }
 0x976   : > { %3910 = vmatpush3.bf16.msra.mxu1 %v4110_v11  ;;  %3934 = vmatpush3.bf16.msra.mxu0 %v4111_v12 }
 0x977   : > { %3923 = vmatprep.subr.bf16.mxu1 %v4180_v1  ;;  %3947 = vmatprep.subr.bf16.mxu0 %v4180_v1 }
 0x979   : > { %3912 = vmatmul.mubr.msk.bf16.vlgmr.msra.gmra.mrb[56].mxu1 %vm535_vm1, %v4600_v5  ;;  %3936 = vmatmul.mubr.msk.bf16.vlgmr.msra.gmra.mrb[52].mxu0 %vm535_vm1, %v4600_v5 }
 0x97a   : > { %3924 = vmatpush3.bf16.msra.mxu1 %v4112_v13  ;;  %3948 = vmatpush3.bf16.msra.mxu0 %v4113_v14 }
 0x97b   : > { %3925 = vmatprep.subr.bf16.mxu1 %v4180_v1  ;;  %3949 = vmatprep.subr.bf16.mxu0 %v4180_v1 }
 0x97c   : > { %3927 = vmatprep.mubr.msk.bf16.mxu1 %vm4181_vm0, %v4180_v1  ;;  %3951 = vmatprep.mubr.msk.bf16.mxu0 %vm4181_vm0, %v4180_v1 }
 0x97e   : > { %3926 = vmatpush3.bf16.msra.mxu1 %v4114_v16  ;;  %3950 = vmatpush3.bf16.msra.mxu0 %v4115_v17 }
 0x97f   : > { %3939 = vmatprep.subr.bf16.mxu1 %v4180_v1  ;;  %3963 = vmatprep.subr.bf16.mxu0 %v4180_v1 }
 0x981   : > { %3928 = vmatmul.mubr.msk.bf16.vlgmr.msra.gmra.mrb[60].mxu1 %vm535_vm1, %v4600_v5  ;;  %3952 = vmatmul.mubr.msk.bf16.vlgmr.msra.gmra.mrb[56].mxu0 %vm535_vm1, %v4600_v5 }
 0x982   : > { %3940 = vmatpush3.bf16.msra.mxu1 %v4116_v7  ;;  %3964 = vmatpush3.bf16.msra.mxu0 %v4117_v18 }
 0x983   : > { %3941 = vmatprep.subr.bf16.mxu1 %v4180_v1  ;;  %3965 = vmatprep.subr.bf16.mxu0 %v4180_v1 }
 0x984   : > { %3943 = vmatprep.mubr.msk.bf16.mxu1 %vm4181_vm0, %v4180_v1  ;;  %3967 = vmatprep.mubr.msk.bf16.mxu0 %vm4181_vm0, %v4180_v1 }
 0x986   : > { %3942 = vmatpush3.bf16.msra.mxu1 %v4118_v19  ;;  %3966 = vmatpush3.bf16.msra.mxu0 %v4119_v20 }
 0x987   : > { %3955 = vmatprep.subr.bf16.mxu1 %v4180_v1  ;;  %3979 = vmatprep.subr.bf16.mxu0 %v4180_v1 }
 0x989   : > { %3944 = vmatmul.mubr.msk.bf16.vlgmr.msra.gmra.mrb[64].mxu1 %vm535_vm1, %v4600_v5  ;;  %3968 = vmatmul.mubr.msk.bf16.vlgmr.msra.gmra.mrb[60].mxu0 %vm535_vm1, %v4600_v5 }
 0x98a   : > { %3956 = vmatpush3.bf16.msra.mxu1 %v4120_v21  ;;  %3959 = vmatprep.mubr.msk.bf16.mxu1 %vm4181_vm0, %v4180_v1 }
 0x98b   : > { %3957 = vmatprep.subr.bf16.mxu1 %v4180_v1  ;;  %3981 = vmatprep.mubr.msk.bf16.mxu0 %vm4181_vm0, %v4180_v1 }
 0x98e   : > { %3958 = vmatpush3.bf16.msra.mxu1 %v4121_v22 }
 0x98f   : > { %3971 = vmatprep.subr.bf16.mxu1 %v4180_v1 }
 0x991   : > { %3960 = vmatmul.mubr.msk.bf16.vlgmr.msra.gmra.mrb[68].mxu1 %vm535_vm1, %v4600_v5 }
 0x992   : > { %3972 = vmatpush3.bf16.msra.mxu1 %v4122_v23  ;;  %3975 = vmatprep.mubr.msk.bf16.mxu1 %vm4181_vm0, %v4180_v1 }
 0x993   : > { %3973 = vmatprep.subr.bf16.mxu1 %v4180_v1 }
 0x996   : > { %3974 = vmatpush3.bf16.msra.mxu1 %v4123_v24 }
 0x997   : > { %3985 = vmatprep.subr.bf16.mxu1 %v4180_v1 }
 0x999   : > { %3976 = vmatmul.mubr.msk.bf16.vlgmr.msra.gmra.mrb[72].mxu1 %vm535_vm1, %v4600_v5 }
 0x99a   : > { %3987 = vmatprep.mubr.msk.bf16.mxu1 %vm4181_vm0, %v4180_v1 }
 0xa3c   : > { %v1990_v26 = vpop.f32.mrb[48].mxu1  ;;  %v2094_v28 = vpop.f32.mrb[44].mxu0 }
 0xa3d   : > { %v3889_v29 = vpop.f32.mrb[49].mxu1  ;;  %v3905_v30 = vpop.f32.mrb[45].mxu0  ;;  %v2568_v49 = vpack.c.bf16 %v1990_v26, %v1990_v26  ;;  %v2570_v60 = vpack.c.bf16 %v2094_v28, %v2094_v28 }
 0xa3e   : > { %v1993_v31 = vpop.f32.mrb[50].mxu1  ;;  %v2097_v15 = vpop.f32.mrb[46].mxu0 }
 0xa3f   : > { %v3890_v33 = vpop.f32.mrb[51].mxu1  ;;  %v3906_v35 = vpop.f32.mrb[47].mxu0 }
 0xa44   : > { %v2042_v36 = vpop.f32.mrb[52].mxu1  ;;  %v2198_v38 = vpop.f32.mrb[48].mxu0 }
 0xa45   : > { %v2572_v39 = vpack.c.bf16 %v2198_v38, %v2198_v38  ;;  %v3897_v40 = vpop.f32.mrb[53].mxu1  ;;  %v3921_v25 = vpop.f32.mrb[49].mxu0  ;;  %v2569_v12 = vpack.c.bf16 %v2042_v36, %v2042_v36 }
 0xa46   : > { %v2045_v42 = vpop.f32.mrb[54].mxu1  ;;  %v2201_v43 = vpop.f32.mrb[50].mxu0 }
 0xa47   : > { %v2580_v44 = vsel %vm1159_vm2, %v2572_v39, 0  ;;  %v3898_v45 = vpop.f32.mrb[55].mxu1  ;;  %v3922_v46 = vpop.f32.mrb[51].mxu0 }
 0xa48   : > { %3980 = vmatpush3.bf16.xpose.msra.mxu0 %v2580_v44 }
 0xa49   : > { %3991 = vmatprep.subr.bf16.mxu0 %v4180_v1 }
 0xa4c   : > { %v2146_v47 = vpop.f32.mrb[56].mxu1  ;;  %v2302_v48 = vpop.f32.mrb[52].mxu0 }
 0xa4d   : > { %v2574_v50 = vpack.c.bf16 %v2302_v48, %v2302_v48  ;;  %v3913_v51 = vpop.f32.mrb[57].mxu1  ;;  %v3937_v52 = vpop.f32.mrb[53].mxu0  ;;  %v2571_v22 = vpack.c.bf16 %v2146_v47, %v2146_v47 }
 0xa4e   : > { %v2149_v53 = vpop.f32.mrb[58].mxu1  ;;  %v2305_v54 = vpop.f32.mrb[54].mxu0 }
 0xa4f   : > { %v2672_v55 = vsel %vm1159_vm2, %v2574_v50, 0  ;;  %v3914_v56 = vpop.f32.mrb[59].mxu1  ;;  %v3938_v57 = vpop.f32.mrb[55].mxu0  ;;  %3982 = vmatmul.mubr.msk.bf16.vlgmr.msra.gmra.mrb[64].mxu0 %vm1159_vm2, %v2568_v49 }
 0xa50   : > { %3992 = vmatpush3.bf16.xpose.msra.mxu0 %v2672_v55  ;;  %3993 = vmatprep.mubr.msk.bf16.mxu0 %vm4181_vm0, %v4180_v1 }
 0xa51   : > { %4003 = vmatprep.subr.bf16.mxu0 %v4180_v1 }
 0xa54   : > { %v2250_v58 = vpop.f32.mrb[60].mxu1  ;;  %v2406_v59 = vpop.f32.mrb[56].mxu0 }
 0xa55   : > { %v2573_v61 = vpack.c.bf16 %v2250_v58, %v2250_v58  ;;  %v2816_v62 = vpack.c.bf16 %v2406_v59, %v2406_v59  ;;  %v3929_v63 = vpop.f32.mrb[61].mxu1  ;;  %v3953_v0 = vpop.f32.mrb[57].mxu0 }
 0xa56   : > { %v2253_v3 = vpop.f32.mrb[62].mxu1  ;;  %v2409_v4 = vpop.f32.mrb[58].mxu0 }
 0xa57   : > { %v2626_v5 = vsel %vm1159_vm2, %v2573_v61, 0  ;;  %v2824_v6 = vsel %vm1413_vm3, %v2816_v62, 0  ;;  %v3930_v8 = vpop.f32.mrb[63].mxu1  ;;  %v3954_v9 = vpop.f32.mrb[59].mxu0  ;;  %3994 = vmatmul.mubr.msk.bf16.vlgmr.msra.gmra.mrb[68].mxu0 %vm1159_vm2, %v2570_v60 }
 0xa58   : > { %3986 = vmatpush3.bf16.xpose.msra.mxu1 %v2626_v5  ;;  %4004 = vmatpush3.bf16.msra.mxu0 %v2824_v6 }
 0xa59   : > { %3997 = vmatprep.subr.bf16.mxu1 %v4180_v1  ;;  %4005 = vmatprep.mubr.msk.bf16.mxu0 %vm4181_vm0, %v4180_v1 }
 0xa5a   : > { %4015 = vmatprep.subr.bf16.mxu0 %v4180_v1 }
 0xa5c   : > { %v2354_v10 = vpop.f32.mrb[64].mxu1  ;;  %v4738_v11 = vpop.f32.mrb[60].mxu0 }
 0xa5d   : > { %v2575_v13 = vpack.c.bf16 %v2354_v10, %v2354_v10  ;;  %v3945_v14 = vpop.f32.mrb[65].mxu1  ;;  %v3969_v16 = vpop.f32.mrb[61].mxu0 }
 0xa5e   : > { %v2357_v17 = vpop.f32.mrb[66].mxu1  ;;  %v2513_v7 = vpop.f32.mrb[62].mxu0 }
 0xa5f   : > { %v2718_v18 = vsel %vm1159_vm2, %v2575_v13, 0  ;;  %v3946_v19 = vpop.f32.mrb[67].mxu1  ;;  %v3970_v20 = vpop.f32.mrb[63].mxu0  ;;  %3988 = vmatmul.mubr.msk.bf16.vlgmr.msra.gmra.mrb[76].mxu1 %vm1159_vm2, %v2569_v12 }
 0xa60   : > { %3998 = vmatpush3.bf16.xpose.msra.mxu1 %v2718_v18  ;;  %3999 = vmatprep.mubr.msk.bf16.mxu1 %vm4181_vm0, %v4180_v1 }
 0xa61   : > { %4009 = vmatprep.subr.bf16.mxu1 %v4180_v1 }
 0xa64   : > { %v2458_v21 = vpop.f32.mrb[68].mxu1 }
 0xa65   : > { %v2817_v23 = vpack.c.bf16 %v2458_v21, %v2458_v21  ;;  %v3961_v24 = vpop.f32.mrb[69].mxu1 }
 0xa66   : > { %v2461_v26 = vpop.f32.mrb[70].mxu1 }
 0xa67   : > { %v2870_v28 = vsel %vm1413_vm3, %v2817_v23, 0  ;;  %v3962_v29 = vpop.f32.mrb[71].mxu1  ;;  %4000 = vmatmul.mubr.msk.bf16.vlgmr.msra.gmra.mrb[80].mxu1 %vm1159_vm2, %v2571_v22 }
 0xa68   : > { %4010 = vmatpush3.bf16.msra.mxu1 %v2870_v28  ;;  %4011 = vmatprep.mubr.msk.bf16.mxu1 %vm4181_vm0, %v4180_v1  ;;  %v2818_v28 = vpack.c.bf16 %v4738_v11, %v4738_v11 }
 0xa69   : > { %4021 = vmatprep.subr.bf16.mxu1 %v4180_v1 }
 0xa6c   : > { %v4750_v30 = vpop.f32.mrb[72].mxu1 }
 0xa6d   : > { %v3977_v31 = vpop.f32.mrb[73].mxu1 }
 0xa6e   : > { %v2565_v15 = vpop.f32.mrb[74].mxu1 }
 0xa6f   : > { %v3978_v33 = vpop.f32.mrb[75].mxu1  ;;  %v2916_v15 = vsel %vm1413_vm3, %v2818_v28, 0 }
 0xb22   : > { %v2616_v35 = vpop.f32.mrb[64].mxu0 }
 0xb23   : > { %v2760_v36 = vmul.f32 0.35355338, %v2616_v35  ;;  %v3983_v38 = vpop.f32.mrb[65].mxu0 }
 0xb24   : > { %v2619_v39 = vpop.f32.mrb[66].mxu0 }
 0xb25   : > { %v3984_v40 = vpop.f32.mrb[67].mxu0  ;;  %v2764_v25 = vadd.f32 %v2760_v36, %v4460_v34 }
 0xb26   : > { %v2819_v40 = vpack.c.bf16 %v4750_v30, %v4750_v30 }
 0xb27   : > { %v2768_v42 = vsel %vm1159_vm2, %v2764_v25, -inf }
 0xb28   : > { %2769 = vmax.xlane.f32.xlu1 %v2768_v42 }
 0xb2a   : > { %v2708_v43 = vpop.f32.mrb[68].mxu0 }
 0xb2b   : > { %v2762_v44 = vmul.f32 0.35355338, %v2708_v43  ;;  %v3995_v45 = vpop.f32.mrb[69].mxu0  ;;  %v2962_v43 = vsel %vm1413_vm3, %v2819_v40, 0 }
 0xb2c   : > { %v2711_v46 = vpop.f32.mrb[70].mxu0 }
 0xb2d   : > { %v3996_v47 = vpop.f32.mrb[71].mxu0  ;;  %v2766_v48 = vadd.f32 %v2762_v44, %v4460_v34 }
 0xb2f   : > { %v2774_v49 = vsel %vm1159_vm2, %v2766_v48, -inf }
 0xb30   : > { %2775 = vmax.xlane.f32.xlu1 %v2774_v49 }
 0xb32   : > { %v2662_v50 = vpop.f32.mrb[76].mxu1 }
 0xb33   : > { %v2761_v51 = vmul.f32 0.35355338, %v2662_v50  ;;  %v3989_v52 = vpop.f32.mrb[77].mxu1  ;;  %v4124_v50 = vld [vmem:[%s4888_s5 + $0x10] sm:$0xff]  }
 0xb34   : > { %v2665_v53 = vpop.f32.mrb[78].mxu1 }
 0xb35   : > { %v3990_v54 = vpop.f32.mrb[79].mxu1  ;;  %v2765_v55 = vadd.f32 %v2761_v51, %v4460_v34 }
 0xb37   : > { %v2771_v56 = vsel %vm1159_vm2, %v2765_v55, -inf }
 0xb38   : > { %2772 = vmax.xlane.f32.xlu0 %v2771_v56 }
 0xb3a   : > { %v2754_v57 = vpop.f32.mrb[80].mxu1 }
 0xb3b   : > { %v2763_v58 = vmul.f32 0.35355338, %v2754_v57  ;;  %v4001_v59 = vpop.f32.mrb[81].mxu1 }
 0xb3c   : > { %v2757_v60 = vpop.f32.mrb[82].mxu1 }
 0xb3d   : > { %v4002_v61 = vpop.f32.mrb[83].mxu1  ;;  %v2767_v62 = vadd.f32 %v2763_v58, %v4460_v34 }
 0xb3f   : > { %v2777_v63 = vsel %vm1159_vm2, %v2767_v62, -inf }
 0xb40   : > { %2778 = vmax.xlane.f32.xlu0 %v2777_v63 }
 0xbb5   : > { %v2770_v0 = vpop.xlane.xlu1 %2769 }
 0xbb6   : > { %v2780_v3 = vsub.f32 %v2764_v25, %v2770_v0 }
 0xbb8   : > { %v2784_v4 = vmul.f32 1.442695, %v2780_v3 }
 0xbba   : > { %4152 = vpow2.f32 %v2784_v4 }
 0xbbd   : > { %v2776_v5 = vpop.xlane.xlu1 %2775 }
 0xbbe   : > { %v2782_v6 = vsub.f32 %v2766_v48, %v2776_v5 }
 0xbc0   : > { %v2788_v8 = vmul.f32 1.442695, %v2782_v6 }
 0xbc2   : > { %4154 = vpow2.f32 %v2788_v8 }
 0xbc4   : > { %v4153_v9 = vpop.eup %4152 }
 0xbc5   : > { %v2773_v10 = vpop.xlane.xlu0 %2772  ;;  %v2792_v12 = vsel %vm1159_vm2, %v4153_v9, 0.0 }
 0xbc6   : > { %v2781_v13 = vsub.f32 %v2765_v55, %v2773_v10  ;;  %2793 = vadd.xlane.f32.xlu1 %v2792_v12  ;;  %v4125_v55 = vld [vmem:[%s4888_s5 + $0x18] sm:$0xff]  }
 0xbc8   : > { %v2786_v14 = vmul.f32 1.442695, %v2781_v13 }
 0xbca   : > { %4156 = vpow2.f32 %v2786_v14 }
 0xbcc   : > { %v4155_v34 = vpop.eup %4154 }
 0xbcd   : > { %v2779_v16 = vpop.xlane.xlu0 %2778  ;;  %v2798_v17 = vsel %vm1159_vm2, %v4155_v34, 0.0 }
 0xbce   : > { %v2783_v7 = vsub.f32 %v2767_v62, %v2779_v16  ;;  %2799 = vadd.xlane.f32.xlu1 %v2798_v17 }
 0xbd0   : > { %v2790_v18 = vmul.f32 1.442695, %v2783_v7 }
 0xbd2   : > { %4158 = vpow2.f32 %v2790_v18 }
 0xbd4   : > { %v4157_v19 = vpop.eup %4156 }
 0xbd5   : > { %v2795_v20 = vsel %vm1159_vm2, %v4157_v19, 0.0 }
 0xbd6   : > { %2796 = vadd.xlane.f32.xlu0 %v2795_v20 }
 0xbdc   : > { %v4159_v21 = vpop.eup %4158 }
 0xbdd   : > { %v2801_v22 = vsel %vm1159_vm2, %v4159_v21, 0.0 }
 0xbde   : > { %2802 = vadd.xlane.f32.xlu0 %v2801_v22  ;;  %v4129_v22 = vld [vmem:[%s4892_s9 + $0x28] sm:$0xff]  }
 0xc53   : > { %v2794_v23 = vpop.xlane.xlu1 %2793 }
 0xc54   : > { %4160 = vrcp.f32 %v2794_v23  ;;  %v4130_v23 = vld [vmem:[%s4892_s9 + $0x30] sm:$0xff]  }
 0xc5b   : > { %v2800_v24 = vpop.xlane.xlu1 %2799 }
 0xc5c   : > { %4162 = vrcp.f32 %v2800_v24 }
 0xc5e   : > { %v4161_v26 = vpop.eup %4160 }
 0xc5f   : > { %v4766_v29 = vmul.f32 %v4161_v26, %v4153_v9 }
 0xc61   : > { %v2812_v31 = vpack.c.bf16 %v4766_v29, %v4766_v29 }
 0xc63   : > { %4006 = vmatmul.mubr.msk.bf16.vlgmr.msra.gmra.mrb[72].mxu0 %vm1159_vm2, %v2812_v31  ;;  %v2797_v33 = vpop.xlane.xlu0 %2796 }
 0xc64   : > { %4016 = vmatpush3.bf16.msra.mxu0 %v2916_v15  ;;  %4164 = vrcp.f32 %v2797_v33  ;;  %4017 = vmatprep.mubr.msk.bf16.mxu0 %vm4181_vm0, %v4180_v1  ;;  %v3555_v15 = vld [vmem:[%s4889_s6 + $0x1] ss:$0 sm:$0xff] }
 0xc65   : > { %4027 = vmatprep.subr.bf16.mxu0 %v4180_v1 }
 0xc66   : > { %v4163_v35 = vpop.eup %4162 }
 0xc67   : > { %v2810_v36 = vmul.f32 %v4163_v35, %v4155_v34  ;;  %v3556_v35 = vld [vmem:[%s4890_s7 + $0x1] ss:$0 sm:$0xff] }
 0xc69   : > { %v2814_v11 = vpack.c.bf16 %v2810_v36, %v2810_v36 }
 0xc6b   : > { %4018 = vmatmul.mubr.msk.bf16.vlgmr.msra.gmra.mrb[76].mxu0 %vm1159_vm2, %v2814_v11  ;;  %v2803_v38 = vpop.xlane.xlu0 %2802 }
 0xc6c   : > { %4166 = vrcp.f32 %v2803_v38  ;;  %4031 = vmatprep.mubr.msk.bf16.mxu0 %vm4181_vm0, %v4180_v1  ;;  %4028 = vmatpush3.bf16.msra.mxu0 %v4124_v50 }
 0xc6d   : > { %4029 = vmatprep.subr.bf16.mxu0 %v4180_v1 }
 0xc6e   : > { %v4165_v39 = vpop.eup %4164 }
 0xc6f   : > { %v2809_v25 = vmul.f32 %v4165_v39, %v4157_v19 }
 0xc70   : > { %4030 = vmatpush3.bf16.msra.mxu0 %v4125_v55 }
 0xc71   : > { %v2813_v42 = vpack.c.bf16 %v2809_v25, %v2809_v25  ;;  %4043 = vmatprep.subr.bf16.mxu0 %v4180_v1 }
 0xc73   : > { %4012 = vmatmul.mubr.msk.bf16.vlgmr.msra.gmra.mrb[84].mxu1 %vm1159_vm2, %v2813_v42 }
 0xc74   : > { %4022 = vmatpush3.bf16.msra.mxu1 %v2962_v43  ;;  %4023 = vmatprep.mubr.msk.bf16.mxu1 %vm4181_vm0, %v4180_v1 }
 0xc75   : > { %4035 = vmatprep.subr.bf16.mxu1 %v4180_v1 }
 0xc76   : > { %v4167_v44 = vpop.eup %4166 }
 0xc77   : > { %v4785_v45 = vmul.f32 %v4167_v44, %v4159_v21  ;;  %v4127_v21 = vld [vmem:[%s4891_s8 + $0x18] sm:$0xff]  }
 0xc79   : > { %v2815_v46 = vpack.c.bf16 %v4785_v45, %v4785_v45 }
 0xc7b   : > { %4024 = vmatmul.mubr.msk.bf16.vlgmr.msra.gmra.mrb[88].mxu1 %vm1159_vm2, %v2815_v46 }
 0xc7c   : > { %4039 = vmatprep.mubr.msk.bf16.mxu1 %vm4181_vm0, %v4180_v1 }
 0xd36   : > { %v2860_v30 = vpop.f32.mrb[72].mxu0 }
 0xd37   : > { %v4007_v47 = vpop.f32.mrb[73].mxu0 }
 0xd38   : > { %v2863_v48 = vpop.f32.mrb[74].mxu0 }
 0xd39   : > { %v4008_v49 = vpop.f32.mrb[75].mxu0 }
 0xd3e   : > { %v2952_v51 = vpop.f32.mrb[76].mxu0 }
 0xd3f   : > { %v4019_v52 = vpop.f32.mrb[77].mxu0  ;;  %3009 = vrot.lane.b32.xlu0 %v2952_v51, %s4182_s27 }
 0xd40   : > { %v2955_v53 = vpop.f32.mrb[78].mxu0 }
 0xd41   : > { %v4020_v54 = vpop.f32.mrb[79].mxu0 }
 0xd46   : > { %v2906_v56 = vpop.f32.mrb[84].mxu1 }
 0xd47   : > { %3005 = vrot.lane.b32.xlu1 %v2906_v56, %s4183_s30  ;;  %v4013_v57 = vpop.f32.mrb[85].mxu1 }
 0xd48   : > { %v2909_v58 = vpop.f32.mrb[86].mxu1 }
 0xd49   : > { %v4014_v59 = vpop.f32.mrb[87].mxu1 }
 0xd4e   : > { %v2998_v60 = vpop.f32.mrb[88].mxu1 }
 0xd4f   : > { %3013 = vrot.lane.b32.xlu1 %v2998_v60, %s4184_s14  ;;  %v4025_v61 = vpop.f32.mrb[89].mxu1 }
 0xd50   : > { %v3001_v62 = vpop.f32.mrb[90].mxu1 }
 0xd51   : > { %v4026_v63 = vpop.f32.mrb[91].mxu1 }
 0xdb1   : > { %v3010_v4 = vpop.permute.xlu0 %3009 }
 0xdb9   : > { %v3006_v0 = vpop.permute.xlu1 %3005 }
 0xdba   : > { %v3016_v3 = vsel %vm1159_vm2, %v2860_v30, %v3006_v0 }
 0xdbb   : > { %v3017_v5 = vsel %vm1608_vm5, %v3016_v3, %v3010_v4 }
 0xdc1   : > { %v3014_v6 = vpop.permute.xlu1 %3013 }
 0xdc2   : > { %v3018_v8 = vsel %vm1610_vm6, %v3017_v5, %v3014_v6 }
 0xdc3   : > { %v3019_v9 = vpack.c.bf16 %v3018_v8, %v3018_v8 }
 0xdc5   : > { %4032 = vmatmul.mubr.msk.bf16.vlgmr.msra.gmra.mrb[80].mxu0 %vm535_vm1, %v3019_v9  ;;  %v3581_v9 = vld [vmem:[%s4894_s11 + $0x1] ss:$0 sm:$0xff] }
 0xdc6   : > { %4051 = vmatprep.mubr.msk.bf16.mxu0 %vm4181_vm0, %v4180_v1 }
 0xe98   : > { %v3069_v10 = vpop.f32.mrb[80].mxu0 }
 0xe99   : > { %v3075_v12 = vadd.f32 %v3069_v10, %v4590_v2  ;;  %v4033_v13 = vpop.f32.mrb[81].mxu0  ;;  %v4126_v2 = vld [vmem:[%s4891_s8 + $0x10] sm:$0xff]  }
 0xe9a   : > { %v3072_v14 = vpop.f32.mrb[82].mxu0  ;;  %4036 = vmatpush3.bf16.msra.mxu1 %v4126_v2 }
 0xe9b   : > { %v4034_v34 = vpop.f32.mrb[83].mxu0  ;;  %v3091_v16 = vsel %vm535_vm1, %v3075_v12, 0.0  ;;  %4037 = vmatprep.subr.bf16.mxu1 %v4180_v1 }
 0xe9c   : > { %3092 = vadd.xlane.f32.xlu1 %v3091_v16 }
 0xe9e   : > { %4038 = vmatpush3.bf16.msra.mxu1 %v4127_v21 }
 0xead   : > { %3077 = vrot.lane.b32.xlu1 %v2809_v25, %s4183_s30 }
 0xeb1   : > { %1674 = vrot.lane.b32.xlu1 %v4485_v32, %s4182_s27  ;;  %v4128_v32 = vld [vmem:[%s4892_s9 + $0x20] sm:$0xff]  }
 0xeb2   : > { %4044 = vmatpush3.bf16.msra.mxu0 %v4128_v32 }
 0xeb3   : > { %4045 = vmatprep.subr.bf16.mxu0 %v4180_v1 }
 0xeb5   : > { %3081 = vrot.lane.b32.xlu1 %v2810_v36, %s4182_s27  ;;  %s3584_s27 = sshll.u32 %s4898_s26, 4 }
 0xeb6   : > { %4046 = vmatpush3.bf16.msra.mxu0 %v4129_v22 }
 0xeb7   : > { %4047 = vmatprep.subr.bf16.mxu0 %v4180_v1 }
 0xeba   : > { %4048 = vmatpush3.bf16.msra.mxu0 %v4130_v23 }
 0xebb   : > { %4049 = vmatprep.subr.bf16.mxu0 %v4180_v1  ;;  %v4131_v1 = vld [vmem:[%s4892_s9 + $0x38] sm:$0xff]  }
 0xebe   : > { %4050 = vmatpush3.bf16.msra.mxu0 %v4131_v1 }
 0xf29   : > { %v3093_v17 = vpop.xlane.xlu1 %3092 }
 0xf2a   : > { %v3094_v7 = vmul.f32 0.03125, %v3093_v17 }
 0xf2c   : > { %v3095_v18 = vsub.f32 %v3075_v12, %v3094_v7 }
 0xf2d   : > { %v3078_v52 = vpop.permute.xlu1 %3077 }
 0xf2e   : > { %v3096_v19 = vmul.f32 %v3095_v18, %v3095_v18  ;;  %v3088_v63 = vsel %vm1159_vm2, %v4766_v29, %v3078_v52 }
 0xf30   : > { %v3097_v20 = vsel %vm535_vm1, %v3096_v19, 0.0 }
 0xf31   : > { %3098 = vadd.xlane.f32.xlu0 %v3097_v20  ;;  %v1675_v58 = vpop.permute.xlu1 %1674 }
 0xfbe   : > { %v3099_v24 = vpop.xlane.xlu0 %3098 }
 0xfbf   : > { %v3100_v26 = vmul.f32 0.03125, %v3099_v24 }
 0xfc1   : > { %v3101_v28 = vadd.f32 1e-05, %v3100_v26 }
 0xfc3   : > { %4168 = vrsqrt.f32 %v3101_v28 }
 0xfcd   : > { %v4169_v31 = vpop.eup %4168 }
 0xfce   : > { %v3103_v33 = vmul.f32 %v4169_v31, %v3095_v18 }
 0xfd0   : > { %v3110_v36 = vmul.f32 %v3555_v15, %v3103_v33 }
 0xfd2   : > { %v3117_v11 = vadd.f32 %v3556_v35, %v3110_v36 }
 0xfd4   : > { %v3138_v38 = vpack.c.bf16 %v3117_v11, %v3117_v11 }
 0xfd6   : > { %4040 = vmatmul.mubr.msk.bf16.vlgmr.msra.gmra.mrb[92].mxu1 %vm535_vm1, %v3138_v38 }
0x10a9   : > { %v3188_v39 = vpop.f32.mrb[92].mxu1 }
0x10aa   : > { %v3194_v40 = vmax.f32 %v3188_v39, 0.0  ;;  %v4041_v25 = vpop.f32.mrb[93].mxu1 }
0x10ab   : > { %v3191_v42 = vpop.f32.mrb[94].mxu1 }
0x10ac   : > { %v3195_v43 = vpack.c.bf16 %v3194_v40, %v3194_v40  ;;  %v4042_v44 = vpop.f32.mrb[95].mxu1 }
0x10ae   : > { %4052 = vmatmul.mubr.msk.bf16.vlgmr.msra.gmra.mrb[84].mxu0 %vm1809_vm7, %v3195_v43 }
0x1181   : > { %v3257_v46 = vpop.f32.mrb[84].mxu0 }
0x1182   : > { %v3258_v30 = vadd.f32 %v3257_v46, %v3117_v11  ;;  %v4053_v47 = vpop.f32.mrb[85].mxu0 }
0x1183   : > { %v3260_v48 = vpop.f32.mrb[86].mxu0 }
0x1184   : > { %v4054_v49 = vpop.f32.mrb[87].mxu0  ;;  %v3263_v50 = vsel %vm535_vm1, %v3258_v30, 0.0 }
0x1185   : > { %3264 = vadd.xlane.f32.xlu0 %v3263_v50 }
0x119b   : > { %1670 = vrot.lane.b32.xlu0 %v4494_v37, %s4183_s30  ;;  %s462_s30 = scalar_lea.vmem %s4896_s13, %s3584_s27 }
0x119f   : > { %1678 = vrot.lane.b32.xlu0 %v4503_v41, %s4184_s14 }
0x1212   : > { %v3265_v51 = vpop.xlane.xlu0 %3264 }
0x1213   : > { %v3266_v53 = vmul.f32 0.03125, %v3265_v51 }
0x1215   : > { %v3267_v54 = vsub.f32 %v3258_v30, %v3266_v53 }
0x1216   : > { %v1671_v55 = vpop.permute.xlu0 %1670 }
0x1217   : > { %v1681_v56 = vsel %vm1159_vm2, %v4476_v27, %v1671_v55  ;;  %v3268_v57 = vmul.f32 %v3267_v54, %v3267_v54  ;;  %v3082_v27 = vpop.permute.xlu1 %3081 }
0x1218   : > { %v1682_v37 = vsel %vm1608_vm5, %v1681_v56, %v1675_v58  ;;  %v3089_v3 = vsel %vm1608_vm5, %v3088_v63, %v3082_v27 }
0x1219   : > { %v3269_v59 = vsel %vm535_vm1, %v3268_v57, 0.0 }
0x121a   : > { %3270 = vadd.xlane.f32.xlu1 %v3269_v59  ;;  %v1679_v41 = vpop.permute.xlu0 %1678 }
0x121b   : > { %v1683_v60 = vsel %vm1610_vm6, %v1682_v37, %v1679_v41 }
0x121c   : > { %1712 = vst.msk [vmem:[%s462_s30] sm:$0xff] %vm535_vm1, %v1683_v60 }
0x122b   : > { %3085 = vrot.lane.b32.xlu1 %v4785_v45, %s4184_s14  ;;  %v3580_v45 = vld [vmem:[%s4893_s10 + $0x1] ss:$0 sm:$0xff] }
0x12a7   : > { %v3271_v61 = vpop.xlane.xlu1 %3270 }
0x12a8   : > { %v3272_v62 = vmul.f32 0.03125, %v3271_v61 }
0x12aa   : > { %v3273_v0 = vadd.f32 1e-05, %v3272_v62 }
0x12ab   : > { %v3086_v4 = vpop.permute.xlu1 %3085 }
0x12ac   : > { %4170 = vrsqrt.f32 %v3273_v0  ;;  %v3090_v5 = vsel %vm1610_vm6, %v3089_v3, %v3086_v4 }
0x12ad   : > { %3557 = vst.msk [vmem:[%s462_s30 + $0x8] sm:$0xff] %vm535_vm1, %v3090_v5 }
0x12b6   : > { %v4171_v6 = vpop.eup %4170 }
0x12b7   : > { %v3275_v8 = vmul.f32 %v4171_v6, %v3267_v54 }
0x12b9   : > { %v3282_v29 = vmul.f32 %v3580_v45, %v3275_v8 }
0x12bb   : > { %v3289_v10 = vadd.f32 %v3581_v9, %v3282_v29 }
0x12bd   : > { %3290 = vst.msk [vmem:[%s457_s22] sm:$0xff] %vm535_vm1, %v3289_v10 }
0x12be PF: > { %s24_s25 = sadd.s32 1, %s4178_s25  }
0x12bf   : > { %p21_p4 = scmp.ge.s32.totalorder %s24_s25, 4  }
0x12c1   :  { %23 = sbr.rel (!%p21_p4) target bundleno = 1 (0x1), region = 124 }

// kernel: transformer_forward.3
= control target key start
LH: loop header
LB: loop body
LE: loop exit
PB: predicated region body
PF: predicated region fallthrough
CT: control target
= control target key end

     0   :  { %s9281_s0 = inlined_call_operand.vmem [shape: f32[2,8,32], index: 0, kind: input, shape index: {}]   ;;  %s9282_s1 = inlined_call_operand.vmem [shape: s32[2,1,8], index: 1, kind: input, shape index: {}]   ;;  %s9283_s2 = inlined_call_operand.vmem [shape: s32[2,1,8], index: 2, kind: input, shape index: {}]   ;;  %s9284_s3 = inlined_call_operand.vmem [shape: f32[2,8,32], index: 3, kind: input, shape index: {}]   ;;  %s9285_s4 = inlined_call_operand.vmem [shape: bf16[2,4,32,8], index: 4, kind: input, shape index: {}]   ;;  %s9286_s5 = inlined_call_operand.vmem [shape: bf16[2,4,32,8], index: 5, kind: input, shape index: {}]   ;;  %s9287_s6 = inlined_call_operand.vmem [shape: bf16[2,4,32,8], index: 6, kind: input, shape index: {}]   ;;  %s9288_s7 = inlined_call_operand.vmem [shape: bf16[2,32,32], index: 7, kind: input, shape index: {}]   ;;  %s9289_s8 = inlined_call_operand.vmem [shape: f32[2,1,32], index: 8, kind: input, shape index: {}]   ;;  %s9290_s9 = inlined_call_operand.vmem [shape: f32[2,1,32], index: 9, kind: input, shape index: {}]   ;;  %s9291_s10 = inlined_call_operand.vmem [shape: bf16[2,4,32,8], index: 10, kind: input, shape index: {}]   ;;  %s9292_s11 = inlined_call_operand.vmem [shape: bf16[2,4,32,8], index: 11, kind: input, shape index: {}]   ;;  %s9293_s12 = inlined_call_operand.vmem [shape: bf16[2,4,32,8], index: 12, kind: input, shape index: {}]   ;;  %s9294_s13 = inlined_call_operand.vmem [shape: bf16[2,32,32], index: 13, kind: input, shape index: {}]   ;;  %s9295_s14 = inlined_call_operand.vmem [shape: f32[2,1,32], index: 14, kind: input, shape index: {}]   ;;  %s9296_s15 = inlined_call_operand.vmem [shape: f32[2,1,32], index: 15, kind: input, shape index: {}]   ;;  %s9297_s16 = inlined_call_operand.vmem [shape: bf16[2,32,64], index: 16, kind: input, shape index: {}]   ;;  %s9298_s17 = inlined_call_operand.vmem [shape: bf16[2,64,32], index: 17, kind: input, shape index: {}]   ;;  %s9299_s18 = inlined_call_operand.vmem [shape: f32[2,1,32], index: 18, kind: input, shape index: {}]   ;;  %s9300_s19 = inlined_call_operand.vmem [shape: f32[2,1,32], index: 19, kind: input, shape index: {}]   ;;  %s9301_s20 = inlined_call_operand.vmem [shape: bf16[32,128], index: 20, kind: input, shape index: {}]   ;;  %s9302_s21 = inlined_call_operand.hbm [shape: f32[2,8,128], index: 21, kind: output, shape index: {0}]   ;;  %s9303_s22 = inlined_call_operand.vmem [shape: f32[2,2,8,32], index: 22, kind: output, shape index: {1}]   ;;  %s9304_s23 = inlined_call_operand.vmem [shape: f32[2,2,8,32], index: 23, kind: output, shape index: {2}]  }
   0x1   :  { %9328 = sst [smem:[#allocation13_spill]] %s9281_s0 }
   0x2   :  { %9329 = sst [smem:[#allocation14_spill]] %s9282_s1 }
   0x3   :  { %9330 = sst [smem:[#allocation15_spill]] %s9283_s2 }
   0x4   :  { %9331 = sst [smem:[#allocation16_spill]] %s9284_s3 }
   0x5   :  { %9332 = sst [smem:[#allocation17_spill]] %s9285_s4 }
   0x6   :  { %9333 = sst [smem:[#allocation18_spill]] %s9286_s5 }
   0x7   :  { %9334 = sst [smem:[#allocation19_spill]] %s9287_s6 }
   0x8   :  { %9335 = sst [smem:[#allocation20_spill]] %s9288_s7 }
   0x9   :  { %9336 = sst [smem:[#allocation21_spill]] %s9302_s21 }
   0xa   :  { %9337 = sst [smem:[#allocation22_spill]] %s9304_s23 }
   0xb   :  { %29 = vsyncpa [#allocation3], 0 }
   0xc   :  { %31 = vsyncpa [#allocation3 + $0x1], 0  ;;  %s8010_s4 = smov 0   ;;  %s8012_s30 = smov 0  }
   0xd   :  { %s8014_s24 = smov 0   ;;  %s8016_s25 = smov 0  }
   0xe LB: > { %9338 = sst [smem:[#allocation5_spill]] %s7870_s4  ;;  %s8031_s5 = sadd.s32 4294967295, %s7882_s25   ;;  %s7882_s25 = sphi %s8016_s25, %s9368_s25   ;;  %s7878_s24 = sphi %s8014_s24, %s9370_s24   ;;  %s7874_s30 = sphi %s8012_s30, %s9372_s30   ;;  %s7870_s4 = sphi %s8010_s4, %s9371_s4  }
   0xf   : > { %9339 = sst [smem:[#allocation6_spill]] %s7878_s24  ;;  %s6326_s1 = sadd.s32 4294967294, %s7882_s25  }
  0x10   : > { %9340 = sst [smem:[#allocation7_spill]] %s7882_s25  ;;  %s8035_s26 = sadd.s32 1, %s7882_s25  }
  0x11   : > { %9341 = sst [smem:[#allocation8_spill]] %s8031_s5  ;;  %s505_s2 = sadd.s32 1, %s7878_s24 }
  0x12   : > { %9342 = sst [smem:[#allocation9_spill]] %s8035_s26  ;;  %s502_s6 = ssub.s32 %s7882_s25, %s8035_s26 }
  0x13   : > { %p515_p0 = scmp.ne.s32.totalorder %s7878_s24, %s7874_s30  ;;  %p503_p1 = scmp.eq.s32.totalorder %s502_s6, 0 }
  0x14   : > { %p516_p2 = scmp.eq.s32.totalorder %s8031_s5, 1  ;;  %p521_p3 = scmp.ne.s32.totalorder %s7874_s30, %s7870_s4 }
  0x15   : > { %p522_p4 = scmp.eq.s32.totalorder %s6326_s1, 1  ;;  %p6329_p7 = scmp.ge.s32.totalorder %s7882_s25, 1 }
  0x16   : > { %s8046_s27 = scalar_select %p503_p1, %s7878_s24, %s505_s2  }
  0x17   : > { %p8048_p5 = por %p516_p2, %p515_p0  ;;  %p8052_p6 = por %p522_p4, %p521_p3 }
  0x18   : > { %9343 = sst [smem:[#allocation10_spill]] %s8046_s27  ;;  %p669_p8 = scmp.lt.s32.totalorder %s7882_s25, 3 }
  0x19   : > { %s9344_s7 = scalar_select %p8048_p5, 1, 0 }
  0x1a   : > { %s9346_s28 = scalar_select %p8052_p6, 1, 0 }
  0x1b   : > { %9345 = sst [smem:[#allocation11_spill]] %s9344_s7  ;;  %p670_p9 = pnand %p6329_p7, %p669_p8 }
  0x1c   : > { %9347 = sst [smem:[#allocation12_spill]] %s9346_s28  ;;  %s9348_s0 = sld [smem:[#allocation17_spill]] (!%p670_p9)  ;;  %v7884_v1 = vmov (!%p670_p9), 0.0   ;;  %vm7885_vm0 = vmmov (!%p670_p9), 0   ;;  %vm865_vm1 = vcmask (!%p670_p9), 261120   ;;  %vm1489_vm2 = vcmask (!%p670_p9), 64512  }
  0x1d   : > { %673 = sbr.rel (%p670_p9) target bundleno = 8328 (0x2088), region = 104  ;;  %6925 = vmatprep.subr.bf16.mxu0 (!%p670_p9), %v7884_v1  ;;  %6933 = vmatprep.subr.bf16.mxu1 (!%p670_p9), %v7884_v1  ;;  %p752_p10 = scmp.lt.s32.totalorder (!%p670_p9), %s8031_s5, 1  ;;  %vm1737_vm3 = vcmask (!%p670_p9), 1043456   ;;  %vm1932_vm6 = vcmask (!%p670_p9), 130048   ;;  %vm1934_vm7 = vcmask (!%p670_p9), 195584   ;;  %vm3375_vm9 = vcmask (!%p670_p9), 523264  }
  0x1e   : > { %6929 = vmatprep.mubr.msk.bf16.mxu0 (!%p670_p9), %vm7885_vm0, %v7884_v1  ;;  %6937 = vmatprep.mubr.msk.bf16.mxu1 (!%p670_p9), %vm7885_vm0, %v7884_v1  ;;  %s9349_s24 = sld [smem:[#allocation13_spill]] (!%p670_p9)  ;;  %s9350_s3 = sld [smem:[#allocation18_spill]] (!%p670_p9) }
  0x1f   : > { %s9351_s4 = sld [smem:[#allocation19_spill]] (!%p670_p9)  ;;  %s9354_s29 = sld [smem:[#allocation20_spill]] (!%p670_p9) }
  0x20   : > { %s9358_s6 = smov (!%p670_p9), 8   ;;  %s9359_s25 = smov (!%p670_p9), 16  }
  0x21   : > { %s9362_s21 = sld [smem:[#allocation8_spill]] (!%p670_p9) }
  0x22   : > { %v7625_v0 = vld [vmem:[%s9348_s0] sm:$0xff] (!%p670_p9)   ;;  %v7626_v2 = vld [vmem:[%s9348_s0 + $0x10] sm:$0xff] (!%p670_p9)   ;;  %v7627_v3 = vld [vmem:[%s9348_s0 + $0x8] sm:$0xff] (!%p670_p9)  }
  0x23   : > { %6926 = vmatpush3.bf16.msra.mxu0 (!%p670_p9), %v7625_v0  ;;  %6934 = vmatpush3.bf16.msra.mxu1 (!%p670_p9), %v7626_v2  ;;  %v7628_v4 = vld [vmem:[%s9348_s0 + $0x18] sm:$0xff] (!%p670_p9)   ;;  %v7629_v5 = vld [vmem:[%s9348_s0 + $0x20] sm:$0xff] (!%p670_p9)   ;;  %v7630_v7 = vld [vmem:[%s9348_s0 + $0x30] sm:$0xff] (!%p670_p9)  }
  0x24   : > { %6927 = vmatprep.subr.bf16.mxu0 %v7884_v1  ;;  %6935 = vmatprep.subr.bf16.mxu1 %v7884_v1  ;;  %s8080_s1 = scalar_select %p752_p10, %s8031_s5, 1  ;;  %v7631_v9 = vld [vmem:[%s9348_s0 + $0x28] sm:$0xff]   ;;  %v7632_v10 = vld [vmem:[%s9348_s0 + $0x38] sm:$0xff]   ;;  %v7633_v11 = vld [vmem:[%s9350_s3] sm:$0xff]  }
  0x25   : > { %v7634_v12 = vld [vmem:[%s9350_s3 + $0x10] sm:$0xff]   ;;  %v7635_v13 = vld [vmem:[%s9350_s3 + $0x8] sm:$0xff]   ;;  %v7636_v14 = vld [vmem:[%s9350_s3 + $0x18] sm:$0xff]   ;;  %s9352_s28 = smov %s9351_s4  ;;  %s9361_s5 = sld [smem:[#allocation22_spill]] }
  0x26   : > { %s9314_s27 = sshll.u32 %s8080_s1, 3  ;;  %v7637_v15 = vld [vmem:[%s9350_s3 + $0x20] sm:$0xff]   ;;  %v7638_v16 = vld [vmem:[%s9350_s3 + $0x30] sm:$0xff]   ;;  %v7639_v17 = vld [vmem:[%s9350_s3 + $0x28] sm:$0xff]  }
  0x27   : > { %6928 = vmatpush3.bf16.msra.mxu0 %v7627_v3  ;;  %6936 = vmatpush3.bf16.msra.mxu1 %v7628_v4  ;;  %s8088_s26 = scalar_lea.vmem %s9349_s24, %s9314_s27  ;;  %v7640_v18 = vld [vmem:[%s9350_s3 + $0x38] sm:$0xff]   ;;  %v7641_v19 = vld [vmem:[%s9351_s4] sm:$0xff]   ;;  %v7642_v20 = vld [vmem:[%s9352_s28 + $0x10] sm:$0xff]   ;;  %s9353_s24 = sld [smem:[#allocation14_spill]] }
  0x28   : > { %6941 = vmatprep.subr.bf16.mxu0 %v7884_v1  ;;  %v777_v6 = vld [vmem:[%s8088_s26] sm:$0xff]  ;;  %6949 = vmatprep.subr.bf16.mxu1 %v7884_v1  ;;  %v7643_v21 = vld [vmem:[%s9352_s28 + $0x8] sm:$0xff]   ;;  %v7644_v22 = vld [vmem:[%s9352_s28 + $0x18] sm:$0xff]   ;;  %s9321_s4 = smov 8   ;;  %s9357_s27 = sld [smem:[#allocation15_spill]] }
  0x29   : > { %v8099_v8 = vpack.c.bf16 %v777_v6, %v777_v6  ;;  %v7645_v23 = vld [vmem:[%s9352_s28 + $0x20] sm:$0xff]   ;;  %v7646_v24 = vld [vmem:[%s9352_s28 + $0x30] sm:$0xff]   ;;  %v7647_v25 = vld [vmem:[%s9352_s28 + $0x28] sm:$0xff]  }
  0x2a   : > { %v7648_v26 = vld [vmem:[%s9352_s28 + $0x38] sm:$0xff]  }
  0x2b   : > { %6930 = vmatmul.mubr.msk.bf16.vlgmr.msra.gmra.mrb[0].mxu0 %vm865_vm1, %v8099_v8  ;;  %6938 = vmatmul.mubr.msk.bf16.vlgmr.msra.gmra.mrb[0].mxu1 %vm865_vm1, %v8099_v8 }
  0x2c   : > { %6942 = vmatpush3.bf16.msra.mxu0 %v7629_v5  ;;  %6950 = vmatpush3.bf16.msra.mxu1 %v7630_v7 }
  0x2d   : > { %6943 = vmatprep.subr.bf16.mxu0 %v7884_v1  ;;  %6951 = vmatprep.subr.bf16.mxu1 %v7884_v1  ;;  %s758_s2 = scalar_lea.vmem %s9353_s24, %s8080_s1  ;;  %s9319_s24 = smov 16  }
  0x2e   : > { %6945 = vmatprep.mubr.msk.bf16.mxu0 %vm7885_vm0, %v7884_v1  ;;  %6953 = vmatprep.mubr.msk.bf16.mxu1 %vm7885_vm0, %v7884_v1 }
  0x30   : > { %6944 = vmatpush3.bf16.msra.mxu0 %v7631_v9  ;;  %6952 = vmatpush3.bf16.msra.mxu1 %v7632_v10 }
  0x31   : > { %6957 = vmatprep.subr.bf16.mxu0 %v7884_v1  ;;  %6965 = vmatprep.subr.bf16.mxu1 %v7884_v1 }
  0x33   : > { %6946 = vmatmul.mubr.msk.bf16.vlgmr.msra.gmra.mrb[4].mxu0 %vm865_vm1, %v8099_v8  ;;  %6954 = vmatmul.mubr.msk.bf16.vlgmr.msra.gmra.mrb[4].mxu1 %vm865_vm1, %v8099_v8 }
  0x34   : > { %6958 = vmatpush3.bf16.msra.mxu0 %v7633_v11  ;;  %6966 = vmatpush3.bf16.msra.mxu1 %v7634_v12 }
  0x35   : > { %6959 = vmatprep.subr.bf16.mxu0 %v7884_v1  ;;  %6967 = vmatprep.subr.bf16.mxu1 %v7884_v1 }
  0x36   : > { %6961 = vmatprep.mubr.msk.bf16.mxu0 %vm7885_vm0, %v7884_v1  ;;  %6969 = vmatprep.mubr.msk.bf16.mxu1 %vm7885_vm0, %v7884_v1 }
  0x38   : > { %6960 = vmatpush3.bf16.msra.mxu0 %v7635_v13  ;;  %6968 = vmatpush3.bf16.msra.mxu1 %v7636_v14 }
  0x39   : > { %6973 = vmatprep.subr.bf16.mxu0 %v7884_v1  ;;  %6981 = vmatprep.subr.bf16.mxu1 %v7884_v1 }
  0x3b   : > { %6962 = vmatmul.mubr.msk.bf16.vlgmr.msra.gmra.mrb[8].mxu0 %vm865_vm1, %v8099_v8  ;;  %6970 = vmatmul.mubr.msk.bf16.vlgmr.msra.gmra.mrb[8].mxu1 %vm865_vm1, %v8099_v8 }
  0x3c   : > { %6974 = vmatpush3.bf16.msra.mxu0 %v7637_v15  ;;  %6982 = vmatpush3.bf16.msra.mxu1 %v7638_v16 }
  0x3d   : > { %6975 = vmatprep.subr.bf16.mxu0 %v7884_v1  ;;  %6983 = vmatprep.subr.bf16.mxu1 %v7884_v1 }
  0x3e   : > { %6977 = vmatprep.mubr.msk.bf16.mxu0 %vm7885_vm0, %v7884_v1  ;;  %6985 = vmatprep.mubr.msk.bf16.mxu1 %vm7885_vm0, %v7884_v1 }
  0x40   : > { %6976 = vmatpush3.bf16.msra.mxu0 %v7639_v17  ;;  %6984 = vmatpush3.bf16.msra.mxu1 %v7640_v18 }
  0x41   : > { %6989 = vmatprep.subr.bf16.mxu0 %v7884_v1  ;;  %6997 = vmatprep.subr.bf16.mxu1 %v7884_v1 }
  0x43   : > { %6978 = vmatmul.mubr.msk.bf16.vlgmr.msra.gmra.mrb[12].mxu0 %vm865_vm1, %v8099_v8  ;;  %6986 = vmatmul.mubr.msk.bf16.vlgmr.msra.gmra.mrb[12].mxu1 %vm865_vm1, %v8099_v8 }
  0x44   : > { %6990 = vmatpush3.bf16.msra.mxu0 %v7641_v19  ;;  %6998 = vmatpush3.bf16.msra.mxu1 %v7642_v20 }
  0x45   : > { %6991 = vmatprep.subr.bf16.mxu0 %v7884_v1  ;;  %6999 = vmatprep.subr.bf16.mxu1 %v7884_v1 }
  0x46   : > { %6993 = vmatprep.mubr.msk.bf16.mxu0 %vm7885_vm0, %v7884_v1  ;;  %7001 = vmatprep.mubr.msk.bf16.mxu1 %vm7885_vm0, %v7884_v1 }
  0x48   : > { %6992 = vmatpush3.bf16.msra.mxu0 %v7643_v21  ;;  %7000 = vmatpush3.bf16.msra.mxu1 %v7644_v22 }
  0x49   : > { %7005 = vmatprep.subr.bf16.mxu0 %v7884_v1  ;;  %7013 = vmatprep.subr.bf16.mxu1 %v7884_v1 }
  0x4b   : > { %6994 = vmatmul.mubr.msk.bf16.vlgmr.msra.gmra.mrb[16].mxu0 %vm865_vm1, %v8099_v8  ;;  %7002 = vmatmul.mubr.msk.bf16.vlgmr.msra.gmra.mrb[16].mxu1 %vm865_vm1, %v8099_v8 }
  0x4c   : > { %7006 = vmatpush3.bf16.msra.mxu0 %v7645_v23  ;;  %7009 = vmatprep.mubr.msk.bf16.mxu0 %vm7885_vm0, %v7884_v1 }
  0x4d   : > { %7007 = vmatprep.subr.bf16.mxu0 %v7884_v1  ;;  %7014 = vmatpush3.bf16.msra.mxu1 %v7646_v24 }
  0x4e   : > { %7017 = vmatprep.mubr.msk.bf16.mxu1 %vm7885_vm0, %v7884_v1  ;;  %7015 = vmatprep.subr.bf16.mxu1 %v7884_v1 }
  0x50   : > { %7008 = vmatpush3.bf16.msra.mxu0 %v7647_v25 }
  0x51   : > { %7016 = vmatpush3.bf16.msra.mxu1 %v7648_v26  ;;  %7021 = vmatprep.subr.bf16.mxu0 %v7884_v1 }
  0x52   : > { %7027 = vmatprep.subr.bf16.mxu1 %v7884_v1 }
  0x53   : > { %7010 = vmatmul.mubr.msk.bf16.vlgmr.msra.gmra.mrb[20].mxu0 %vm865_vm1, %v8099_v8 }
  0x54   : > { %7018 = vmatmul.mubr.msk.bf16.vlgmr.msra.gmra.mrb[20].mxu1 %vm865_vm1, %v8099_v8  ;;  %7023 = vmatprep.mubr.msk.bf16.mxu0 %vm7885_vm0, %v7884_v1 }
  0x55   : > { %7029 = vmatprep.mubr.msk.bf16.mxu1 %vm7885_vm0, %v7884_v1 }
  0xfe   : > { %v903_v27 = vpop.f32.mrb[0].mxu0  ;;  %v955_v28 = vpop.f32.mrb[0].mxu1 }
  0xff   : > { %v6931_v29 = vpop.f32.mrb[1].mxu0  ;;  %v6939_v30 = vpop.f32.mrb[1].mxu1  ;;  %v1481_v57 = vpack.c.bf16 %v903_v27, %v903_v27  ;;  %v1482_v58 = vpack.c.bf16 %v955_v28, %v955_v28  ;;  %v784_v28 = vlaneseq }
 0x100   : > { %v906_v31 = vpop.f32.mrb[2].mxu0  ;;  %v958_v32 = vpop.f32.mrb[2].mxu1  ;;  %v779_v29 = vld [vmem:[%s758_s2] sm:$0x1]  ;;  %s9317_s2 = smov 24  }
 0x101   : > { %v6932_v33 = vpop.f32.mrb[3].mxu0  ;;  %v6940_v34 = vpop.f32.mrb[3].mxu1  ;;  %v8255_v30 = vshrl.u32 %v784_v28, 7  ;;  %vm781_vm4 = vcmp.eq.s32.totalorder %v779_v29, 0 }
 0x102   : > { %v782_v32 = vsel %vm781_vm4, -1e+09, %v7884_v1  ;;  %v792_v33 = vand.u32 127, %v784_v28 }
 0x103   : > { %v786_v31 = vsub.s32 0, %v8255_v30 }
 0x104   : > { %vm793_vm5 = vcmp.gt.s32.totalorder %v792_v33, %v8255_v30 }
 0x105   : > { %v787_v34 = vrot.slane %v782_v32, %v786_v31 }
 0x106   : > { %v1007_v35 = vpop.f32.mrb[4].mxu0  ;;  %v1059_v36 = vpop.f32.mrb[4].mxu1 }
 0x107   : > { %v6947_v37 = vpop.f32.mrb[5].mxu0  ;;  %v6955_v38 = vpop.f32.mrb[5].mxu1  ;;  %v1483_v6 = vpack.c.bf16 %v1007_v35, %v1007_v35  ;;  %v1484_v7 = vpack.c.bf16 %v1059_v36, %v1059_v36 }
 0x108   : > { %v1010_v39 = vpop.f32.mrb[6].mxu0  ;;  %v1062_v40 = vpop.f32.mrb[6].mxu1  ;;  %v8262_v37 = vsel %vm793_vm5, -1e+09, %v787_v34 }
 0x109   : > { %v6948_v41 = vpop.f32.mrb[7].mxu0  ;;  %v6956_v42 = vpop.f32.mrb[7].mxu1 }
 0x10e   : > { %v1111_v43 = vpop.f32.mrb[8].mxu0  ;;  %v1163_v44 = vpop.f32.mrb[8].mxu1 }
 0x10f   : > { %v1485_v45 = vpack.c.bf16 %v1111_v43, %v1111_v43  ;;  %v1486_v46 = vpack.c.bf16 %v1163_v44, %v1163_v44  ;;  %v6963_v47 = vpop.f32.mrb[9].mxu0  ;;  %v6971_v48 = vpop.f32.mrb[9].mxu1 }
 0x110   : > { %v1114_v49 = vpop.f32.mrb[10].mxu0  ;;  %v1166_v50 = vpop.f32.mrb[10].mxu1 }
 0x111   : > { %v1494_v51 = vsel %vm1489_vm2, %v1485_v45, 0  ;;  %v1540_v52 = vsel %vm1489_vm2, %v1486_v46, 0  ;;  %v6964_v53 = vpop.f32.mrb[11].mxu0  ;;  %v6972_v54 = vpop.f32.mrb[11].mxu1 }
 0x112   : > { %7022 = vmatpush3.bf16.xpose.msra.mxu0 %v1494_v51  ;;  %7028 = vmatpush3.bf16.xpose.msra.mxu1 %v1540_v52 }
 0x113   : > { %7033 = vmatprep.subr.bf16.mxu0 %v7884_v1  ;;  %7039 = vmatprep.subr.bf16.mxu1 %v7884_v1 }
 0x116   : > { %v1215_v55 = vpop.f32.mrb[12].mxu0  ;;  %v1267_v56 = vpop.f32.mrb[12].mxu1 }
 0x117   : > { %v1487_v59 = vpack.c.bf16 %v1215_v55, %v1215_v55  ;;  %v1488_v60 = vpack.c.bf16 %v1267_v56, %v1267_v56  ;;  %v6979_v61 = vpop.f32.mrb[13].mxu0  ;;  %v6987_v62 = vpop.f32.mrb[13].mxu1 }
 0x118   : > { %v1218_v63 = vpop.f32.mrb[14].mxu0  ;;  %v1270_v0 = vpop.f32.mrb[14].mxu1 }
 0x119   : > { %v1586_v2 = vsel %vm1489_vm2, %v1487_v59, 0  ;;  %v1632_v3 = vsel %vm1489_vm2, %v1488_v60, 0  ;;  %v6980_v4 = vpop.f32.mrb[15].mxu0  ;;  %7024 = vmatmul.mubr.msk.bf16.vlgmr.msra.gmra.mrb[24].mxu0 %vm1489_vm2, %v1481_v57  ;;  %7030 = vmatmul.mubr.msk.bf16.vlgmr.msra.gmra.mrb[24].mxu1 %vm1489_vm2, %v1482_v58  ;;  %v6988_v5 = vpop.f32.mrb[15].mxu1 }
 0x11a   : > { %7034 = vmatpush3.bf16.xpose.msra.mxu0 %v1586_v2  ;;  %7040 = vmatpush3.bf16.xpose.msra.mxu1 %v1632_v3 }
 0x11b   : > { %7035 = vmatprep.mubr.msk.bf16.mxu0 %vm7885_vm0, %v7884_v1  ;;  %7041 = vmatprep.mubr.msk.bf16.mxu1 %vm7885_vm0, %v7884_v1 }
 0x11c   : > { %7045 = vmatprep.subr.bf16.mxu0 %v7884_v1  ;;  %7051 = vmatprep.subr.bf16.mxu1 %v7884_v1 }
 0x11e   : > { %v1319_v8 = vpop.f32.mrb[16].mxu0  ;;  %v1371_v12 = vpop.f32.mrb[16].mxu1 }
 0x11f   : > { %v1730_v9 = vpack.c.bf16 %v1319_v8, %v1319_v8  ;;  %v6995_v10 = vpop.f32.mrb[17].mxu0  ;;  %v1731_v15 = vpack.c.bf16 %v1371_v12, %v1371_v12  ;;  %v7003_v16 = vpop.f32.mrb[17].mxu1 }
 0x120   : > { %v1322_v11 = vpop.f32.mrb[18].mxu0  ;;  %v1374_v17 = vpop.f32.mrb[18].mxu1 }
 0x121   : > { %7036 = vmatmul.mubr.msk.bf16.vlgmr.msra.gmra.mrb[28].mxu0 %vm1489_vm2, %v1483_v6  ;;  %7042 = vmatmul.mubr.msk.bf16.vlgmr.msra.gmra.mrb[28].mxu1 %vm1489_vm2, %v1484_v7  ;;  %v1739_v13 = vsel %vm1737_vm3, %v1730_v9, 0  ;;  %v6996_v14 = vpop.f32.mrb[19].mxu0  ;;  %v1785_v18 = vsel %vm1737_vm3, %v1731_v15, 0  ;;  %v7004_v19 = vpop.f32.mrb[19].mxu1 }
 0x122   : > { %7047 = vmatprep.mubr.msk.bf16.mxu0 %vm7885_vm0, %v7884_v1  ;;  %7053 = vmatprep.mubr.msk.bf16.mxu1 %vm7885_vm0, %v7884_v1 }
 0x123   : > { %7046 = vmatpush3.bf16.msra.mxu0 %v1739_v13  ;;  %7052 = vmatpush3.bf16.msra.mxu1 %v1785_v18 }
 0x124   : > { %7057 = vmatprep.subr.bf16.mxu0 %v7884_v1  ;;  %7063 = vmatprep.subr.bf16.mxu1 %v7884_v1 }
 0x126   : > { %v8247_v20 = vpop.f32.mrb[20].mxu0 }
 0x127   : > { %v8249_v21 = vpop.f32.mrb[20].mxu1  ;;  %v7011_v22 = vpop.f32.mrb[21].mxu0 }
 0x128   : > { %v7019_v23 = vpop.f32.mrb[21].mxu1  ;;  %v1426_v24 = vpop.f32.mrb[22].mxu0 }
 0x129   : > { %v1478_v25 = vpop.f32.mrb[22].mxu1  ;;  %v7012_v26 = vpop.f32.mrb[23].mxu0 }
 0x12a   : > { %v7020_v27 = vpop.f32.mrb[23].mxu1 }
 0x12b   : > { %v1732_v27 = vpack.c.bf16 %v8247_v20, %v8247_v20 }
 0x12d   : > { %v1831_v34 = vsel %vm1737_vm3, %v1732_v27, 0 }
 0x1ec   : > { %v1530_v35 = vpop.f32.mrb[24].mxu0  ;;  %v1576_v36 = vpop.f32.mrb[24].mxu1 }
 0x1ed   : > { %v1674_v38 = vmul.f32 0.35355338, %v1530_v35  ;;  %v1675_v39 = vmul.f32 0.35355338, %v1576_v36  ;;  %v7025_v40 = vpop.f32.mrb[25].mxu0  ;;  %v7031_v41 = vpop.f32.mrb[25].mxu1  ;;  %v1733_v35 = vpack.c.bf16 %v8249_v21, %v8249_v21 }
 0x1ee   : > { %v1533_v42 = vpop.f32.mrb[26].mxu0  ;;  %v1579_v43 = vpop.f32.mrb[26].mxu1 }
 0x1ef   : > { %v7026_v44 = vpop.f32.mrb[27].mxu0  ;;  %v7032_v45 = vpop.f32.mrb[27].mxu1  ;;  %v1678_v46 = vadd.f32 %v1674_v38, %v8262_v37  ;;  %v1679_v47 = vadd.f32 %v1675_v39, %v8262_v37  ;;  %v1877_v39 = vsel %vm1737_vm3, %v1733_v35, 0 }
 0x1f0   : > { %v7649_v44 = vld [vmem:[%s9354_s29] sm:$0xff]   ;;  %v7650_v45 = vld [vmem:[%s9354_s29 + $0x8] sm:$0xff]  }
 0x1f1   : > { %v1682_v48 = vsel %vm1489_vm2, %v1678_v46, -inf  ;;  %v1685_v51 = vsel %vm1489_vm2, %v1679_v47, -inf }
 0x1f2   : > { %1683 = vmax.xlane.f32.xlu0 %v1682_v48 }
 0x1f4   : > { %v1622_v49 = vpop.f32.mrb[28].mxu0  ;;  %v1668_v50 = vpop.f32.mrb[28].mxu1 }
 0x1f5   : > { %v1676_v52 = vmul.f32 0.35355338, %v1622_v49  ;;  %v1677_v53 = vmul.f32 0.35355338, %v1668_v50  ;;  %v7037_v54 = vpop.f32.mrb[29].mxu0  ;;  %v7043_v55 = vpop.f32.mrb[29].mxu1 }
 0x1f6   : > { %v1671_v56 = vpop.f32.mrb[30].mxu1  ;;  %1686 = vmax.xlane.f32.xlu0 %v1685_v51  ;;  %v1625_v57 = vpop.f32.mrb[30].mxu0 }
 0x1f7   : > { %v7038_v58 = vpop.f32.mrb[31].mxu0  ;;  %v7044_v59 = vpop.f32.mrb[31].mxu1  ;;  %v1680_v60 = vadd.f32 %v1676_v52, %v8262_v37  ;;  %v1681_v62 = vadd.f32 %v1677_v53, %v8262_v37 }
 0x1f9   : > { %v1688_v61 = vsel %vm1489_vm2, %v1680_v60, -inf  ;;  %v1691_v63 = vsel %vm1489_vm2, %v1681_v62, -inf }
 0x1fa   : > { %1689 = vmax.xlane.f32.xlu1 %v1688_v61 }
 0x1fe   : > { %1692 = vmax.xlane.f32.xlu1 %v1691_v63 }
 0x27f   : > { %v1684_v0 = vpop.xlane.xlu0 %1683 }
 0x280   : > { %v1694_v2 = vsub.f32 %v1678_v46, %v1684_v0 }
 0x282   : > { %v1698_v3 = vmul.f32 1.442695, %v1694_v2 }
 0x283   : > { %v1687_v4 = vpop.xlane.xlu0 %1686 }
 0x284   : > { %7743 = vpow2.f32 %v1698_v3  ;;  %v1695_v5 = vsub.f32 %v1679_v47, %v1687_v4 }
 0x286   : > { %v1700_v6 = vmul.f32 1.442695, %v1695_v5 }
 0x287   : > { %v1690_v7 = vpop.xlane.xlu1 %1689 }
 0x288   : > { %7745 = vpow2.f32 %v1700_v6  ;;  %v1696_v8 = vsub.f32 %v1680_v60, %v1690_v7  ;;  %v7819_v7 = vld [vmem:[%s8088_s26] sm:$0xff]  ;;  %s9360_s26 = smov 24  }
 0x28a   : > { %v1702_v9 = vmul.f32 1.442695, %v1696_v8 }
 0x28b   : > { %v1693_v10 = vpop.xlane.xlu1 %1692 }
 0x28c   : > { %7747 = vpow2.f32 %v1702_v9  ;;  %v1697_v11 = vsub.f32 %v1681_v62, %v1693_v10 }
 0x28e   : > { %v7744_v12 = vpop.eup %7743  ;;  %v1704_v13 = vmul.f32 1.442695, %v1697_v11 }
 0x28f   : > { %v1706_v14 = vsel %vm1489_vm2, %v7744_v12, 0.0 }
 0x290   : > { %7749 = vpow2.f32 %v1704_v13  ;;  %1707 = vadd.xlane.f32.xlu0 %v1706_v14 }
 0x292   : > { %v7746_v15 = vpop.eup %7745 }
 0x293   : > { %v1709_v16 = vsel %vm1489_vm2, %v7746_v15, 0.0 }
 0x294   : > { %1710 = vadd.xlane.f32.xlu1 %v1709_v16 }
 0x296   : > { %v7748_v17 = vpop.eup %7747 }
 0x297   : > { %v1712_v18 = vsel %vm1489_vm2, %v7748_v17, 0.0 }
 0x298   : > { %1713 = vadd.xlane.f32.xlu0 %v1712_v18  ;;  %v7651_v18 = vld [vmem:[%s9291_s10] sm:$0xff]  }
 0x29a   : > { %v7750_v19 = vpop.eup %7749 }
 0x29b   : > { %v1715_v22 = vsel %vm1489_vm2, %v7750_v19, 0.0 }
 0x29c   : > { %1716 = vadd.xlane.f32.xlu1 %v1715_v22  ;;  %v7653_v22 = vld [vmem:[%s9291_s10 + $0x8] sm:$0xff]  }
 0x31d   : > { %v1708_v23 = vpop.xlane.xlu0 %1707 }
 0x31e   : > { %7751 = vrcp.f32 %v1708_v23  ;;  %v7654_v23 = vld [vmem:[%s9291_s10 + $0x18] sm:$0xff]  }
 0x321   : > { %v1711_v24 = vpop.xlane.xlu1 %1710 }
 0x322   : > { %7753 = vrcp.f32 %v1711_v24 }
 0x325   : > { %v1714_v25 = vpop.xlane.xlu0 %1713 }
 0x326   : > { %7755 = vrcp.f32 %v1714_v25 }
 0x328   : > { %v7752_v26 = vpop.eup %7751 }
 0x329   : > { %v8278_v28 = vmul.f32 %v7752_v26, %v7744_v12  ;;  %v1717_v29 = vpop.xlane.xlu1 %1716 }
 0x32a   : > { %7757 = vrcp.f32 %v1717_v29  ;;  %v6384_v29 = vld [vmem:[%s9289_s8] ss:$0 sm:$0xff] }
 0x32b   : > { %v1726_v32 = vpack.c.bf16 %v8278_v28, %v8278_v28 }
 0x32c   : > { %v7754_v33 = vpop.eup %7753 }
 0x32d   : > { %v8285_v36 = vmul.f32 %v7754_v33, %v7746_v15  ;;  %7048 = vmatmul.mubr.msk.bf16.vlgmr.msra.gmra.mrb[32].mxu0 %vm1489_vm2, %v1726_v32  ;;  %v6385_v33 = vld [vmem:[%s9290_s9] ss:$0 sm:$0xff] }
 0x32e   : > { %7058 = vmatpush3.bf16.msra.mxu0 %v1831_v34  ;;  %7059 = vmatprep.mubr.msk.bf16.mxu0 %vm7885_vm0, %v7884_v1 }
 0x32f   : > { %v1727_v20 = vpack.c.bf16 %v8285_v36, %v8285_v36  ;;  %7069 = vmatprep.subr.bf16.mxu0 %v7884_v1 }
 0x330   : > { %v7756_v38 = vpop.eup %7755 }
 0x331   : > { %v8294_v40 = vmul.f32 %v7756_v38, %v7748_v17  ;;  %7054 = vmatmul.mubr.msk.bf16.vlgmr.msra.gmra.mrb[32].mxu1 %vm1489_vm2, %v1727_v20  ;;  %v7655_v20 = vld [vmem:[%s9291_s10 + $0x20] sm:$0xff]   ;;  %v7656_v38 = vld [vmem:[%s9291_s10 + $0x30] sm:$0xff]  }
 0x332   : > { %7064 = vmatpush3.bf16.msra.mxu1 %v1877_v39  ;;  %7065 = vmatprep.mubr.msk.bf16.mxu1 %vm7885_vm0, %v7884_v1 }
 0x333   : > { %v1728_v21 = vpack.c.bf16 %v8294_v40, %v8294_v40  ;;  %7077 = vmatprep.subr.bf16.mxu1 %v7884_v1 }
 0x334   : > { %v7758_v41 = vpop.eup %7757 }
 0x335   : > { %v8302_v42 = vmul.f32 %v7758_v41, %v7750_v19  ;;  %7060 = vmatmul.mubr.msk.bf16.vlgmr.msra.gmra.mrb[36].mxu0 %vm1489_vm2, %v1728_v21  ;;  %v7652_v19 = vld [vmem:[%s9291_s10 + $0x10] sm:$0xff]   ;;  %v7657_v21 = vld [vmem:[%s9291_s10 + $0x28] sm:$0xff]   ;;  %v7658_v41 = vld [vmem:[%s9291_s10 + $0x38] sm:$0xff]  }
 0x336   : > { %7073 = vmatprep.mubr.msk.bf16.mxu0 %vm7885_vm0, %v7884_v1  ;;  %7070 = vmatpush3.bf16.msra.mxu0 %v7649_v44  ;;  %v7660_v44 = vld [vmem:[%s9292_s11 + $0x10] sm:$0xff]  }
 0x337   : > { %v1729_v43 = vpack.c.bf16 %v8302_v42, %v8302_v42  ;;  %7071 = vmatprep.subr.bf16.mxu0 %v7884_v1 }
 0x339   : > { %7066 = vmatmul.mubr.msk.bf16.vlgmr.msra.gmra.mrb[36].mxu1 %vm1489_vm2, %v1729_v43  ;;  %v7659_v43 = vld [vmem:[%s9292_s11] sm:$0xff]  }
 0x33a   : > { %7081 = vmatprep.mubr.msk.bf16.mxu1 %vm7885_vm0, %v7884_v1  ;;  %7072 = vmatpush3.bf16.msra.mxu0 %v7650_v45 }
 0x33b   : > { %7085 = vmatprep.subr.bf16.mxu0 %v7884_v1  ;;  %7078 = vmatpush3.bf16.msra.mxu1 %v7651_v18 }
 0x33c   : > { %7079 = vmatprep.subr.bf16.mxu1 %v7884_v1 }
 0x33f   : > { %7080 = vmatpush3.bf16.msra.mxu1 %v7653_v22 }
 0x340   : > { %7093 = vmatprep.subr.bf16.mxu1 %v7884_v1 }
 0x400   : > { %v1775_v46 = vpop.f32.mrb[32].mxu0 }
 0x401   : > { %v7049_v47 = vpop.f32.mrb[33].mxu0 }
 0x402   : > { %v1778_v48 = vpop.f32.mrb[34].mxu0  ;;  %v7662_v47 = vld [vmem:[%s9292_s11 + $0x18] sm:$0xff]  }
 0x403   : > { %v7050_v49 = vpop.f32.mrb[35].mxu0 }
 0x404   : > { %v1821_v50 = vpop.f32.mrb[32].mxu1  ;;  %v7663_v49 = vld [vmem:[%s9292_s11 + $0x20] sm:$0xff]  }
 0x405   : > { %1920 = vrot.lane.b32.xlu0 %v1821_v50, %s9321_s4  ;;  %v7055_v51 = vpop.f32.mrb[33].mxu1  ;;  %v7664_v50 = vld [vmem:[%s9292_s11 + $0x30] sm:$0xff]  }
 0x406   : > { %v1824_v52 = vpop.f32.mrb[34].mxu1  ;;  %v7665_v51 = vld [vmem:[%s9292_s11 + $0x28] sm:$0xff]  }
 0x407   : > { %v7056_v53 = vpop.f32.mrb[35].mxu1  ;;  %v7666_v52 = vld [vmem:[%s9292_s11 + $0x38] sm:$0xff]  }
 0x408   : > { %v1867_v54 = vpop.f32.mrb[36].mxu0  ;;  %v7667_v53 = vld [vmem:[%s9293_s12] sm:$0xff]  }
 0x409   : > { %1924 = vrot.lane.b32.xlu1 %v1867_v54, %s9319_s24  ;;  %v7061_v55 = vpop.f32.mrb[37].mxu0  ;;  %s9356_s24 = sld [smem:[#allocation16_spill]]  ;;  %v7668_v54 = vld [vmem:[%s9293_s12 + $0x10] sm:$0xff]  }
 0x40a   : > { %v1870_v56 = vpop.f32.mrb[38].mxu0  ;;  %v7669_v55 = vld [vmem:[%s9293_s12 + $0x8] sm:$0xff]  }
 0x40b   : > { %v7062_v57 = vpop.f32.mrb[39].mxu0  ;;  %v7670_v56 = vld [vmem:[%s9293_s12 + $0x18] sm:$0xff]  }
 0x40c   : > { %v1913_v58 = vpop.f32.mrb[36].mxu1  ;;  %v7671_v57 = vld [vmem:[%s9293_s12 + $0x20] sm:$0xff]  }
 0x40d   : > { %v7067_v59 = vpop.f32.mrb[37].mxu1  ;;  %1928 = vrot.lane.b32.xlu1 %v1913_v58, %s9317_s2  ;;  %s9355_s2 = sshll.u32 %s8080_s1, 3  ;;  %v7672_v58 = vld [vmem:[%s9293_s12 + $0x30] sm:$0xff]  }
 0x40e   : > { %v1916_v60 = vpop.f32.mrb[38].mxu1  ;;  %v7673_v59 = vld [vmem:[%s9293_s12 + $0x28] sm:$0xff]  }
 0x40f   : > { %v7068_v61 = vpop.f32.mrb[39].mxu1  ;;  %s765_s7 = scalar_lea.vmem %s9356_s24, %s9355_s2  ;;  %v7674_v60 = vld [vmem:[%s9293_s12 + $0x38] sm:$0xff]  }
 0x410   : > { %v778_v45 = vld [vmem:[%s765_s7] sm:$0xff]  ;;  %s761_s7 = scalar_lea.vmem %s9357_s27, %s8080_s1  ;;  %s6684_s27 = sshll.u32 %s8080_s1, 4 }
 0x411   : > { %v8405_v48 = vpack.c.bf16 %v778_v45, %v778_v45  ;;  %s770_s23 = scalar_lea.vmem %s9303_s22, %s6684_s27  ;;  %s775_s4 = scalar_lea.vmem %s9361_s5, %s6684_s27 }
 0x412   : > { %s735_s27 = sand.u32 1, %s7874_s30  }
 0x413   : > { %s6330_s24 = sshll.u32 %s735_s27, 3 }
 0x477   : > { %v1921_v62 = vpop.permute.xlu0 %1920 }
 0x478   : > { %v1931_v0 = vsel %vm1489_vm2, %v1775_v46, %v1921_v62  ;;  %v7661_v46 = vld [vmem:[%s9292_s11 + $0x8] sm:$0xff]  }
 0x47b   : > { %v1925_v63 = vpop.permute.xlu1 %1924 }
 0x47c   : > { %v1933_v2 = vsel %vm1932_vm6, %v1931_v0, %v1925_v63 }
 0x47f   : > { %v1929_v3 = vpop.permute.xlu1 %1928 }
 0x480   : > { %v1935_v4 = vsel %vm1934_vm7, %v1933_v2, %v1929_v3 }
 0x481   : > { %v1936_v5 = vpack.c.bf16 %v1935_v4, %v1935_v4 }
 0x483   : > { %7074 = vmatmul.mubr.msk.bf16.vlgmr.msra.gmra.mrb[40].mxu0 %vm865_vm1, %v1936_v5 }
 0x484   : > { %7089 = vmatprep.mubr.msk.bf16.mxu0 %vm7885_vm0, %v7884_v1  ;;  %7086 = vmatpush3.bf16.msra.mxu0 %v7652_v19 }
 0x485   : > { %7087 = vmatprep.subr.bf16.mxu0 %v7884_v1 }
 0x488   : > { %7088 = vmatpush3.bf16.msra.mxu0 %v7654_v23 }
 0x489   : > { %7101 = vmatprep.subr.bf16.mxu0 %v7884_v1 }
 0x556   : > { %v1986_v6 = vpop.f32.mrb[40].mxu0 }
 0x557   : > { %v1992_v8 = vadd.f32 %v7819_v7, %v1986_v6  ;;  %v7075_v9 = vpop.f32.mrb[41].mxu0 }
 0x558   : > { %v1989_v10 = vpop.f32.mrb[42].mxu0 }
 0x559   : > { %v7076_v11 = vpop.f32.mrb[43].mxu0  ;;  %v2008_v12 = vsel %vm865_vm1, %v1992_v8, 0.0 }
 0x55a   : > { %2009 = vadd.xlane.f32.xlu1 %v2008_v12 }
 0x5e7   : > { %v2010_v13 = vpop.xlane.xlu1 %2009 }
 0x5e8   : > { %v2012_v14 = vmul.f32 0.03125, %v2010_v13 }
 0x5ea   : > { %v2013_v15 = vsub.f32 %v1992_v8, %v2012_v14 }
 0x5ec   : > { %v2014_v16 = vmul.f32 %v2013_v15, %v2013_v15 }
 0x5ee   : > { %v2015_v17 = vsel %vm865_vm1, %v2014_v16, 0.0 }
 0x5ef   : > { %2016 = vadd.xlane.f32.xlu0 %v2015_v17 }
 0x67c   : > { %v2017_v24 = vpop.xlane.xlu0 %2016 }
 0x67d   : > { %v2018_v25 = vmul.f32 0.03125, %v2017_v24 }
 0x67f   : > { %v2019_v26 = vadd.f32 1e-05, %v2018_v25 }
 0x681   : > { %7759 = vrsqrt.f32 %v2019_v26 }
 0x68b   : > { %v7760_v27 = vpop.eup %7759 }
 0x68c   : > { %v2021_v32 = vmul.f32 %v7760_v27, %v2013_v15 }
 0x68e   : > { %v2028_v34 = vmul.f32 %v6384_v29, %v2021_v32 }
 0x690   : > { %v8354_v35 = vadd.f32 %v6385_v33, %v2028_v34 }
 0x692   : > { %v2037_v39 = vpack.c.bf16 %v8354_v35, %v8354_v35 }
 0x694   : > { %7082 = vmatmul.mubr.msk.bf16.vlgmr.msra.gmra.mrb[40].mxu1 %vm865_vm1, %v2037_v39  ;;  %7090 = vmatmul.mubr.msk.bf16.vlgmr.msra.gmra.mrb[44].mxu0 %vm865_vm1, %v2037_v39 }
 0x695   : > { %7094 = vmatpush3.bf16.msra.mxu1 %v7655_v20  ;;  %7102 = vmatpush3.bf16.msra.mxu0 %v7656_v38 }
 0x696   : > { %7095 = vmatprep.subr.bf16.mxu1 %v7884_v1  ;;  %7103 = vmatprep.subr.bf16.mxu0 %v7884_v1 }
 0x697   : > { %7097 = vmatprep.mubr.msk.bf16.mxu1 %vm7885_vm0, %v7884_v1  ;;  %7105 = vmatprep.mubr.msk.bf16.mxu0 %vm7885_vm0, %v7884_v1 }
 0x699   : > { %7096 = vmatpush3.bf16.msra.mxu1 %v7657_v21  ;;  %7104 = vmatpush3.bf16.msra.mxu0 %v7658_v41 }
 0x69a   : > { %7109 = vmatprep.subr.bf16.mxu1 %v7884_v1  ;;  %7117 = vmatprep.subr.bf16.mxu0 %v7884_v1 }
 0x69c   : > { %7098 = vmatmul.mubr.msk.bf16.vlgmr.msra.gmra.mrb[44].mxu1 %vm865_vm1, %v2037_v39  ;;  %7106 = vmatmul.mubr.msk.bf16.vlgmr.msra.gmra.mrb[48].mxu0 %vm865_vm1, %v2037_v39 }
 0x69d   : > { %7110 = vmatpush3.bf16.msra.mxu1 %v7659_v43  ;;  %7118 = vmatpush3.bf16.msra.mxu0 %v7660_v44 }
 0x69e   : > { %7111 = vmatprep.subr.bf16.mxu1 %v7884_v1  ;;  %7119 = vmatprep.subr.bf16.mxu0 %v7884_v1 }
 0x69f   : > { %7113 = vmatprep.mubr.msk.bf16.mxu1 %vm7885_vm0, %v7884_v1  ;;  %7121 = vmatprep.mubr.msk.bf16.mxu0 %vm7885_vm0, %v7884_v1 }
 0x6a1   : > { %7112 = vmatpush3.bf16.msra.mxu1 %v7661_v46  ;;  %7120 = vmatpush3.bf16.msra.mxu0 %v7662_v47 }
 0x6a2   : > { %7125 = vmatprep.subr.bf16.mxu1 %v7884_v1  ;;  %7133 = vmatprep.subr.bf16.mxu0 %v7884_v1 }
 0x6a4   : > { %7114 = vmatmul.mubr.msk.bf16.vlgmr.msra.gmra.mrb[48].mxu1 %vm865_vm1, %v8405_v48  ;;  %7122 = vmatmul.mubr.msk.bf16.vlgmr.msra.gmra.mrb[52].mxu0 %vm865_vm1, %v8405_v48 }
 0x6a5   : > { %7126 = vmatpush3.bf16.msra.mxu1 %v7663_v49  ;;  %7134 = vmatpush3.bf16.msra.mxu0 %v7664_v50 }
 0x6a6   : > { %7127 = vmatprep.subr.bf16.mxu1 %v7884_v1  ;;  %7135 = vmatprep.subr.bf16.mxu0 %v7884_v1 }
 0x6a7   : > { %7129 = vmatprep.mubr.msk.bf16.mxu1 %vm7885_vm0, %v7884_v1  ;;  %7137 = vmatprep.mubr.msk.bf16.mxu0 %vm7885_vm0, %v7884_v1 }
 0x6a9   : > { %7128 = vmatpush3.bf16.msra.mxu1 %v7665_v51  ;;  %7136 = vmatpush3.bf16.msra.mxu0 %v7666_v52 }
 0x6aa   : > { %7141 = vmatprep.subr.bf16.mxu1 %v7884_v1  ;;  %7149 = vmatprep.subr.bf16.mxu0 %v7884_v1 }
 0x6ac   : > { %7130 = vmatmul.mubr.msk.bf16.vlgmr.msra.gmra.mrb[52].mxu1 %vm865_vm1, %v8405_v48  ;;  %7138 = vmatmul.mubr.msk.bf16.vlgmr.msra.gmra.mrb[56].mxu0 %vm865_vm1, %v8405_v48 }
 0x6ad   : > { %7142 = vmatpush3.bf16.msra.mxu1 %v7667_v53  ;;  %7150 = vmatpush3.bf16.msra.mxu0 %v7668_v54 }
 0x6ae   : > { %7143 = vmatprep.subr.bf16.mxu1 %v7884_v1  ;;  %7151 = vmatprep.subr.bf16.mxu0 %v7884_v1 }
 0x6af   : > { %7145 = vmatprep.mubr.msk.bf16.mxu1 %vm7885_vm0, %v7884_v1  ;;  %7153 = vmatprep.mubr.msk.bf16.mxu0 %vm7885_vm0, %v7884_v1 }
 0x6b1   : > { %7144 = vmatpush3.bf16.msra.mxu1 %v7669_v55  ;;  %7152 = vmatpush3.bf16.msra.mxu0 %v7670_v56 }
 0x6b2   : > { %7157 = vmatprep.subr.bf16.mxu1 %v7884_v1  ;;  %7165 = vmatprep.subr.bf16.mxu0 %v7884_v1 }
 0x6b4   : > { %7146 = vmatmul.mubr.msk.bf16.vlgmr.msra.gmra.mrb[56].mxu1 %vm865_vm1, %v8405_v48  ;;  %7154 = vmatmul.mubr.msk.bf16.vlgmr.msra.gmra.mrb[60].mxu0 %vm865_vm1, %v8405_v48 }
 0x6b5   : > { %7158 = vmatpush3.bf16.msra.mxu1 %v7671_v57  ;;  %7161 = vmatprep.mubr.msk.bf16.mxu1 %vm7885_vm0, %v7884_v1 }
 0x6b6   : > { %7159 = vmatprep.subr.bf16.mxu1 %v7884_v1  ;;  %7166 = vmatpush3.bf16.msra.mxu0 %v7672_v58 }
 0x6b7   : > { %7169 = vmatprep.mubr.msk.bf16.mxu0 %vm7885_vm0, %v7884_v1  ;;  %7167 = vmatprep.subr.bf16.mxu0 %v7884_v1 }
 0x6b9   : > { %7160 = vmatpush3.bf16.msra.mxu1 %v7673_v59 }
 0x6ba   : > { %7168 = vmatpush3.bf16.msra.mxu0 %v7674_v60  ;;  %7173 = vmatprep.subr.bf16.mxu1 %v7884_v1 }
 0x6bb   : > { %7179 = vmatprep.subr.bf16.mxu0 %v7884_v1 }
 0x6bc   : > { %7162 = vmatmul.mubr.msk.bf16.vlgmr.msra.gmra.mrb[60].mxu1 %vm865_vm1, %v8405_v48 }
 0x6bd   : > { %7170 = vmatmul.mubr.msk.bf16.vlgmr.msra.gmra.mrb[64].mxu0 %vm865_vm1, %v8405_v48  ;;  %7175 = vmatprep.mubr.msk.bf16.mxu1 %vm7885_vm0, %v7884_v1 }
 0x6be   : > { %7181 = vmatprep.mubr.msk.bf16.mxu0 %vm7885_vm0, %v7884_v1 }
 0x767   : > { %v2141_v61 = vpop.f32.mrb[40].mxu1  ;;  %v2193_v62 = vpop.f32.mrb[44].mxu0 }
 0x768   : > { %v7083_v63 = vpop.f32.mrb[41].mxu1  ;;  %v7091_v0 = vpop.f32.mrb[45].mxu0  ;;  %v2722_v33 = vpack.c.bf16 %v2141_v61, %v2141_v61  ;;  %v2723_v34 = vpack.c.bf16 %v2193_v62, %v2193_v62 }
 0x769   : > { %v2144_v2 = vpop.f32.mrb[42].mxu1  ;;  %v2196_v3 = vpop.f32.mrb[46].mxu0 }
 0x76a   : > { %v7084_v4 = vpop.f32.mrb[43].mxu1  ;;  %v7092_v5 = vpop.f32.mrb[47].mxu0 }
 0x76f   : > { %v2245_v6 = vpop.f32.mrb[44].mxu1  ;;  %v2297_v7 = vpop.f32.mrb[48].mxu0 }
 0x770   : > { %v7099_v8 = vpop.f32.mrb[45].mxu1  ;;  %v7107_v9 = vpop.f32.mrb[49].mxu0  ;;  %v2724_v49 = vpack.c.bf16 %v2245_v6, %v2245_v6  ;;  %v2725_v50 = vpack.c.bf16 %v2297_v7, %v2297_v7 }
 0x771   : > { %v2248_v10 = vpop.f32.mrb[46].mxu1  ;;  %v2300_v11 = vpop.f32.mrb[50].mxu0  ;;  %v780_v8 = vld [vmem:[%s761_s7] sm:$0x1] }
 0x772   : > { %v7100_v12 = vpop.f32.mrb[47].mxu1  ;;  %v7108_v13 = vpop.f32.mrb[51].mxu0  ;;  %vm795_vm8 = vcmp.eq.s32.totalorder %v780_v8, 0 }
 0x773   : > { %v796_v9 = vsel %vm795_vm8, -1e+09, %v7884_v1 }
 0x774   : > { %v8524_v10 = vrot.slane %v796_v9, %v786_v31 }
 0x777   : > { %v2352_v14 = vpop.f32.mrb[48].mxu1  ;;  %v2404_v15 = vpop.f32.mrb[52].mxu0 }
 0x778   : > { %v2726_v16 = vpack.c.bf16 %v2352_v14, %v2352_v14  ;;  %v2727_v17 = vpack.c.bf16 %v2404_v15, %v2404_v15  ;;  %v7115_v18 = vpop.f32.mrb[49].mxu1  ;;  %v7123_v19 = vpop.f32.mrb[53].mxu0 }
 0x779   : > { %v2355_v22 = vpop.f32.mrb[50].mxu1  ;;  %v2407_v23 = vpop.f32.mrb[54].mxu0 }
 0x77a   : > { %v2734_v24 = vsel %vm1489_vm2, %v2726_v16, 0  ;;  %v2780_v25 = vsel %vm1489_vm2, %v2727_v17, 0  ;;  %v7116_v26 = vpop.f32.mrb[51].mxu1  ;;  %v7124_v27 = vpop.f32.mrb[55].mxu0 }
 0x77b   : > { %7174 = vmatpush3.bf16.xpose.msra.mxu1 %v2734_v24  ;;  %7180 = vmatpush3.bf16.xpose.msra.mxu0 %v2780_v25 }
 0x77c   : > { %7185 = vmatprep.subr.bf16.mxu1 %v7884_v1  ;;  %7191 = vmatprep.subr.bf16.mxu0 %v7884_v1 }
 0x77f   : > { %v2456_v29 = vpop.f32.mrb[52].mxu1  ;;  %v2508_v32 = vpop.f32.mrb[56].mxu0 }
 0x780   : > { %v2728_v20 = vpack.c.bf16 %v2456_v29, %v2456_v29  ;;  %v2729_v38 = vpack.c.bf16 %v2508_v32, %v2508_v32  ;;  %v7131_v39 = vpop.f32.mrb[53].mxu1  ;;  %v7139_v21 = vpop.f32.mrb[57].mxu0 }
 0x781   : > { %v2459_v41 = vpop.f32.mrb[54].mxu1  ;;  %v2511_v43 = vpop.f32.mrb[58].mxu0 }
 0x782   : > { %v2826_v44 = vsel %vm1489_vm2, %v2728_v20, 0  ;;  %v2872_v45 = vsel %vm1489_vm2, %v2729_v38, 0  ;;  %v7132_v46 = vpop.f32.mrb[55].mxu1  ;;  %7176 = vmatmul.mubr.msk.bf16.vlgmr.msra.gmra.mrb[64].mxu1 %vm1489_vm2, %v2722_v33  ;;  %7182 = vmatmul.mubr.msk.bf16.vlgmr.msra.gmra.mrb[68].mxu0 %vm1489_vm2, %v2723_v34  ;;  %v7140_v47 = vpop.f32.mrb[59].mxu0 }
 0x783   : > { %7186 = vmatpush3.bf16.xpose.msra.mxu1 %v2826_v44  ;;  %7192 = vmatpush3.bf16.xpose.msra.mxu0 %v2872_v45 }
 0x784   : > { %7187 = vmatprep.mubr.msk.bf16.mxu1 %vm7885_vm0, %v7884_v1  ;;  %7193 = vmatprep.mubr.msk.bf16.mxu0 %vm7885_vm0, %v7884_v1 }
 0x785   : > { %7197 = vmatprep.subr.bf16.mxu1 %v7884_v1  ;;  %7203 = vmatprep.subr.bf16.mxu0 %v7884_v1 }
 0x787   : > { %v2560_v51 = vpop.f32.mrb[56].mxu1  ;;  %v2612_v55 = vpop.f32.mrb[60].mxu0 }
 0x788   : > { %v2976_v52 = vpack.c.bf16 %v2560_v51, %v2560_v51  ;;  %v7147_v53 = vpop.f32.mrb[57].mxu1  ;;  %v2977_v58 = vpack.c.bf16 %v2612_v55, %v2612_v55  ;;  %v7155_v59 = vpop.f32.mrb[61].mxu0 }
 0x789   : > { %v2563_v54 = vpop.f32.mrb[58].mxu1  ;;  %v2615_v60 = vpop.f32.mrb[62].mxu0 }
 0x78a   : > { %7188 = vmatmul.mubr.msk.bf16.vlgmr.msra.gmra.mrb[68].mxu1 %vm1489_vm2, %v2724_v49  ;;  %7194 = vmatmul.mubr.msk.bf16.vlgmr.msra.gmra.mrb[72].mxu0 %vm1489_vm2, %v2725_v50  ;;  %v2984_v56 = vsel %vm1737_vm3, %v2976_v52, 0  ;;  %v7148_v57 = vpop.f32.mrb[59].mxu1  ;;  %v3030_v61 = vsel %vm1737_vm3, %v2977_v58, 0  ;;  %v7156_v62 = vpop.f32.mrb[63].mxu0 }
 0x78b   : > { %7199 = vmatprep.mubr.msk.bf16.mxu1 %vm7885_vm0, %v7884_v1  ;;  %7205 = vmatprep.mubr.msk.bf16.mxu0 %vm7885_vm0, %v7884_v1 }
 0x78c   : > { %7198 = vmatpush3.bf16.msra.mxu1 %v2984_v56  ;;  %7204 = vmatpush3.bf16.msra.mxu0 %v3030_v61 }
 0x78d   : > { %7209 = vmatprep.subr.bf16.mxu1 %v7884_v1  ;;  %7215 = vmatprep.subr.bf16.mxu0 %v7884_v1 }
 0x78f   : > { %v8513_v63 = vpop.f32.mrb[60].mxu1 }
 0x790   : > { %v8515_v0 = vpop.f32.mrb[64].mxu0  ;;  %v7163_v2 = vpop.f32.mrb[61].mxu1 }
 0x791   : > { %v7171_v3 = vpop.f32.mrb[65].mxu0  ;;  %v2667_v4 = vpop.f32.mrb[62].mxu1 }
 0x792   : > { %v2719_v5 = vpop.f32.mrb[66].mxu0  ;;  %v7164_v6 = vpop.f32.mrb[63].mxu1 }
 0x793   : > { %v7172_v7 = vpop.f32.mrb[67].mxu0 }
 0x855   : > { %v2770_v11 = vpop.f32.mrb[64].mxu1  ;;  %v2816_v12 = vpop.f32.mrb[68].mxu0 }
 0x856   : > { %v2914_v13 = vmul.f32 0.35355338, %v2770_v11  ;;  %v2915_v14 = vmul.f32 0.35355338, %v2816_v12  ;;  %v7177_v15 = vpop.f32.mrb[65].mxu1  ;;  %v7183_v16 = vpop.f32.mrb[69].mxu0  ;;  %v2978_v11 = vpack.c.bf16 %v8513_v63, %v8513_v63 }
 0x857   : > { %v2773_v17 = vpop.f32.mrb[66].mxu1  ;;  %v2819_v18 = vpop.f32.mrb[70].mxu0  ;;  %v2979_v16 = vpack.c.bf16 %v8515_v0, %v8515_v0 }
 0x858   : > { %v7178_v19 = vpop.f32.mrb[67].mxu1  ;;  %v7184_v22 = vpop.f32.mrb[71].mxu0  ;;  %v2924_v23 = vadd.f32 %v8524_v10, %v2914_v13  ;;  %v2925_v24 = vadd.f32 %v8524_v10, %v2915_v14  ;;  %v3076_v15 = vsel %vm1737_vm3, %v2978_v11, 0 }
 0x859   : > { %v3122_v22 = vsel %vm1737_vm3, %v2979_v16, 0  ;;  %v6433_v16 = vld [vmem:[%s9295_s14] ss:$0 sm:$0xff] }
 0x85a   : > { %v2928_v25 = vsel %vm1489_vm2, %v2924_v23, -inf  ;;  %v2931_v26 = vsel %vm1489_vm2, %v2925_v24, -inf }
 0x85b   : > { %2929 = vmax.xlane.f32.xlu0 %v2928_v25 }
 0x85d   : > { %v2862_v30 = vpop.f32.mrb[68].mxu1  ;;  %v2908_v31 = vpop.f32.mrb[72].mxu0 }
 0x85e   : > { %v2916_v27 = vmul.f32 0.35355338, %v2862_v30  ;;  %v2917_v29 = vmul.f32 0.35355338, %v2908_v31  ;;  %v7189_v32 = vpop.f32.mrb[69].mxu1  ;;  %v7195_v33 = vpop.f32.mrb[73].mxu0 }
 0x85f   : > { %v2865_v34 = vpop.f32.mrb[70].mxu1  ;;  %2932 = vmax.xlane.f32.xlu0 %v2931_v26  ;;  %v2911_v20 = vpop.f32.mrb[74].mxu0  ;;  %v7675_v30 = vld [vmem:[%s9294_s13] sm:$0xff]   ;;  %v7676_v31 = vld [vmem:[%s9294_s13 + $0x8] sm:$0xff]  }
 0x860   : > { %v7190_v38 = vpop.f32.mrb[71].mxu1  ;;  %v7196_v39 = vpop.f32.mrb[75].mxu0  ;;  %v2926_v21 = vadd.f32 %v8524_v10, %v2916_v27  ;;  %v2927_v41 = vadd.f32 %v8524_v10, %v2917_v29 }
 0x862   : > { %v2934_v43 = vsel %vm1489_vm2, %v2926_v21, -inf  ;;  %v2937_v44 = vsel %vm1489_vm2, %v2927_v41, -inf }
 0x863   : > { %2935 = vmax.xlane.f32.xlu1 %v2934_v43  ;;  %2938 = vmax.xlane.f32.xlu0 %v2937_v44 }
 0x8e8   : > { %v2930_v45 = vpop.xlane.xlu0 %2929 }
 0x8e9   : > { %v2940_v46 = vsub.f32 %v2924_v23, %v2930_v45 }
 0x8eb   : > { %v2944_v47 = vmul.f32 1.442695, %v2940_v46 }
 0x8ec   : > { %v2933_v49 = vpop.xlane.xlu0 %2932 }
 0x8ed   : > { %7761 = vpow2.f32 %v2944_v47  ;;  %v2941_v50 = vsub.f32 %v2925_v24, %v2933_v49 }
 0x8ef   : > { %v2946_v51 = vmul.f32 1.442695, %v2941_v50 }
 0x8f0   : > { %v2936_v52 = vpop.xlane.xlu1 %2935  ;;  %v2939_v53 = vpop.xlane.xlu0 %2938 }
 0x8f1   : > { %7763 = vpow2.f32 %v2946_v51  ;;  %v2942_v54 = vsub.f32 %v2926_v21, %v2936_v52  ;;  %v2943_v55 = vsub.f32 %v2927_v41, %v2939_v53 }
 0x8f3   : > { %v2948_v56 = vmul.f32 1.442695, %v2942_v54  ;;  %v2950_v57 = vmul.f32 1.442695, %v2943_v55 }
 0x8f5   : > { %7765 = vpow2.f32 %v2948_v56 }
 0x8f6   : > { %7767 = vpow2.f32 %v2950_v57 }
 0x8f7   : > { %v7762_v58 = vpop.eup %7761 }
 0x8f8   : > { %v2952_v59 = vsel %vm1489_vm2, %v7762_v58, 0.0 }
 0x8f9   : > { %2953 = vadd.xlane.f32.xlu1 %v2952_v59 }
 0x8fb   : > { %v7764_v60 = vpop.eup %7763 }
 0x8fc   : > { %v2955_v61 = vsel %vm1489_vm2, %v7764_v60, 0.0 }
 0x8fd   : > { %2956 = vadd.xlane.f32.xlu0 %v2955_v61 }
 0x8ff   : > { %v7766_v62 = vpop.eup %7765 }
 0x900   : > { %v7768_v2 = vpop.eup %7767  ;;  %v2958_v3 = vsel %vm1489_vm2, %v7766_v62, 0.0 }
 0x901   : > { %2959 = vadd.xlane.f32.xlu1 %v2958_v3  ;;  %v2961_v4 = vsel %vm1489_vm2, %v7768_v2, 0.0 }
 0x902   : > { %2962 = vadd.xlane.f32.xlu0 %v2961_v4 }
 0x986   : > { %v2954_v5 = vpop.xlane.xlu1 %2953 }
 0x987   : > { %7769 = vrcp.f32 %v2954_v5 }
 0x98a   : > { %v2957_v6 = vpop.xlane.xlu0 %2956 }
 0x98b   : > { %7771 = vrcp.f32 %v2957_v6  ;;  %v7677_v6 = vld [vmem:[%s9297_s16] sm:$0xff]  }
 0x98e   : > { %v2960_v7 = vpop.xlane.xlu1 %2959 }
 0x98f   : > { %7773 = vrcp.f32 %v2960_v7  ;;  %v2963_v8 = vpop.xlane.xlu0 %2962  ;;  %v7679_v7 = vld [vmem:[%s9298_s17] sm:$0xff]  }
 0x990   : > { %7775 = vrcp.f32 %v2963_v8  ;;  %v7680_v8 = vld [vmem:[%s9298_s17 + $0x8] sm:$0xff]  }
 0x991   : > { %v7770_v9 = vpop.eup %7769 }
 0x992   : > { %v8540_v12 = vmul.f32 %v7770_v9, %v7762_v58  ;;  %v7681_v9 = vld [vmem:[%s9298_s17 + $0x10] sm:$0xff]  }
 0x994   : > { %v2972_v13 = vpack.c.bf16 %v8540_v12, %v8540_v12 }
 0x995   : > { %v7772_v14 = vpop.eup %7771 }
 0x996   : > { %v8547_v17 = vmul.f32 %v7772_v14, %v7764_v60  ;;  %7200 = vmatmul.mubr.msk.bf16.vlgmr.msra.gmra.mrb[72].mxu1 %vm1489_vm2, %v2972_v13 }
 0x997   : > { %7210 = vmatpush3.bf16.msra.mxu1 %v3076_v15  ;;  %7211 = vmatprep.mubr.msk.bf16.mxu1 %vm7885_vm0, %v7884_v1 }
 0x998   : > { %v2973_v63 = vpack.c.bf16 %v8547_v17, %v8547_v17  ;;  %7221 = vmatprep.subr.bf16.mxu1 %v7884_v1 }
 0x999   : > { %v7774_v18 = vpop.eup %7773 }
 0x99a   : > { %v7776_v19 = vpop.eup %7775  ;;  %v8556_v23 = vmul.f32 %v7774_v18, %v7766_v62  ;;  %7206 = vmatmul.mubr.msk.bf16.vlgmr.msra.gmra.mrb[76].mxu0 %vm1489_vm2, %v2973_v63  ;;  %v6434_v18 = vld [vmem:[%s9296_s15] ss:$0 sm:$0xff] }
 0x99b   : > { %7216 = vmatpush3.bf16.msra.mxu0 %v3122_v22  ;;  %7217 = vmatprep.mubr.msk.bf16.mxu0 %vm7885_vm0, %v7884_v1  ;;  %v8561_v0 = vmul.f32 %v7776_v19, %v7768_v2 }
 0x99c   : > { %v2974_v24 = vpack.c.bf16 %v8556_v23, %v8556_v23  ;;  %7229 = vmatprep.subr.bf16.mxu0 %v7884_v1 }
 0x99d   : > { %v2975_v25 = vpack.c.bf16 %v8561_v0, %v8561_v0 }
 0x99e   : > { %7212 = vmatmul.mubr.msk.bf16.vlgmr.msra.gmra.mrb[76].mxu1 %vm1489_vm2, %v2974_v24 }
 0x99f   : > { %7225 = vmatprep.mubr.msk.bf16.mxu1 %vm7885_vm0, %v7884_v1  ;;  %7222 = vmatpush3.bf16.msra.mxu1 %v7675_v30 }
 0x9a0   : > { %7223 = vmatprep.subr.bf16.mxu1 %v7884_v1 }
 0x9a2   : > { %7218 = vmatmul.mubr.msk.bf16.vlgmr.msra.gmra.mrb[80].mxu0 %vm1489_vm2, %v2975_v25  ;;  %v7682_v25 = vld [vmem:[%s9298_s17 + $0x18] sm:$0xff]  }
 0x9a3   : > { %7233 = vmatprep.mubr.msk.bf16.mxu0 %vm7885_vm0, %v7884_v1  ;;  %7224 = vmatpush3.bf16.msra.mxu1 %v7676_v31 }
 0x9a4   : > { %7237 = vmatprep.subr.bf16.mxu1 %v7884_v1  ;;  %7230 = vmatpush3.bf16.msra.mxu0 %v7677_v6  ;;  %v7692_v6 = vld [vmem:[%s9350_s3 + $0x60] sm:$0xff]  }
 0x9a5   : > { %7231 = vmatprep.subr.bf16.mxu0 %v7884_v1 }
 0xa69   : > { %v3020_v26 = vpop.f32.mrb[72].mxu1 }
 0xa6a   : > { %v7201_v27 = vpop.f32.mrb[73].mxu1 }
 0xa6b   : > { %v3023_v29 = vpop.f32.mrb[74].mxu1 }
 0xa6c   : > { %v7202_v32 = vpop.f32.mrb[75].mxu1 }
 0xa6d   : > { %v3066_v33 = vpop.f32.mrb[76].mxu0 }
 0xa6e   : > { %3165 = vrot.lane.b32.xlu1 %v3066_v33, %s9358_s6  ;;  %v7207_v34 = vpop.f32.mrb[77].mxu0 }
 0xa6f   : > { %v3069_v20 = vpop.f32.mrb[78].mxu0 }
 0xa70   : > { %v7208_v38 = vpop.f32.mrb[79].mxu0 }
 0xa71   : > { %v3112_v39 = vpop.f32.mrb[76].mxu1 }
 0xa72   : > { %v7213_v21 = vpop.f32.mrb[77].mxu1  ;;  %3169 = vrot.lane.b32.xlu0 %v3112_v39, %s9359_s25 }
 0xa73   : > { %v3115_v41 = vpop.f32.mrb[78].mxu1 }
 0xa74   : > { %v7214_v43 = vpop.f32.mrb[79].mxu1 }
 0xa75   : > { %v3158_v44 = vpop.f32.mrb[80].mxu0 }
 0xa76   : > { %3173 = vrot.lane.b32.xlu1 %v3158_v44, %s9360_s26  ;;  %v7219_v45 = vpop.f32.mrb[81].mxu0 }
 0xa77   : > { %v3161_v46 = vpop.f32.mrb[82].mxu0 }
 0xa78   : > { %v7220_v47 = vpop.f32.mrb[83].mxu0 }
 0xa79   : > { %v7683_v47 = vld [vmem:[%s9348_s0 + $0x40] sm:$0xff]  }
 0xae0   : > { %v3166_v49 = vpop.permute.xlu1 %3165 }
 0xae1   : > { %v3176_v51 = vsel %vm1489_vm2, %v3020_v26, %v3166_v49  ;;  %v7684_v49 = vld [vmem:[%s9348_s0 + $0x60] sm:$0xff]  }
 0xae4   : > { %v3170_v50 = vpop.permute.xlu0 %3169 }
 0xae5   : > { %v3177_v52 = vsel %vm1932_vm6, %v3176_v51, %v3170_v50  ;;  %v7685_v50 = vld [vmem:[%s9348_s0 + $0x48] sm:$0xff]  }
 0xae6   : > { %v7686_v51 = vld [vmem:[%s9348_s0 + $0x68] sm:$0xff]  }
 0xae8   : > { %v3174_v53 = vpop.permute.xlu1 %3173 }
 0xae9   : > { %v3178_v54 = vsel %vm1934_vm7, %v3177_v52, %v3174_v53 }
 0xaea   : > { %v3179_v55 = vpack.c.bf16 %v3178_v54, %v3178_v54 }
 0xaec   : > { %7226 = vmatmul.mubr.msk.bf16.vlgmr.msra.gmra.mrb[80].mxu1 %vm865_vm1, %v3179_v55 }
 0xaed   : > { %7245 = vmatprep.mubr.msk.bf16.mxu1 %vm7885_vm0, %v7884_v1  ;;  %7238 = vmatpush3.bf16.msra.mxu1 %v7679_v7  ;;  %v7694_v7 = vld [vmem:[%s9350_s3 + $0x68] sm:$0xff]  }
 0xaee   : > { %7239 = vmatprep.subr.bf16.mxu1 %v7884_v1 }
 0xaf1   : > { %7240 = vmatpush3.bf16.msra.mxu1 %v7680_v8  ;;  %v7695_v8 = vld [vmem:[%s9350_s3 + $0x50] sm:$0xff]  }
 0xaf2   : > { %7241 = vmatprep.subr.bf16.mxu1 %v7884_v1 }
 0xaf5   : > { %7242 = vmatpush3.bf16.msra.mxu1 %v7681_v9  ;;  %v7696_v9 = vld [vmem:[%s9352_s28 + $0x40] sm:$0xff]  }
 0xaf6   : > { %7243 = vmatprep.subr.bf16.mxu1 %v7884_v1 }
 0xaf9   : > { %7244 = vmatpush3.bf16.msra.mxu1 %v7682_v25 }
 0xafa   : > { %7265 = vmatprep.subr.bf16.mxu1 %v7884_v1 }
 0xbbf   : > { %v3229_v56 = vpop.f32.mrb[80].mxu1 }
 0xbc0   : > { %v3235_v57 = vadd.f32 %v3229_v56, %v8354_v35  ;;  %v7227_v58 = vpop.f32.mrb[81].mxu1  ;;  %v7678_v35 = vld [vmem:[%s9297_s16 + $0x8] sm:$0xff]   ;;  %v6443_v56 = vld [vmem:[%s9299_s18] ss:$0 sm:$0xff] }
 0xbc1   : > { %v3232_v59 = vpop.f32.mrb[82].mxu1  ;;  %7232 = vmatpush3.bf16.msra.mxu0 %v7678_v35  ;;  %v6444_v58 = vld [vmem:[%s9300_s19] ss:$0 sm:$0xff]  ;;  %v7693_v35 = vld [vmem:[%s9348_s0 + $0x78] sm:$0xff]  }
 0xbc2   : > { %v7228_v60 = vpop.f32.mrb[83].mxu1  ;;  %v3251_v61 = vsel %vm865_vm1, %v3235_v57, 0.0  ;;  %7249 = vmatprep.subr.bf16.mxu0 %v7884_v1 }
 0xbc3   : > { %3252 = vadd.xlane.f32.xlu1 %v3251_v61  ;;  %v7687_v61 = vld [vmem:[%s9348_s0 + $0x50] sm:$0xff]  }
 0xc50   : > { %v3253_v62 = vpop.xlane.xlu1 %3252 }
 0xc51   : > { %v3254_v2 = vmul.f32 0.03125, %v3253_v62  ;;  %v7688_v62 = vld [vmem:[%s9350_s3 + $0x40] sm:$0xff]  }
 0xc53   : > { %v3255_v3 = vsub.f32 %v3235_v57, %v3254_v2 }
 0xc55   : > { %v3256_v4 = vmul.f32 %v3255_v3, %v3255_v3 }
 0xc57   : > { %v3257_v5 = vsel %vm865_vm1, %v3256_v4, 0.0  ;;  %v7690_v4 = vld [vmem:[%s9350_s3 + $0x48] sm:$0xff]  }
 0xc58   : > { %3258 = vadd.xlane.f32.xlu0 %v3257_v5  ;;  %v7691_v5 = vld [vmem:[%s9348_s0 + $0x70] sm:$0xff]  }
 0xce5   : > { %v3259_v11 = vpop.xlane.xlu0 %3258 }
 0xce6   : > { %v3260_v13 = vmul.f32 0.03125, %v3259_v11  ;;  %v7697_v11 = vld [vmem:[%s9350_s3 + $0x58] sm:$0xff]  }
 0xce8   : > { %v3261_v14 = vadd.f32 1e-05, %v3260_v13  ;;  %v7698_v13 = vld [vmem:[%s9352_s28 + $0x48] sm:$0xff]  }
 0xcea   : > { %7777 = vrsqrt.f32 %v3261_v14  ;;  %v7699_v14 = vld [vmem:[%s9350_s3 + $0x70] sm:$0xff]  }
 0xcf4   : > { %v7778_v15 = vpop.eup %7777 }
 0xcf5   : > { %v3263_v63 = vmul.f32 %v7778_v15, %v3255_v3  ;;  %v7689_v3 = vld [vmem:[%s9348_s0 + $0x58] sm:$0xff]   ;;  %v7700_v15 = vld [vmem:[%s9352_s28 + $0x60] sm:$0xff]  }
 0xcf7   : > { %v3270_v19 = vmul.f32 %v6433_v16, %v3263_v63  ;;  %v7701_v16 = vld [vmem:[%s9350_s3 + $0x78] sm:$0xff]   ;;  %v7702_v63 = vld [vmem:[%s9352_s28 + $0x68] sm:$0xff]  }
 0xcf9   : > { %v3277_v22 = vadd.f32 %v6434_v18, %v3270_v19  ;;  %v7703_v18 = vld [vmem:[%s9352_s28 + $0x50] sm:$0xff]   ;;  %v7704_v19 = vld [vmem:[%s9352_s28 + $0x58] sm:$0xff]  }
 0xcfb   : > { %v3293_v24 = vpack.c.bf16 %v3277_v22, %v3277_v22 }
 0xcfd   : > { %7234 = vmatmul.mubr.msk.bf16.vlgmr.msra.gmra.mrb[84].mxu0 %vm865_vm1, %v3293_v24  ;;  %v7706_v24 = vld [vmem:[%s9352_s28 + $0x78] sm:$0xff]  }
 0xcfe   : > { %7253 = vmatprep.mubr.msk.bf16.mxu0 %vm7885_vm0, %v7884_v1  ;;  %7250 = vmatpush3.bf16.msra.mxu0 %v7683_v47 }
 0xcff   : > { %7251 = vmatprep.subr.bf16.mxu0 %v7884_v1 }
 0xd02   : > { %7252 = vmatpush3.bf16.msra.mxu0 %v7685_v50 }
 0xd03   : > { %7257 = vmatprep.subr.bf16.mxu0 %v7884_v1 }
 0xdd0   : > { %v3343_v30 = vpop.f32.mrb[84].mxu0 }
 0xdd1   : > { %v3349_v31 = vmax.f32 %v3343_v30, 0.0  ;;  %v7235_v26 = vpop.f32.mrb[85].mxu0 }
 0xdd2   : > { %v3346_v27 = vpop.f32.mrb[86].mxu0 }
 0xdd3   : > { %v3350_v29 = vpack.c.bf16 %v3349_v31, %v3349_v31  ;;  %v7236_v32 = vpop.f32.mrb[87].mxu0 }
 0xdd5   : > { %7246 = vmatmul.mubr.msk.bf16.vlgmr.msra.gmra.mrb[84].mxu1 %vm3375_vm9, %v3350_v29 }
 0xdd6   : > { %7269 = vmatprep.mubr.msk.bf16.mxu1 %vm7885_vm0, %v7884_v1  ;;  %7266 = vmatpush3.bf16.msra.mxu1 %v7684_v49 }
 0xdd7   : > { %7267 = vmatprep.subr.bf16.mxu1 %v7884_v1 }
 0xdda   : > { %7268 = vmatpush3.bf16.msra.mxu1 %v7686_v51 }
 0xddb   : > { %7281 = vmatprep.subr.bf16.mxu1 %v7884_v1 }
 0xea8   : > { %v3413_v33 = vpop.f32.mrb[84].mxu1 }
 0xea9   : > { %v3414_v34 = vadd.f32 %v3413_v33, %v3277_v22  ;;  %v7247_v20 = vpop.f32.mrb[85].mxu1  ;;  %v7705_v22 = vld [vmem:[%s9352_s28 + $0x70] sm:$0xff]  }
 0xeaa   : > { %v3416_v38 = vpop.f32.mrb[86].mxu1 }
 0xeab   : > { %v7248_v39 = vpop.f32.mrb[87].mxu1  ;;  %v3419_v21 = vsel %vm865_vm1, %v3414_v34, 0.0 }
 0xeac   : > { %3420 = vadd.xlane.f32.xlu0 %v3419_v21 }
 0xf39   : > { %v3421_v41 = vpop.xlane.xlu0 %3420 }
 0xf3a   : > { %v3422_v43 = vmul.f32 0.03125, %v3421_v41 }
 0xf3c   : > { %v3423_v44 = vsub.f32 %v3414_v34, %v3422_v43 }
 0xf3e   : > { %v3424_v45 = vmul.f32 %v3423_v44, %v3423_v44 }
 0xf40   : > { %v3425_v46 = vsel %vm865_vm1, %v3424_v45, 0.0 }
 0xf41   : > { %3426 = vadd.xlane.f32.xlu1 %v3425_v46 }
 0xfce   : > { %v3427_v52 = vpop.xlane.xlu1 %3426 }
 0xfcf   : > { %v3428_v53 = vmul.f32 0.03125, %v3427_v52 }
 0xfd1   : > { %v3429_v54 = vadd.f32 1e-05, %v3428_v53 }
 0xfd3   : > { %7779 = vrsqrt.f32 %v3429_v54 }
 0xfdd   : > { %v7780_v55 = vpop.eup %7779 }
 0xfde   : > { %v3431_v57 = vmul.f32 %v7780_v55, %v3423_v44 }
 0xfe0   : > { %v3438_v59 = vmul.f32 %v6443_v56, %v3431_v57 }
 0xfe2   : > { %v8654_v60 = vadd.f32 %v6444_v58, %v3438_v59 }
 0xfe4   : > { %v8664_v2 = vpack.c.bf16 %v8654_v60, %v8654_v60 }
 0xfe6   : > { %7254 = vmatmul.mubr.msk.bf16.vlgmr.msra.gmra.mrb[88].mxu0 %vm865_vm1, %v8664_v2  ;;  %7270 = vmatmul.mubr.msk.bf16.vlgmr.msra.gmra.mrb[88].mxu1 %vm865_vm1, %v8664_v2 }
 0xfe7   : > { %7258 = vmatpush3.bf16.msra.mxu0 %v7687_v61  ;;  %7282 = vmatpush3.bf16.msra.mxu1 %v7688_v62 }
 0xfe8   : > { %7259 = vmatprep.subr.bf16.mxu0 %v7884_v1  ;;  %7283 = vmatprep.subr.bf16.mxu1 %v7884_v1 }
 0xfe9   : > { %7261 = vmatprep.mubr.msk.bf16.mxu0 %vm7885_vm0, %v7884_v1  ;;  %7285 = vmatprep.mubr.msk.bf16.mxu1 %vm7885_vm0, %v7884_v1 }
 0xfeb   : > { %7260 = vmatpush3.bf16.msra.mxu0 %v7689_v3  ;;  %7284 = vmatpush3.bf16.msra.mxu1 %v7690_v4 }
 0xfec   : > { %7273 = vmatprep.subr.bf16.mxu0 %v7884_v1  ;;  %7297 = vmatprep.subr.bf16.mxu1 %v7884_v1 }
 0xfee   : > { %7262 = vmatmul.mubr.msk.bf16.vlgmr.msra.gmra.mrb[92].mxu0 %vm865_vm1, %v8664_v2  ;;  %7286 = vmatmul.mubr.msk.bf16.vlgmr.msra.gmra.mrb[92].mxu1 %vm865_vm1, %v8664_v2 }
 0xfef   : > { %7274 = vmatpush3.bf16.msra.mxu0 %v7691_v5  ;;  %7298 = vmatpush3.bf16.msra.mxu1 %v7692_v6 }
 0xff0   : > { %7275 = vmatprep.subr.bf16.mxu0 %v7884_v1  ;;  %7299 = vmatprep.subr.bf16.mxu1 %v7884_v1 }
 0xff1   : > { %7277 = vmatprep.mubr.msk.bf16.mxu0 %vm7885_vm0, %v7884_v1  ;;  %7301 = vmatprep.mubr.msk.bf16.mxu1 %vm7885_vm0, %v7884_v1 }
 0xff3   : > { %7276 = vmatpush3.bf16.msra.mxu0 %v7693_v35  ;;  %7300 = vmatpush3.bf16.msra.mxu1 %v7694_v7 }
 0xff4   : > { %7289 = vmatprep.subr.bf16.mxu0 %v7884_v1  ;;  %7313 = vmatprep.subr.bf16.mxu1 %v7884_v1 }
 0xff6   : > { %7278 = vmatmul.mubr.msk.bf16.vlgmr.msra.gmra.mrb[96].mxu0 %vm865_vm1, %v8664_v2  ;;  %7302 = vmatmul.mubr.msk.bf16.vlgmr.msra.gmra.mrb[96].mxu1 %vm865_vm1, %v8664_v2 }
 0xff7   : > { %7290 = vmatpush3.bf16.msra.mxu0 %v7695_v8  ;;  %7314 = vmatpush3.bf16.msra.mxu1 %v7696_v9 }
 0xff8   : > { %7291 = vmatprep.subr.bf16.mxu0 %v7884_v1  ;;  %7315 = vmatprep.subr.bf16.mxu1 %v7884_v1 }
 0xff9   : > { %7293 = vmatprep.mubr.msk.bf16.mxu0 %vm7885_vm0, %v7884_v1  ;;  %7317 = vmatprep.mubr.msk.bf16.mxu1 %vm7885_vm0, %v7884_v1 }
 0xffb   : > { %7292 = vmatpush3.bf16.msra.mxu0 %v7697_v11  ;;  %7316 = vmatpush3.bf16.msra.mxu1 %v7698_v13 }
 0xffc   : > { %7305 = vmatprep.subr.bf16.mxu0 %v7884_v1  ;;  %7329 = vmatprep.subr.bf16.mxu1 %v7884_v1 }
 0xffe   : > { %7294 = vmatmul.mubr.msk.bf16.vlgmr.msra.gmra.mrb[100].mxu0 %vm865_vm1, %v8664_v2  ;;  %7318 = vmatmul.mubr.msk.bf16.vlgmr.msra.gmra.mrb[100].mxu1 %vm865_vm1, %v8664_v2 }
 0xfff   : > { %7306 = vmatpush3.bf16.msra.mxu0 %v7699_v14  ;;  %7330 = vmatpush3.bf16.msra.mxu1 %v7700_v15 }
0x1000   : > { %7307 = vmatprep.subr.bf16.mxu0 %v7884_v1  ;;  %7331 = vmatprep.subr.bf16.mxu1 %v7884_v1 }
0x1001   : > { %7309 = vmatprep.mubr.msk.bf16.mxu0 %vm7885_vm0, %v7884_v1  ;;  %7333 = vmatprep.mubr.msk.bf16.mxu1 %vm7885_vm0, %v7884_v1 }
0x1003   : > { %7308 = vmatpush3.bf16.msra.mxu0 %v7701_v16  ;;  %7332 = vmatpush3.bf16.msra.mxu1 %v7702_v63 }
0x1004   : > { %7321 = vmatprep.subr.bf16.mxu0 %v7884_v1  ;;  %7345 = vmatprep.subr.bf16.mxu1 %v7884_v1 }
0x1006   : > { %7310 = vmatmul.mubr.msk.bf16.vlgmr.msra.gmra.mrb[104].mxu0 %vm865_vm1, %v8664_v2  ;;  %7334 = vmatmul.mubr.msk.bf16.vlgmr.msra.gmra.mrb[104].mxu1 %vm865_vm1, %v8664_v2 }
0x1007   : > { %7322 = vmatpush3.bf16.msra.mxu0 %v7703_v18  ;;  %7325 = vmatprep.mubr.msk.bf16.mxu0 %vm7885_vm0, %v7884_v1 }
0x1008   : > { %7323 = vmatprep.subr.bf16.mxu0 %v7884_v1  ;;  %7347 = vmatprep.mubr.msk.bf16.mxu1 %vm7885_vm0, %v7884_v1 }
0x100b   : > { %7324 = vmatpush3.bf16.msra.mxu0 %v7704_v19 }
0x100c   : > { %7337 = vmatprep.subr.bf16.mxu0 %v7884_v1 }
0x100e   : > { %7326 = vmatmul.mubr.msk.bf16.vlgmr.msra.gmra.mrb[108].mxu0 %vm865_vm1, %v8664_v2 }
0x100f   : > { %7338 = vmatpush3.bf16.msra.mxu0 %v7705_v22  ;;  %7341 = vmatprep.mubr.msk.bf16.mxu0 %vm7885_vm0, %v7884_v1 }
0x1010   : > { %7339 = vmatprep.subr.bf16.mxu0 %v7884_v1 }
0x1013   : > { %7340 = vmatpush3.bf16.msra.mxu0 %v7706_v24 }
0x1014   : > { %7351 = vmatprep.subr.bf16.mxu0 %v7884_v1 }
0x1016   : > { %7342 = vmatmul.mubr.msk.bf16.vlgmr.msra.gmra.mrb[112].mxu0 %vm865_vm1, %v8664_v2 }
0x1017   : > { %7353 = vmatprep.mubr.msk.bf16.mxu0 %vm7885_vm0, %v7884_v1 }
0x10b9   : > { %v3556_v25 = vpop.f32.mrb[88].mxu0  ;;  %v3660_v30 = vpop.f32.mrb[88].mxu1 }
0x10ba   : > { %v7255_v31 = vpop.f32.mrb[89].mxu0  ;;  %v7271_v26 = vpop.f32.mrb[89].mxu1  ;;  %v4134_v50 = vpack.c.bf16 %v3556_v25, %v3556_v25  ;;  %v4136_v62 = vpack.c.bf16 %v3660_v30, %v3660_v30 }
0x10bb   : > { %v3559_v27 = vpop.f32.mrb[90].mxu0  ;;  %v3663_v29 = vpop.f32.mrb[90].mxu1 }
0x10bc   : > { %v7256_v32 = vpop.f32.mrb[91].mxu0  ;;  %v7272_v33 = vpop.f32.mrb[91].mxu1 }
0x10c1   : > { %v3608_v34 = vpop.f32.mrb[92].mxu0  ;;  %v3764_v20 = vpop.f32.mrb[92].mxu1 }
0x10c2   : > { %v4138_v38 = vpack.c.bf16 %v3764_v20, %v3764_v20  ;;  %v7263_v39 = vpop.f32.mrb[93].mxu0  ;;  %v7287_v21 = vpop.f32.mrb[93].mxu1  ;;  %v4135_v15 = vpack.c.bf16 %v3608_v34, %v3608_v34 }
0x10c3   : > { %v3611_v41 = vpop.f32.mrb[94].mxu0  ;;  %v3767_v43 = vpop.f32.mrb[94].mxu1 }
0x10c4   : > { %v4146_v44 = vsel %vm1489_vm2, %v4138_v38, 0  ;;  %v7264_v45 = vpop.f32.mrb[95].mxu0  ;;  %v7288_v46 = vpop.f32.mrb[95].mxu1 }
0x10c5   : > { %7346 = vmatpush3.bf16.xpose.msra.mxu1 %v4146_v44 }
0x10c6   : > { %7357 = vmatprep.subr.bf16.mxu1 %v7884_v1 }
0x10c9   : > { %v3712_v47 = vpop.f32.mrb[96].mxu0  ;;  %v3868_v49 = vpop.f32.mrb[96].mxu1 }
0x10ca   : > { %v4140_v51 = vpack.c.bf16 %v3868_v49, %v3868_v49  ;;  %v7279_v52 = vpop.f32.mrb[97].mxu0  ;;  %v7303_v53 = vpop.f32.mrb[97].mxu1  ;;  %v4137_v26 = vpack.c.bf16 %v3712_v47, %v3712_v47 }
0x10cb   : > { %v3715_v54 = vpop.f32.mrb[98].mxu0  ;;  %v3871_v55 = vpop.f32.mrb[98].mxu1 }
0x10cc   : > { %v4238_v56 = vsel %vm1489_vm2, %v4140_v51, 0  ;;  %v7280_v57 = vpop.f32.mrb[99].mxu0  ;;  %v7304_v58 = vpop.f32.mrb[99].mxu1  ;;  %7348 = vmatmul.mubr.msk.bf16.vlgmr.msra.gmra.mrb[108].mxu1 %vm1489_vm2, %v4134_v50 }
0x10cd   : > { %7358 = vmatpush3.bf16.xpose.msra.mxu1 %v4238_v56  ;;  %7359 = vmatprep.mubr.msk.bf16.mxu1 %vm7885_vm0, %v7884_v1 }
0x10ce   : > { %7369 = vmatprep.subr.bf16.mxu1 %v7884_v1 }
0x10d1   : > { %v3816_v59 = vpop.f32.mrb[100].mxu0  ;;  %v3972_v61 = vpop.f32.mrb[100].mxu1 }
0x10d2   : > { %v4139_v2 = vpack.c.bf16 %v3816_v59, %v3816_v59  ;;  %v4382_v3 = vpack.c.bf16 %v3972_v61, %v3972_v61  ;;  %v7295_v4 = vpop.f32.mrb[101].mxu0  ;;  %v7319_v5 = vpop.f32.mrb[101].mxu1 }
0x10d3   : > { %v3819_v6 = vpop.f32.mrb[102].mxu0  ;;  %v3975_v35 = vpop.f32.mrb[102].mxu1 }
0x10d4   : > { %v4192_v7 = vsel %vm1489_vm2, %v4139_v2, 0  ;;  %v4390_v8 = vsel %vm1737_vm3, %v4382_v3, 0  ;;  %v7296_v9 = vpop.f32.mrb[103].mxu0  ;;  %v7320_v11 = vpop.f32.mrb[103].mxu1  ;;  %7360 = vmatmul.mubr.msk.bf16.vlgmr.msra.gmra.mrb[112].mxu1 %vm1489_vm2, %v4136_v62 }
0x10d5   : > { %7352 = vmatpush3.bf16.xpose.msra.mxu0 %v4192_v7  ;;  %7370 = vmatpush3.bf16.msra.mxu1 %v4390_v8 }
0x10d6   : > { %7363 = vmatprep.subr.bf16.mxu0 %v7884_v1  ;;  %7371 = vmatprep.mubr.msk.bf16.mxu1 %vm7885_vm0, %v7884_v1 }
0x10d7   : > { %7381 = vmatprep.subr.bf16.mxu1 %v7884_v1 }
0x10d9   : > { %v3920_v13 = vpop.f32.mrb[104].mxu0  ;;  %v8802_v14 = vpop.f32.mrb[104].mxu1 }
0x10da   : > { %v4141_v16 = vpack.c.bf16 %v3920_v13, %v3920_v13  ;;  %v7311_v63 = vpop.f32.mrb[105].mxu0  ;;  %v7335_v18 = vpop.f32.mrb[105].mxu1 }
0x10db   : > { %v3923_v19 = vpop.f32.mrb[106].mxu0  ;;  %v4079_v22 = vpop.f32.mrb[106].mxu1 }
0x10dc   : > { %v4284_v24 = vsel %vm1489_vm2, %v4141_v16, 0  ;;  %v7312_v25 = vpop.f32.mrb[107].mxu0  ;;  %v7336_v30 = vpop.f32.mrb[107].mxu1  ;;  %7354 = vmatmul.mubr.msk.bf16.vlgmr.msra.gmra.mrb[116].mxu0 %vm1489_vm2, %v4135_v15 }
0x10dd   : > { %7364 = vmatpush3.bf16.xpose.msra.mxu0 %v4284_v24  ;;  %7365 = vmatprep.mubr.msk.bf16.mxu0 %vm7885_vm0, %v7884_v1 }
0x10de   : > { %7375 = vmatprep.subr.bf16.mxu0 %v7884_v1 }
0x10e1   : > { %v4024_v31 = vpop.f32.mrb[108].mxu0 }
0x10e2   : > { %v4383_v27 = vpack.c.bf16 %v4024_v31, %v4024_v31  ;;  %v7327_v29 = vpop.f32.mrb[109].mxu0 }
0x10e3   : > { %v4027_v32 = vpop.f32.mrb[110].mxu0 }
0x10e4   : > { %v4436_v33 = vsel %vm1737_vm3, %v4383_v27, 0  ;;  %v7328_v34 = vpop.f32.mrb[111].mxu0  ;;  %7366 = vmatmul.mubr.msk.bf16.vlgmr.msra.gmra.mrb[120].mxu0 %vm1489_vm2, %v4137_v26 }
0x10e5   : > { %7376 = vmatpush3.bf16.msra.mxu0 %v4436_v33  ;;  %7377 = vmatprep.mubr.msk.bf16.mxu0 %vm7885_vm0, %v7884_v1 }
0x10e6   : > { %7387 = vmatprep.subr.bf16.mxu0 %v7884_v1 }
0x10e9   : > { %v8814_v20 = vpop.f32.mrb[112].mxu0 }
0x10ea   : > { %v7343_v38 = vpop.f32.mrb[113].mxu0 }
0x10eb   : > { %v4131_v39 = vpop.f32.mrb[114].mxu0 }
0x10ec   : > { %v7344_v21 = vpop.f32.mrb[115].mxu0 }
0x119f   : > { %v4182_v41 = vpop.f32.mrb[108].mxu1 }
0x11a0   : > { %v4326_v43 = vmul.f32 0.35355338, %v4182_v41  ;;  %v7349_v44 = vpop.f32.mrb[109].mxu1 }
0x11a1   : > { %v4185_v45 = vpop.f32.mrb[110].mxu1 }
0x11a2   : > { %v7350_v46 = vpop.f32.mrb[111].mxu1  ;;  %v4330_v47 = vadd.f32 %v4326_v43, %v8262_v37  ;;  %v4384_v43 = vpack.c.bf16 %v8802_v14, %v8802_v14 }
0x11a4   : > { %v4334_v49 = vsel %vm1489_vm2, %v4330_v47, -inf  ;;  %v4482_v46 = vsel %vm1737_vm3, %v4384_v43, 0 }
0x11a5   : > { %4335 = vmax.xlane.f32.xlu0 %v4334_v49 }
0x11a7   : > { %v4274_v50 = vpop.f32.mrb[112].mxu1 }
0x11a8   : > { %v4328_v51 = vmul.f32 0.35355338, %v4274_v50  ;;  %v7361_v52 = vpop.f32.mrb[113].mxu1 }
0x11a9   : > { %v4277_v53 = vpop.f32.mrb[114].mxu1 }
0x11aa   : > { %v7362_v54 = vpop.f32.mrb[115].mxu1  ;;  %v4332_v55 = vadd.f32 %v4328_v51, %v8262_v37  ;;  %v4385_v53 = vpack.c.bf16 %v8814_v20, %v8814_v20 }
0x11ac   : > { %v4340_v56 = vsel %vm1489_vm2, %v4332_v55, -inf }
0x11ad   : > { %4341 = vmax.xlane.f32.xlu0 %v4340_v56  ;;  %v4528_v56 = vsel %vm1737_vm3, %v4385_v53, 0  ;;  %v6546_v53 = vld [vmem:[%s9289_s8 + $0x1] ss:$0 sm:$0xff] }
0x11af   : > { %v4228_v57 = vpop.f32.mrb[116].mxu0 }
0x11b0   : > { %v4327_v58 = vmul.f32 0.35355338, %v4228_v57  ;;  %v7355_v59 = vpop.f32.mrb[117].mxu0 }
0x11b1   : > { %v4231_v61 = vpop.f32.mrb[118].mxu0 }
0x11b2   : > { %v7356_v62 = vpop.f32.mrb[119].mxu0  ;;  %v4331_v2 = vadd.f32 %v4327_v58, %v8262_v37 }
0x11b4   : > { %v4337_v3 = vsel %vm1489_vm2, %v4331_v2, -inf }
0x11b5   : > { %4338 = vmax.xlane.f32.xlu1 %v4337_v3  ;;  %v7707_v3 = vld [vmem:[%s9354_s29 + $0x10] sm:$0xff]  }
0x11b7   : > { %v4320_v4 = vpop.f32.mrb[120].mxu0 }
0x11b8   : > { %v4329_v5 = vmul.f32 0.35355338, %v4320_v4  ;;  %v7367_v6 = vpop.f32.mrb[121].mxu0 }
0x11b9   : > { %v4323_v35 = vpop.f32.mrb[122].mxu0 }
0x11ba   : > { %v7368_v7 = vpop.f32.mrb[123].mxu0  ;;  %v4333_v8 = vadd.f32 %v4329_v5, %v8262_v37 }
0x11bb   : > { %v7708_v7 = vld [vmem:[%s9354_s29 + $0x18] sm:$0xff]  }
0x11bc   : > { %v4343_v9 = vsel %vm1489_vm2, %v4333_v8, -inf }
0x11bd   : > { %4344 = vmax.xlane.f32.xlu1 %v4343_v9 }
0x1232   : > { %v4336_v11 = vpop.xlane.xlu0 %4335 }
0x1233   : > { %v4346_v13 = vsub.f32 %v4330_v47, %v4336_v11 }
0x1235   : > { %v4350_v15 = vmul.f32 1.442695, %v4346_v13 }
0x1237   : > { %7781 = vpow2.f32 %v4350_v15 }
0x123a   : > { %v4342_v16 = vpop.xlane.xlu0 %4341 }
0x123b   : > { %v4348_v63 = vsub.f32 %v4332_v55, %v4342_v16 }
0x123d   : > { %v4354_v18 = vmul.f32 1.442695, %v4348_v63 }
0x123f   : > { %7783 = vpow2.f32 %v4354_v18 }
0x1241   : > { %v7782_v19 = vpop.eup %7781 }
0x1242   : > { %v4339_v22 = vpop.xlane.xlu1 %4338  ;;  %v4358_v24 = vsel %vm1489_vm2, %v7782_v19, 0.0 }
0x1243   : > { %v4347_v25 = vsub.f32 %v4331_v2, %v4339_v22  ;;  %4359 = vadd.xlane.f32.xlu0 %v4358_v24 }
0x1245   : > { %v4352_v30 = vmul.f32 1.442695, %v4347_v25 }
0x1247   : > { %7785 = vpow2.f32 %v4352_v30 }
0x1249   : > { %v7784_v37 = vpop.eup %7783 }
0x124a   : > { %v4345_v31 = vpop.xlane.xlu1 %4344  ;;  %v4364_v26 = vsel %vm1489_vm2, %v7784_v37, 0.0 }
0x124b   : > { %v4349_v27 = vsub.f32 %v4333_v8, %v4345_v31  ;;  %4365 = vadd.xlane.f32.xlu0 %v4364_v26 }
0x124d   : > { %v4356_v29 = vmul.f32 1.442695, %v4349_v27 }
0x124f   : > { %7787 = vpow2.f32 %v4356_v29 }
0x1251   : > { %v7786_v32 = vpop.eup %7785 }
0x1252   : > { %v4361_v33 = vsel %vm1489_vm2, %v7786_v32, 0.0 }
0x1253   : > { %4362 = vadd.xlane.f32.xlu1 %v4361_v33 }
0x1259   : > { %v7788_v34 = vpop.eup %7787 }
0x125a   : > { %v4367_v38 = vsel %vm1489_vm2, %v7788_v34, 0.0 }
0x125b   : > { %4368 = vadd.xlane.f32.xlu1 %v4367_v38 }
0x12d0   : > { %v4360_v39 = vpop.xlane.xlu0 %4359 }
0x12d1   : > { %7789 = vrcp.f32 %v4360_v39 }
0x12d8   : > { %v4366_v21 = vpop.xlane.xlu0 %4365 }
0x12d9   : > { %7791 = vrcp.f32 %v4366_v21 }
0x12db   : > { %v7790_v41 = vpop.eup %7789 }
0x12dc   : > { %v8830_v44 = vmul.f32 %v7790_v41, %v7782_v19 }
0x12de   : > { %v4378_v45 = vpack.c.bf16 %v8830_v44, %v8830_v44 }
0x12e0   : > { %7372 = vmatmul.mubr.msk.bf16.vlgmr.msra.gmra.mrb[116].mxu1 %vm1489_vm2, %v4378_v45  ;;  %v4363_v47 = vpop.xlane.xlu1 %4362  ;;  %v7709_v45 = vld [vmem:[%s9291_s10 + $0x40] sm:$0xff]  }
0x12e1   : > { %7382 = vmatpush3.bf16.msra.mxu1 %v4482_v46  ;;  %7793 = vrcp.f32 %v4363_v47  ;;  %7383 = vmatprep.mubr.msk.bf16.mxu1 %vm7885_vm0, %v7884_v1  ;;  %v7711_v46 = vld [vmem:[%s9291_s10 + $0x48] sm:$0xff]   ;;  %v7712_v47 = vld [vmem:[%s9291_s10 + $0x58] sm:$0xff]  }
0x12e2   : > { %7393 = vmatprep.subr.bf16.mxu1 %v7884_v1 }
0x12e3   : > { %v7792_v49 = vpop.eup %7791 }
0x12e4   : > { %v8839_v50 = vmul.f32 %v7792_v49, %v7784_v37 }
0x12e6   : > { %v4380_v14 = vpack.c.bf16 %v8839_v50, %v8839_v50 }
0x12e8   : > { %7384 = vmatmul.mubr.msk.bf16.vlgmr.msra.gmra.mrb[120].mxu1 %vm1489_vm2, %v4380_v14  ;;  %v4369_v51 = vpop.xlane.xlu1 %4368 }
0x12e9   : > { %7795 = vrcp.f32 %v4369_v51  ;;  %7397 = vmatprep.mubr.msk.bf16.mxu1 %vm7885_vm0, %v7884_v1  ;;  %7394 = vmatpush3.bf16.msra.mxu1 %v7707_v3  ;;  %v7716_v3 = vld [vmem:[%s9291_s10 + $0x78] sm:$0xff]  }
0x12ea   : > { %7395 = vmatprep.subr.bf16.mxu1 %v7884_v1 }
0x12eb   : > { %v7794_v52 = vpop.eup %7793 }
0x12ec   : > { %v8848_v54 = vmul.f32 %v7794_v52, %v7786_v32 }
0x12ed   : > { %7396 = vmatpush3.bf16.msra.mxu1 %v7708_v7  ;;  %v7721_v7 = vld [vmem:[%s9292_s11 + $0x60] sm:$0xff]  }
0x12ee   : > { %v4379_v55 = vpack.c.bf16 %v8848_v54, %v8848_v54  ;;  %7409 = vmatprep.subr.bf16.mxu1 %v7884_v1 }
0x12f0   : > { %7378 = vmatmul.mubr.msk.bf16.vlgmr.msra.gmra.mrb[124].mxu0 %vm1489_vm2, %v4379_v55 }
0x12f1   : > { %7388 = vmatpush3.bf16.msra.mxu0 %v4528_v56  ;;  %7389 = vmatprep.mubr.msk.bf16.mxu0 %vm7885_vm0, %v7884_v1  ;;  %v6547_v56 = vld [vmem:[%s9290_s9 + $0x1] ss:$0 sm:$0xff] }
0x12f2   : > { %7401 = vmatprep.subr.bf16.mxu0 %v7884_v1 }
0x12f3   : > { %v7796_v57 = vpop.eup %7795 }
0x12f4   : > { %v8857_v58 = vmul.f32 %v7796_v57, %v7788_v34 }
0x12f6   : > { %v4381_v20 = vpack.c.bf16 %v8857_v58, %v8857_v58 }
0x12f8   : > { %7390 = vmatmul.mubr.msk.bf16.vlgmr.msra.gmra.mrb[128].mxu0 %vm1489_vm2, %v4381_v20 }
0x12f9   : > { %7405 = vmatprep.mubr.msk.bf16.mxu0 %vm7885_vm0, %v7884_v1  ;;  %7402 = vmatpush3.bf16.msra.mxu0 %v7709_v45 }
0x12fa   : > { %7403 = vmatprep.subr.bf16.mxu0 %v7884_v1 }
0x12fd   : > { %7404 = vmatpush3.bf16.msra.mxu0 %v7711_v46 }
0x12fe   : > { %7417 = vmatprep.subr.bf16.mxu0 %v7884_v1 }
0x13b3   : > { %v4426_v59 = vpop.f32.mrb[116].mxu1 }
0x13b4   : > { %v7373_v61 = vpop.f32.mrb[117].mxu1 }
0x13b5   : > { %v4429_v62 = vpop.f32.mrb[118].mxu1  ;;  %v7714_v61 = vld [vmem:[%s9291_s10 + $0x70] sm:$0xff]  }
0x13b6   : > { %v7374_v2 = vpop.f32.mrb[119].mxu1 }
0x13b7   : > { %v7715_v2 = vld [vmem:[%s9291_s10 + $0x68] sm:$0xff]  }
0x13bb   : > { %v4518_v4 = vpop.f32.mrb[120].mxu1 }
0x13bc   : > { %v7385_v5 = vpop.f32.mrb[121].mxu1  ;;  %4575 = vrot.lane.b32.xlu1 %v4518_v4, %s9359_s25  ;;  %v7717_v4 = vld [vmem:[%s9292_s11 + $0x40] sm:$0xff]  }
0x13bd   : > { %v4521_v6 = vpop.f32.mrb[122].mxu1  ;;  %v7718_v5 = vld [vmem:[%s9292_s11 + $0x50] sm:$0xff]  }
0x13be   : > { %v7386_v35 = vpop.f32.mrb[123].mxu1  ;;  %v7719_v6 = vld [vmem:[%s9292_s11 + $0x48] sm:$0xff]  }
0x13bf   : > { %v7720_v35 = vld [vmem:[%s9292_s11 + $0x58] sm:$0xff]  }
0x13c3   : > { %v4472_v8 = vpop.f32.mrb[124].mxu0 }
0x13c4   : > { %4571 = vrot.lane.b32.xlu0 %v4472_v8, %s9358_s6  ;;  %v7379_v9 = vpop.f32.mrb[125].mxu0  ;;  %v7722_v8 = vld [vmem:[%s9292_s11 + $0x70] sm:$0xff]  }
0x13c5   : > { %v4475_v11 = vpop.f32.mrb[126].mxu0  ;;  %v7723_v9 = vld [vmem:[%s9292_s11 + $0x68] sm:$0xff]  }
0x13c6   : > { %v7380_v13 = vpop.f32.mrb[127].mxu0  ;;  %v7724_v11 = vld [vmem:[%s9292_s11 + $0x78] sm:$0xff]  }
0x13c7   : > { %v7725_v13 = vld [vmem:[%s9293_s12 + $0x40] sm:$0xff]  }
0x13cb   : > { %v4564_v15 = vpop.f32.mrb[128].mxu0 }
0x13cc   : > { %4579 = vrot.lane.b32.xlu1 %v4564_v15, %s9360_s26  ;;  %v7391_v16 = vpop.f32.mrb[129].mxu0  ;;  %v7726_v15 = vld [vmem:[%s9293_s12 + $0x50] sm:$0xff]  }
0x13cd   : > { %v4567_v63 = vpop.f32.mrb[130].mxu0  ;;  %v7727_v16 = vld [vmem:[%s9293_s12 + $0x48] sm:$0xff]  }
0x13ce   : > { %v7392_v18 = vpop.f32.mrb[131].mxu0  ;;  %v7728_v63 = vld [vmem:[%s9293_s12 + $0x58] sm:$0xff]  }
0x13cf   : > { %v7729_v18 = vld [vmem:[%s9293_s12 + $0x60] sm:$0xff]  }
0x142e   : > { %v4576_v22 = vpop.permute.xlu1 %4575 }
0x1436   : > { %v4572_v19 = vpop.permute.xlu0 %4571 }
0x1437   : > { %v4582_v24 = vsel %vm1489_vm2, %v4426_v59, %v4572_v19  ;;  %v7713_v59 = vld [vmem:[%s9291_s10 + $0x60] sm:$0xff]   ;;  %v7730_v19 = vld [vmem:[%s9293_s12 + $0x70] sm:$0xff]  }
0x1438   : > { %v4583_v25 = vsel %vm1932_vm6, %v4582_v24, %v4576_v22  ;;  %v7731_v22 = vld [vmem:[%s9293_s12 + $0x68] sm:$0xff]   ;;  %v7732_v24 = vld [vmem:[%s9293_s12 + $0x78] sm:$0xff]  }
0x143e   : > { %v4580_v30 = vpop.permute.xlu1 %4579 }
0x143f   : > { %v4584_v37 = vsel %vm1934_vm7, %v4583_v25, %v4580_v30 }
0x1440   : > { %v4585_v31 = vpack.c.bf16 %v4584_v37, %v4584_v37 }
0x1442   : > { %7398 = vmatmul.mubr.msk.bf16.vlgmr.msra.gmra.mrb[124].mxu1 %vm865_vm1, %v4585_v31 }
0x1443   : > { %7413 = vmatprep.mubr.msk.bf16.mxu1 %vm7885_vm0, %v7884_v1 }
0x1515   : > { %v4635_v26 = vpop.f32.mrb[124].mxu1 }
0x1516   : > { %v4641_v27 = vadd.f32 %v4635_v26, %v8654_v60  ;;  %v7399_v29 = vpop.f32.mrb[125].mxu1  ;;  %v7710_v60 = vld [vmem:[%s9291_s10 + $0x50] sm:$0xff]  }
0x1517   : > { %v4638_v32 = vpop.f32.mrb[126].mxu1  ;;  %7410 = vmatpush3.bf16.msra.mxu1 %v7710_v60 }
0x1518   : > { %v7400_v33 = vpop.f32.mrb[127].mxu1  ;;  %v4657_v34 = vsel %vm865_vm1, %v4641_v27, 0.0  ;;  %7411 = vmatprep.subr.bf16.mxu1 %v7884_v1 }
0x1519   : > { %4658 = vadd.xlane.f32.xlu1 %v4657_v34 }
0x151b   : > { %7412 = vmatpush3.bf16.msra.mxu1 %v7712_v47 }
0x151c   : > { %7425 = vmatprep.subr.bf16.mxu1 %v7884_v1 }
0x15a6   : > { %v4659_v38 = vpop.xlane.xlu1 %4658 }
0x15a7   : > { %v4660_v39 = vmul.f32 0.03125, %v4659_v38 }
0x15a9   : > { %v4661_v21 = vsub.f32 %v4641_v27, %v4660_v39 }
0x15ab   : > { %v4662_v41 = vmul.f32 %v4661_v21, %v4661_v21 }
0x15ad   : > { %v4663_v43 = vsel %vm865_vm1, %v4662_v41, 0.0 }
0x15ae   : > { %4664 = vadd.xlane.f32.xlu0 %v4663_v43 }
0x163b   : > { %v4665_v49 = vpop.xlane.xlu0 %4664 }
0x163c   : > { %v4666_v14 = vmul.f32 0.03125, %v4665_v49 }
0x163e   : > { %v4667_v51 = vadd.f32 1e-05, %v4666_v14 }
0x1640   : > { %7797 = vrsqrt.f32 %v4667_v51 }
0x164a   : > { %v7798_v52 = vpop.eup %7797 }
0x164b   : > { %v4669_v55 = vmul.f32 %v7798_v52, %v4661_v21 }
0x164d   : > { %v4676_v57 = vmul.f32 %v6546_v53, %v4669_v55 }
0x164f   : > { %v8906_v20 = vadd.f32 %v6547_v56, %v4676_v57 }
0x1651   : > { %v4686_v62 = vpack.c.bf16 %v8906_v20, %v8906_v20 }
0x1653   : > { %7406 = vmatmul.mubr.msk.bf16.vlgmr.msra.gmra.mrb[132].mxu0 %vm865_vm1, %v4686_v62  ;;  %7414 = vmatmul.mubr.msk.bf16.vlgmr.msra.gmra.mrb[128].mxu1 %vm865_vm1, %v4686_v62 }
0x1654   : > { %7418 = vmatpush3.bf16.msra.mxu0 %v7713_v59  ;;  %7426 = vmatpush3.bf16.msra.mxu1 %v7714_v61 }
0x1655   : > { %7419 = vmatprep.subr.bf16.mxu0 %v7884_v1  ;;  %7427 = vmatprep.subr.bf16.mxu1 %v7884_v1 }
0x1656   : > { %7421 = vmatprep.mubr.msk.bf16.mxu0 %vm7885_vm0, %v7884_v1  ;;  %7429 = vmatprep.mubr.msk.bf16.mxu1 %vm7885_vm0, %v7884_v1 }
0x1658   : > { %7420 = vmatpush3.bf16.msra.mxu0 %v7715_v2  ;;  %7428 = vmatpush3.bf16.msra.mxu1 %v7716_v3 }
0x1659   : > { %7433 = vmatprep.subr.bf16.mxu0 %v7884_v1  ;;  %7441 = vmatprep.subr.bf16.mxu1 %v7884_v1 }
0x165b   : > { %7422 = vmatmul.mubr.msk.bf16.vlgmr.msra.gmra.mrb[136].mxu0 %vm865_vm1, %v4686_v62  ;;  %7430 = vmatmul.mubr.msk.bf16.vlgmr.msra.gmra.mrb[132].mxu1 %vm865_vm1, %v4686_v62 }
0x165c   : > { %7434 = vmatpush3.bf16.msra.mxu0 %v7717_v4  ;;  %7442 = vmatpush3.bf16.msra.mxu1 %v7718_v5 }
0x165d   : > { %7435 = vmatprep.subr.bf16.mxu0 %v7884_v1  ;;  %7443 = vmatprep.subr.bf16.mxu1 %v7884_v1 }
0x165e   : > { %7437 = vmatprep.mubr.msk.bf16.mxu0 %vm7885_vm0, %v7884_v1  ;;  %7445 = vmatprep.mubr.msk.bf16.mxu1 %vm7885_vm0, %v7884_v1 }
0x1660   : > { %7436 = vmatpush3.bf16.msra.mxu0 %v7719_v6  ;;  %7444 = vmatpush3.bf16.msra.mxu1 %v7720_v35 }
0x1661   : > { %7449 = vmatprep.subr.bf16.mxu0 %v7884_v1  ;;  %7457 = vmatprep.subr.bf16.mxu1 %v7884_v1 }
0x1663   : > { %7438 = vmatmul.mubr.msk.bf16.vlgmr.msra.gmra.mrb[140].mxu0 %vm865_vm1, %v8405_v48  ;;  %7446 = vmatmul.mubr.msk.bf16.vlgmr.msra.gmra.mrb[136].mxu1 %vm865_vm1, %v8405_v48 }
0x1664   : > { %7450 = vmatpush3.bf16.msra.mxu0 %v7721_v7  ;;  %7458 = vmatpush3.bf16.msra.mxu1 %v7722_v8 }
0x1665   : > { %7451 = vmatprep.subr.bf16.mxu0 %v7884_v1  ;;  %7459 = vmatprep.subr.bf16.mxu1 %v7884_v1 }
0x1666   : > { %7453 = vmatprep.mubr.msk.bf16.mxu0 %vm7885_vm0, %v7884_v1  ;;  %7461 = vmatprep.mubr.msk.bf16.mxu1 %vm7885_vm0, %v7884_v1 }
0x1668   : > { %7452 = vmatpush3.bf16.msra.mxu0 %v7723_v9  ;;  %7460 = vmatpush3.bf16.msra.mxu1 %v7724_v11 }
0x1669   : > { %7465 = vmatprep.subr.bf16.mxu0 %v7884_v1  ;;  %7473 = vmatprep.subr.bf16.mxu1 %v7884_v1 }
0x166b   : > { %7454 = vmatmul.mubr.msk.bf16.vlgmr.msra.gmra.mrb[144].mxu0 %vm865_vm1, %v8405_v48  ;;  %7462 = vmatmul.mubr.msk.bf16.vlgmr.msra.gmra.mrb[140].mxu1 %vm865_vm1, %v8405_v48 }
0x166c   : > { %7466 = vmatpush3.bf16.msra.mxu0 %v7725_v13  ;;  %7474 = vmatpush3.bf16.msra.mxu1 %v7726_v15 }
0x166d   : > { %7467 = vmatprep.subr.bf16.mxu0 %v7884_v1  ;;  %7475 = vmatprep.subr.bf16.mxu1 %v7884_v1 }
0x166e   : > { %7469 = vmatprep.mubr.msk.bf16.mxu0 %vm7885_vm0, %v7884_v1  ;;  %7477 = vmatprep.mubr.msk.bf16.mxu1 %vm7885_vm0, %v7884_v1 }
0x1670   : > { %7468 = vmatpush3.bf16.msra.mxu0 %v7727_v16  ;;  %7476 = vmatpush3.bf16.msra.mxu1 %v7728_v63 }
0x1671   : > { %7481 = vmatprep.subr.bf16.mxu0 %v7884_v1  ;;  %7489 = vmatprep.subr.bf16.mxu1 %v7884_v1 }
0x1673   : > { %7470 = vmatmul.mubr.msk.bf16.vlgmr.msra.gmra.mrb[148].mxu0 %vm865_vm1, %v8405_v48  ;;  %7478 = vmatmul.mubr.msk.bf16.vlgmr.msra.gmra.mrb[144].mxu1 %vm865_vm1, %v8405_v48 }
0x1674   : > { %7482 = vmatpush3.bf16.msra.mxu0 %v7729_v18  ;;  %7485 = vmatprep.mubr.msk.bf16.mxu0 %vm7885_vm0, %v7884_v1 }
0x1675   : > { %7483 = vmatprep.subr.bf16.mxu0 %v7884_v1  ;;  %7490 = vmatpush3.bf16.msra.mxu1 %v7730_v19 }
0x1676   : > { %7493 = vmatprep.mubr.msk.bf16.mxu1 %vm7885_vm0, %v7884_v1  ;;  %7491 = vmatprep.subr.bf16.mxu1 %v7884_v1 }
0x1678   : > { %7484 = vmatpush3.bf16.msra.mxu0 %v7731_v22 }
0x1679   : > { %7492 = vmatpush3.bf16.msra.mxu1 %v7732_v24  ;;  %7497 = vmatprep.subr.bf16.mxu0 %v7884_v1 }
0x167a   : > { %7503 = vmatprep.subr.bf16.mxu1 %v7884_v1 }
0x167b   : > { %7486 = vmatmul.mubr.msk.bf16.vlgmr.msra.gmra.mrb[152].mxu0 %vm865_vm1, %v8405_v48 }
0x167c   : > { %7494 = vmatmul.mubr.msk.bf16.vlgmr.msra.gmra.mrb[148].mxu1 %vm865_vm1, %v8405_v48  ;;  %7499 = vmatprep.mubr.msk.bf16.mxu0 %vm7885_vm0, %v7884_v1 }
0x167d   : > { %7505 = vmatprep.mubr.msk.bf16.mxu1 %vm7885_vm0, %v7884_v1 }
0x1726   : > { %v4796_v25 = vpop.f32.mrb[132].mxu0  ;;  %v4848_v30 = vpop.f32.mrb[128].mxu1 }
0x1727   : > { %v7407_v37 = vpop.f32.mrb[133].mxu0  ;;  %v7415_v31 = vpop.f32.mrb[129].mxu1  ;;  %v5374_v62 = vpack.c.bf16 %v4796_v25, %v4796_v25  ;;  %v5375_v2 = vpack.c.bf16 %v4848_v30, %v4848_v30 }
0x1728   : > { %v4799_v26 = vpop.f32.mrb[134].mxu0  ;;  %v4851_v27 = vpop.f32.mrb[130].mxu1 }
0x1729   : > { %v7408_v29 = vpop.f32.mrb[135].mxu0  ;;  %v7416_v32 = vpop.f32.mrb[131].mxu1 }
0x172e   : > { %v4900_v33 = vpop.f32.mrb[136].mxu0  ;;  %v4952_v34 = vpop.f32.mrb[132].mxu1 }
0x172f   : > { %v7423_v38 = vpop.f32.mrb[137].mxu0  ;;  %v7431_v39 = vpop.f32.mrb[133].mxu1  ;;  %v5376_v15 = vpack.c.bf16 %v4900_v33, %v4900_v33  ;;  %v5377_v16 = vpack.c.bf16 %v4952_v34, %v4952_v34 }
0x1730   : > { %v4903_v21 = vpop.f32.mrb[138].mxu0  ;;  %v4955_v48 = vpop.f32.mrb[134].mxu1 }
0x1731   : > { %v7424_v41 = vpop.f32.mrb[139].mxu0  ;;  %v7432_v43 = vpop.f32.mrb[135].mxu1 }
0x1736   : > { %v5004_v45 = vpop.f32.mrb[140].mxu0  ;;  %v5056_v60 = vpop.f32.mrb[136].mxu1 }
0x1737   : > { %v5378_v46 = vpack.c.bf16 %v5004_v45, %v5004_v45  ;;  %v5379_v47 = vpack.c.bf16 %v5056_v60, %v5056_v60  ;;  %v7439_v49 = vpop.f32.mrb[141].mxu0  ;;  %v7447_v14 = vpop.f32.mrb[137].mxu1 }
0x1738   : > { %v5007_v51 = vpop.f32.mrb[142].mxu0  ;;  %v5059_v52 = vpop.f32.mrb[138].mxu1 }
0x1739   : > { %v5386_v53 = vsel %vm1489_vm2, %v5378_v46, 0  ;;  %v5432_v55 = vsel %vm1489_vm2, %v5379_v47, 0  ;;  %v7440_v56 = vpop.f32.mrb[143].mxu0  ;;  %v7448_v57 = vpop.f32.mrb[139].mxu1 }
0x173a   : > { %7498 = vmatpush3.bf16.xpose.msra.mxu0 %v5386_v53  ;;  %7504 = vmatpush3.bf16.xpose.msra.mxu1 %v5432_v55 }
0x173b   : > { %7509 = vmatprep.subr.bf16.mxu0 %v7884_v1  ;;  %7515 = vmatprep.subr.bf16.mxu1 %v7884_v1 }
0x173e   : > { %v5108_v59 = vpop.f32.mrb[144].mxu0  ;;  %v5160_v61 = vpop.f32.mrb[140].mxu1 }
0x173f   : > { %v5380_v3 = vpack.c.bf16 %v5108_v59, %v5108_v59  ;;  %v5381_v4 = vpack.c.bf16 %v5160_v61, %v5160_v61  ;;  %v7455_v5 = vpop.f32.mrb[145].mxu0  ;;  %v7463_v6 = vpop.f32.mrb[141].mxu1 }
0x1740   : > { %v5111_v35 = vpop.f32.mrb[146].mxu0  ;;  %v5163_v7 = vpop.f32.mrb[142].mxu1 }
0x1741   : > { %v5478_v8 = vsel %vm1489_vm2, %v5380_v3, 0  ;;  %v5524_v9 = vsel %vm1489_vm2, %v5381_v4, 0  ;;  %v7456_v11 = vpop.f32.mrb[147].mxu0  ;;  %7500 = vmatmul.mubr.msk.bf16.vlgmr.msra.gmra.mrb[156].mxu0 %vm1489_vm2, %v5374_v62  ;;  %7506 = vmatmul.mubr.msk.bf16.vlgmr.msra.gmra.mrb[152].mxu1 %vm1489_vm2, %v5375_v2  ;;  %v7464_v13 = vpop.f32.mrb[143].mxu1 }
0x1742   : > { %7510 = vmatpush3.bf16.xpose.msra.mxu0 %v5478_v8  ;;  %7516 = vmatpush3.bf16.xpose.msra.mxu1 %v5524_v9 }
0x1743   : > { %7511 = vmatprep.mubr.msk.bf16.mxu0 %vm7885_vm0, %v7884_v1  ;;  %7517 = vmatprep.mubr.msk.bf16.mxu1 %vm7885_vm0, %v7884_v1 }
0x1744   : > { %7521 = vmatprep.subr.bf16.mxu0 %v7884_v1  ;;  %7527 = vmatprep.subr.bf16.mxu1 %v7884_v1 }
0x1746   : > { %v5212_v63 = vpop.f32.mrb[148].mxu0  ;;  %v5264_v24 = vpop.f32.mrb[144].mxu1 }
0x1747   : > { %v5622_v18 = vpack.c.bf16 %v5212_v63, %v5212_v63  ;;  %v7471_v19 = vpop.f32.mrb[149].mxu0  ;;  %v5623_v37 = vpack.c.bf16 %v5264_v24, %v5264_v24  ;;  %v7479_v31 = vpop.f32.mrb[145].mxu1 }
0x1748   : > { %v5215_v22 = vpop.f32.mrb[150].mxu0  ;;  %v5267_v26 = vpop.f32.mrb[146].mxu1 }
0x1749   : > { %7512 = vmatmul.mubr.msk.bf16.vlgmr.msra.gmra.mrb[160].mxu0 %vm1489_vm2, %v5376_v15  ;;  %7518 = vmatmul.mubr.msk.bf16.vlgmr.msra.gmra.mrb[156].mxu1 %vm1489_vm2, %v5377_v16  ;;  %v5630_v25 = vsel %vm1737_vm3, %v5622_v18, 0  ;;  %v7472_v30 = vpop.f32.mrb[151].mxu0  ;;  %v5676_v27 = vsel %vm1737_vm3, %v5623_v37, 0  ;;  %v7480_v29 = vpop.f32.mrb[147].mxu1 }
0x174a   : > { %7523 = vmatprep.mubr.msk.bf16.mxu0 %vm7885_vm0, %v7884_v1  ;;  %7529 = vmatprep.mubr.msk.bf16.mxu1 %vm7885_vm0, %v7884_v1 }
0x174b   : > { %7522 = vmatpush3.bf16.msra.mxu0 %v5630_v25  ;;  %7528 = vmatpush3.bf16.msra.mxu1 %v5676_v27 }
0x174c   : > { %7533 = vmatprep.subr.bf16.mxu0 %v7884_v1  ;;  %7539 = vmatprep.subr.bf16.mxu1 %v7884_v1 }
0x174e   : > { %v9058_v32 = vpop.f32.mrb[152].mxu0 }
0x174f   : > { %v9060_v33 = vpop.f32.mrb[148].mxu1  ;;  %v7487_v34 = vpop.f32.mrb[153].mxu0 }
0x1750   : > { %v7495_v38 = vpop.f32.mrb[149].mxu1  ;;  %v5319_v39 = vpop.f32.mrb[154].mxu0 }
0x1751   : > { %v5371_v21 = vpop.f32.mrb[150].mxu1  ;;  %v7488_v48 = vpop.f32.mrb[155].mxu0 }
0x1752   : > { %v7496_v41 = vpop.f32.mrb[151].mxu1 }
0x1814   : > { %v5422_v43 = vpop.f32.mrb[156].mxu0  ;;  %v5468_v45 = vpop.f32.mrb[152].mxu1 }
0x1815   : > { %v5566_v60 = vmul.f32 0.35355338, %v5422_v43  ;;  %v5567_v46 = vmul.f32 0.35355338, %v5468_v45  ;;  %v7501_v47 = vpop.f32.mrb[157].mxu0  ;;  %v7507_v49 = vpop.f32.mrb[153].mxu1 }
0x1816   : > { %v5425_v14 = vpop.f32.mrb[158].mxu0  ;;  %v5471_v51 = vpop.f32.mrb[154].mxu1  ;;  %v5624_v49 = vpack.c.bf16 %v9058_v32, %v9058_v32 }
0x1817   : > { %v7502_v52 = vpop.f32.mrb[159].mxu0  ;;  %v7508_v53 = vpop.f32.mrb[155].mxu1  ;;  %v5570_v55 = vadd.f32 %v5566_v60, %v8524_v10  ;;  %v5571_v56 = vadd.f32 %v5567_v46, %v8524_v10 }
0x1818   : > { %v5722_v53 = vsel %vm1737_vm3, %v5624_v49, 0 }
0x1819   : > { %v5574_v57 = vsel %vm1489_vm2, %v5570_v55, -inf  ;;  %v5577_v62 = vsel %vm1489_vm2, %v5571_v56, -inf }
0x181a   : > { %5575 = vmax.xlane.f32.xlu0 %v5574_v57 }
0x181c   : > { %v5514_v59 = vpop.f32.mrb[160].mxu0  ;;  %v5560_v61 = vpop.f32.mrb[156].mxu1 }
0x181d   : > { %v5568_v2 = vmul.f32 0.35355338, %v5514_v59  ;;  %v5569_v3 = vmul.f32 0.35355338, %v5560_v61  ;;  %v7513_v4 = vpop.f32.mrb[161].mxu0  ;;  %v7519_v5 = vpop.f32.mrb[157].mxu1 }
0x181e   : > { %v5563_v6 = vpop.f32.mrb[158].mxu1  ;;  %5578 = vmax.xlane.f32.xlu0 %v5577_v62  ;;  %v5517_v35 = vpop.f32.mrb[162].mxu0  ;;  %v7733_v4 = vld [vmem:[%s9294_s13 + $0x10] sm:$0xff]   ;;  %v7734_v5 = vld [vmem:[%s9294_s13 + $0x18] sm:$0xff]  }
0x181f   : > { %v7514_v7 = vpop.f32.mrb[163].mxu0  ;;  %v7520_v8 = vpop.f32.mrb[159].mxu1  ;;  %v5573_v9 = vadd.f32 %v5569_v3, %v8524_v10  ;;  %v5572_v11 = vadd.f32 %v5568_v2, %v8524_v10 }
0x1821   : > { %v5583_v13 = vsel %vm1489_vm2, %v5573_v9, -inf  ;;  %v5580_v15 = vsel %vm1489_vm2, %v5572_v11, -inf }
0x1822   : > { %5584 = vmax.xlane.f32.xlu0 %v5583_v13  ;;  %5581 = vmax.xlane.f32.xlu1 %v5580_v15 }
0x18a7   : > { %v5576_v16 = vpop.xlane.xlu0 %5575 }
0x18a8   : > { %v5586_v63 = vsub.f32 %v5570_v55, %v5576_v16  ;;  %v5625_v55 = vpack.c.bf16 %v9060_v33, %v9060_v33 }
0x18aa   : > { %v5590_v18 = vmul.f32 1.442695, %v5586_v63  ;;  %v5768_v61 = vsel %vm1737_vm3, %v5625_v55, 0  ;;  %v7739_v55 = vld [vmem:[%s9298_s17 + $0x30] sm:$0xff]  }
0x18ab   : > { %v5579_v19 = vpop.xlane.xlu0 %5578 }
0x18ac   : > { %7799 = vpow2.f32 %v5590_v18  ;;  %v5587_v22 = vsub.f32 %v5571_v56, %v5579_v19 }
0x18ae   : > { %v5592_v24 = vmul.f32 1.442695, %v5587_v22 }
0x18af   : > { %v5585_v25 = vpop.xlane.xlu0 %5584  ;;  %v5582_v30 = vpop.xlane.xlu1 %5581 }
0x18b0   : > { %7801 = vpow2.f32 %v5592_v24  ;;  %v5589_v37 = vsub.f32 %v5573_v9, %v5585_v25  ;;  %v5588_v31 = vsub.f32 %v5572_v11, %v5582_v30 }
0x18b2   : > { %v5596_v26 = vmul.f32 1.442695, %v5589_v37  ;;  %v5594_v10 = vmul.f32 1.442695, %v5588_v31 }
0x18b4   : > { %7803 = vpow2.f32 %v5596_v26 }
0x18b5   : > { %7805 = vpow2.f32 %v5594_v10 }
0x18b6   : > { %v7800_v27 = vpop.eup %7799 }
0x18b7   : > { %v5598_v29 = vsel %vm1489_vm2, %v7800_v27, 0.0 }
0x18b8   : > { %5599 = vadd.xlane.f32.xlu1 %v5598_v29 }
0x18ba   : > { %v7802_v34 = vpop.eup %7801 }
0x18bb   : > { %v5601_v38 = vsel %vm1489_vm2, %v7802_v34, 0.0 }
0x18bc   : > { %5602 = vadd.xlane.f32.xlu0 %v5601_v38 }
0x18be   : > { %v7804_v39 = vpop.eup %7803 }
0x18bf   : > { %v7806_v21 = vpop.eup %7805  ;;  %v5607_v48 = vsel %vm1489_vm2, %v7804_v39, 0.0 }
0x18c0   : > { %5608 = vadd.xlane.f32.xlu0 %v5607_v48  ;;  %v5604_v41 = vsel %vm1489_vm2, %v7806_v21, 0.0 }
0x18c1   : > { %5605 = vadd.xlane.f32.xlu1 %v5604_v41 }
0x1945   : > { %v5600_v43 = vpop.xlane.xlu1 %5599 }
0x1946   : > { %7807 = vrcp.f32 %v5600_v43 }
0x1949   : > { %v5603_v45 = vpop.xlane.xlu0 %5602 }
0x194a   : > { %7809 = vrcp.f32 %v5603_v45 }
0x194d   : > { %v5609_v60 = vpop.xlane.xlu0 %5608 }
0x194e   : > { %7811 = vrcp.f32 %v5609_v60  ;;  %v5606_v46 = vpop.xlane.xlu1 %5605 }
0x194f   : > { %7813 = vrcp.f32 %v5606_v46 }
0x1950   : > { %v7808_v47 = vpop.eup %7807 }
0x1951   : > { %v9076_v14 = vmul.f32 %v7808_v47, %v7800_v27 }
0x1953   : > { %v5618_v51 = vpack.c.bf16 %v9076_v14, %v9076_v14 }
0x1954   : > { %v7810_v52 = vpop.eup %7809 }
0x1955   : > { %v9083_v56 = vmul.f32 %v7810_v52, %v7802_v34  ;;  %7524 = vmatmul.mubr.msk.bf16.vlgmr.msra.gmra.mrb[164].mxu0 %vm1489_vm2, %v5618_v51  ;;  %v7735_v51 = vld [vmem:[%s9297_s16 + $0x10] sm:$0xff]   ;;  %v7737_v52 = vld [vmem:[%s9298_s17 + $0x20] sm:$0xff]  }
0x1956   : > { %7534 = vmatpush3.bf16.msra.mxu0 %v5722_v53  ;;  %7535 = vmatprep.mubr.msk.bf16.mxu0 %vm7885_vm0, %v7884_v1  ;;  %v7738_v53 = vld [vmem:[%s9298_s17 + $0x28] sm:$0xff]  }
0x1957   : > { %v5619_v32 = vpack.c.bf16 %v9083_v56, %v9083_v56  ;;  %7545 = vmatprep.subr.bf16.mxu0 %v7884_v1 }
0x1958   : > { %v7812_v57 = vpop.eup %7811 }
0x1959   : > { %v7814_v59 = vpop.eup %7813  ;;  %7530 = vmatmul.mubr.msk.bf16.vlgmr.msra.gmra.mrb[160].mxu1 %vm1489_vm2, %v5619_v32  ;;  %v9097_v62 = vmul.f32 %v7812_v57, %v7804_v39 }
0x195a   : > { %v9093_v33 = vmul.f32 %v7814_v59, %v7806_v21  ;;  %7540 = vmatpush3.bf16.msra.mxu1 %v5768_v61  ;;  %7541 = vmatprep.mubr.msk.bf16.mxu1 %vm7885_vm0, %v7884_v1 }
0x195b   : > { %7553 = vmatprep.subr.bf16.mxu1 %v7884_v1  ;;  %v5621_v3 = vpack.c.bf16 %v9097_v62, %v9097_v62 }
0x195c   : > { %v5620_v2 = vpack.c.bf16 %v9093_v33, %v9093_v33 }
0x195e   : > { %7536 = vmatmul.mubr.msk.bf16.vlgmr.msra.gmra.mrb[168].mxu0 %vm1489_vm2, %v5620_v2  ;;  %v6650_v2 = vld [vmem:[%s9295_s14 + $0x1] ss:$0 sm:$0xff] }
0x195f   : > { %7549 = vmatprep.mubr.msk.bf16.mxu0 %vm7885_vm0, %v7884_v1  ;;  %7546 = vmatpush3.bf16.msra.mxu0 %v7733_v4  ;;  %v6651_v4 = vld [vmem:[%s9296_s15 + $0x1] ss:$0 sm:$0xff] }
0x1960   : > { %7547 = vmatprep.subr.bf16.mxu0 %v7884_v1 }
0x1961   : > { %7542 = vmatmul.mubr.msk.bf16.vlgmr.msra.gmra.mrb[164].mxu1 %vm1489_vm2, %v5621_v3 }
0x1962   : > { %7557 = vmatprep.mubr.msk.bf16.mxu1 %vm7885_vm0, %v7884_v1  ;;  %7554 = vmatpush3.bf16.msra.mxu1 %v7735_v51 }
0x1963   : > { %7548 = vmatpush3.bf16.msra.mxu0 %v7734_v5  ;;  %7555 = vmatprep.subr.bf16.mxu1 %v7884_v1 }
0x1964   : > { %7561 = vmatprep.subr.bf16.mxu0 %v7884_v1 }
0x1a28   : > { %v5666_v6 = vpop.f32.mrb[164].mxu0 }
0x1a29   : > { %v7525_v35 = vpop.f32.mrb[165].mxu0 }
0x1a2a   : > { %v5669_v7 = vpop.f32.mrb[166].mxu0 }
0x1a2b   : > { %v7526_v8 = vpop.f32.mrb[167].mxu0  ;;  %v7740_v7 = vld [vmem:[%s9298_s17 + $0x38] sm:$0xff]  }
0x1a2c   : > { %v5712_v9 = vpop.f32.mrb[160].mxu1 }
0x1a2d   : > { %v7531_v11 = vpop.f32.mrb[161].mxu1  ;;  %5811 = vrot.lane.b32.xlu1 %v5712_v9, %s9358_s6 }
0x1a2e   : > { %v5715_v13 = vpop.f32.mrb[162].mxu1 }
0x1a2f   : > { %v7532_v15 = vpop.f32.mrb[163].mxu1 }
0x1a31   : > { %v5758_v16 = vpop.f32.mrb[168].mxu0 }
0x1a32   : > { %5815 = vrot.lane.b32.xlu0 %v5758_v16, %s9359_s25  ;;  %v7537_v63 = vpop.f32.mrb[169].mxu0 }
0x1a33   : > { %v5761_v18 = vpop.f32.mrb[170].mxu0 }
0x1a34   : > { %v7538_v19 = vpop.f32.mrb[171].mxu0  ;;  %v5804_v22 = vpop.f32.mrb[164].mxu1 }
0x1a35   : > { %v7543_v24 = vpop.f32.mrb[165].mxu1  ;;  %5819 = vrot.lane.b32.xlu1 %v5804_v22, %s9360_s26 }
0x1a36   : > { %v5807_v25 = vpop.f32.mrb[166].mxu1 }
0x1a37   : > { %v7544_v30 = vpop.f32.mrb[167].mxu1 }
0x1a9f   : > { %v5812_v37 = vpop.permute.xlu1 %5811 }
0x1aa0   : > { %v5822_v26 = vsel %vm1489_vm2, %v5666_v6, %v5812_v37 }
0x1aa4   : > { %v5816_v31 = vpop.permute.xlu0 %5815 }
0x1aa5   : > { %v5823_v10 = vsel %vm1932_vm6, %v5822_v26, %v5816_v31 }
0x1aa7   : > { %v5820_v27 = vpop.permute.xlu1 %5819 }
0x1aa8   : > { %v5824_v29 = vsel %vm1934_vm7, %v5823_v10, %v5820_v27 }
0x1aa9   : > { %v5825_v34 = vpack.c.bf16 %v5824_v29, %v5824_v29 }
0x1aab   : > { %7550 = vmatmul.mubr.msk.bf16.vlgmr.msra.gmra.mrb[172].mxu0 %vm865_vm1, %v5825_v34 }
0x1aac   : > { %7569 = vmatprep.mubr.msk.bf16.mxu0 %vm7885_vm0, %v7884_v1  ;;  %7562 = vmatpush3.bf16.msra.mxu0 %v7737_v52 }
0x1aad   : > { %7563 = vmatprep.subr.bf16.mxu0 %v7884_v1 }
0x1ab0   : > { %7564 = vmatpush3.bf16.msra.mxu0 %v7738_v53 }
0x1ab1   : > { %7565 = vmatprep.subr.bf16.mxu0 %v7884_v1 }
0x1ab4   : > { %7566 = vmatpush3.bf16.msra.mxu0 %v7739_v55 }
0x1ab5   : > { %7567 = vmatprep.subr.bf16.mxu0 %v7884_v1 }
0x1ab8   : > { %7568 = vmatpush3.bf16.msra.mxu0 %v7740_v7 }
0x1b7e   : > { %v5875_v38 = vpop.f32.mrb[172].mxu0 }
0x1b7f   : > { %v5881_v39 = vadd.f32 %v5875_v38, %v8906_v20  ;;  %v7551_v21 = vpop.f32.mrb[173].mxu0  ;;  %v7736_v20 = vld [vmem:[%s9297_s16 + $0x18] sm:$0xff]  }
0x1b80   : > { %v5878_v48 = vpop.f32.mrb[174].mxu0  ;;  %7556 = vmatpush3.bf16.msra.mxu1 %v7736_v20 }
0x1b81   : > { %v7552_v41 = vpop.f32.mrb[175].mxu0  ;;  %v5897_v43 = vsel %vm865_vm1, %v5881_v39, 0.0  ;;  %7573 = vmatprep.subr.bf16.mxu1 %v7884_v1 }
0x1b82   : > { %5898 = vadd.xlane.f32.xlu1 %v5897_v43 }
0x1c0f   : > { %v5899_v45 = vpop.xlane.xlu1 %5898 }
0x1c10   : > { %v5900_v60 = vmul.f32 0.03125, %v5899_v45 }
0x1c12   : > { %v5901_v46 = vsub.f32 %v5881_v39, %v5900_v60 }
0x1c14   : > { %v5902_v47 = vmul.f32 %v5901_v46, %v5901_v46 }
0x1c16   : > { %v5903_v49 = vsel %vm865_vm1, %v5902_v47, 0.0 }
0x1c17   : > { %5904 = vadd.xlane.f32.xlu0 %v5903_v49 }
0x1ca4   : > { %v5905_v32 = vpop.xlane.xlu0 %5904 }
0x1ca5   : > { %v5906_v57 = vmul.f32 0.03125, %v5905_v32 }
0x1ca7   : > { %v5907_v59 = vadd.f32 1e-05, %v5906_v57 }
0x1ca9   : > { %7815 = vrsqrt.f32 %v5907_v59 }
0x1cb3   : > { %v7816_v61 = vpop.eup %7815 }
0x1cb4   : > { %v5909_v3 = vmul.f32 %v7816_v61, %v5901_v46 }
0x1cb6   : > { %v5916_v5 = vmul.f32 %v6650_v2, %v5909_v3 }
0x1cb8   : > { %v5923_v6 = vadd.f32 %v6651_v4, %v5916_v5 }
0x1cba   : > { %v5944_v35 = vpack.c.bf16 %v5923_v6, %v5923_v6 }
0x1cbc   : > { %7558 = vmatmul.mubr.msk.bf16.vlgmr.msra.gmra.mrb[168].mxu1 %vm865_vm1, %v5944_v35 }
0x1cbd   : > { %7577 = vmatprep.mubr.msk.bf16.mxu1 %vm7885_vm0, %v7884_v1 }
0x1d8f   : > { %v5994_v8 = vpop.f32.mrb[168].mxu1 }
0x1d90   : > { %v6000_v9 = vmax.f32 %v5994_v8, 0.0  ;;  %v7559_v11 = vpop.f32.mrb[169].mxu1 }
0x1d91   : > { %v5997_v13 = vpop.f32.mrb[170].mxu1 }
0x1d92   : > { %v6001_v15 = vpack.c.bf16 %v6000_v9, %v6000_v9  ;;  %v7560_v16 = vpop.f32.mrb[171].mxu1 }
0x1d94   : > { %7570 = vmatmul.mubr.msk.bf16.vlgmr.msra.gmra.mrb[176].mxu0 %vm3375_vm9, %v6001_v15 }
0x1e67   : > { %v6063_v63 = vpop.f32.mrb[176].mxu0 }
0x1e68   : > { %v6064_v18 = vadd.f32 %v6063_v63, %v5923_v6  ;;  %v7571_v19 = vpop.f32.mrb[177].mxu0 }
0x1e69   : > { %v6066_v22 = vpop.f32.mrb[178].mxu0 }
0x1e6a   : > { %v7572_v24 = vpop.f32.mrb[179].mxu0  ;;  %v6069_v25 = vsel %vm865_vm1, %v6064_v18, 0.0 }
0x1e6b   : > { %6070 = vadd.xlane.f32.xlu0 %v6069_v25 }
0x1e81   : > { %1994 = vrot.lane.b32.xlu0 %v8285_v36, %s9358_s6 }
0x1e85   : > { %1998 = vrot.lane.b32.xlu0 %v8294_v40, %s9359_s25 }
0x1e89   : > { %4647 = vrot.lane.b32.xlu0 %v8839_v50, %s9359_s25 }
0x1e8d   : > { %2002 = vrot.lane.b32.xlu0 %v8302_v42, %s9360_s26 }
0x1e91   : > { %4651 = vrot.lane.b32.xlu0 %v8857_v58, %s9360_s26 }
0x1ef8   : > { %v6071_v30 = vpop.xlane.xlu0 %6070 }
0x1ef9   : > { %v6072_v37 = vmul.f32 0.03125, %v6071_v30 }
0x1efb   : > { %v6073_v31 = vsub.f32 %v6064_v18, %v6072_v37 }
0x1efc   : > { %v1995_v26 = vpop.permute.xlu0 %1994 }
0x1efd   : > { %v6074_v10 = vmul.f32 %v6073_v31, %v6073_v31  ;;  %v2005_v40 = vsel %vm1489_vm2, %v8278_v28, %v1995_v26  ;;  %v7741_v28 = vld [vmem:[%s9301_s20] sm:$0xff]  }
0x1efe   : > { %7574 = vmatpush3.bf16.msra.mxu1 %v7741_v28 }
0x1eff   : > { %v6075_v36 = vsel %vm865_vm1, %v6074_v10, 0.0  ;;  %7575 = vmatprep.subr.bf16.mxu1 %v7884_v1 }
0x1f00   : > { %6076 = vadd.xlane.f32.xlu1 %v6075_v36  ;;  %v1999_v27 = vpop.permute.xlu0 %1998 }
0x1f01   : > { %v2006_v42 = vsel %vm1932_vm6, %v2005_v40, %v1999_v27 }
0x1f04   : > { %v4648_v29 = vpop.permute.xlu0 %4647 }
0x1f08   : > { %v2003_v50 = vpop.permute.xlu0 %2002 }
0x1f09   : > { %v2007_v58 = vsel %vm1934_vm7, %v2006_v42, %v2003_v50 }
0x1f0a   : > { %2036 = vst.msk [vmem:[%s770_s23] sm:$0xff] %vm865_vm1, %v2007_v58 }
0x1f0c   : > { %v4652_v38 = vpop.permute.xlu0 %4651 }
0x1f11   : > { %3237 = vrot.lane.b32.xlu1 %v8547_v17, %s9358_s6  ;;  %v7742_v17 = vld [vmem:[%s9301_s20 + $0x8] sm:$0xff]  }
0x1f12   : > { %7576 = vmatpush3.bf16.msra.mxu1 %v7742_v17 }
0x1f15   : > { %4643 = vrot.lane.b32.xlu1 %v8848_v54, %s9358_s6 }
0x1f19   : > { %5883 = vrot.lane.b32.xlu1 %v9083_v56, %s9358_s6  ;;  %s737_s6 = scalar_lea.vmem [#allocation2], %s6330_s24 }
0x1f1d   : > { %3241 = vrot.lane.b32.xlu1 %v8556_v23, %s9359_s25 }
0x1f21   : > { %5887 = vrot.lane.b32.xlu1 %v9093_v33, %s9359_s25  ;;  %s6181_s25 = sshll.u32 %s737_s6, 4  ;;  %s9236_s25 = int_to_ptr.vmem [resolvable:$true] %s6181_s25 }
0x1f22   : > { %s7820_s0 = scalar_lea.vmem %s9236_s25, 128 }
0x1f23   : > { %p7821_p11 = scmp.ne.s32.totalorder %s9236_s25, %s7820_s0 }
0x1f25   : > { %3245 = vrot.lane.b32.xlu1 %v8561_v0, %s9360_s26  ;;  %p7822_p12 = pnand %p7821_p11, %p8048_p5 }
0x1f27   : > { %p7823_p13 = pneg %p7822_p12 }
0x1f29   : > { %5891 = vrot.lane.b32.xlu1 %v9097_v62, %s9360_s26  ;;  %v6675_v62 = vld [vmem:[%s9299_s18 + $0x1] ss:$0 sm:$0xff]  ;;  %s6681_s26 = sshll.u32 %s9362_s21, 7  ;;  %s7889_s21 = smov [#allocation2]  }
0x1f2a   : > { %s7824_s24 = sshll.u32 %s7889_s21, 4  ;;  %s7825_s24 = int_to_ptr.vmem [resolvable:$false] %s7824_s24 }
0x1f2b   : > { %s7826_s3 = scalar_lea.vmem %s7825_s24, 256  ;;  %p7827_p0 = scmp.lt.s32.totalorder %s9236_s25, %s7825_s24 }
0x1f2c   : > { %p7828_p1 = scmp.lt.s32.totalorder %s7826_s3, %s7820_s0 }
0x1f2e   : > { %p7829_p2 = por %p7828_p1, %p7827_p0 }
0x1f30   : > { %p7830_p3 = pnand %p7829_p2, %p7823_p13 }
0x1f8d   : > { %v6077_v23 = vpop.xlane.xlu1 %6076 }
0x1f8e   : > { %v6078_v54 = vmul.f32 0.03125, %v6077_v23 }
0x1f90   : > { %v6079_v56 = vadd.f32 1e-05, %v6078_v54 }
0x1f91   : > { %v3238_v34 = vpop.permute.xlu1 %3237 }
0x1f92   : > { %7817 = vrsqrt.f32 %v6079_v56  ;;  %v3248_v49 = vsel %vm1489_vm2, %v8540_v12, %v3238_v34 }
0x1f95   : > { %v4644_v1 = vpop.permute.xlu1 %4643 }
0x1f96   : > { %v4654_v33 = vsel %vm1489_vm2, %v8830_v44, %v4644_v1  ;;  %v6676_v44 = vld [vmem:[%s9300_s19 + $0x1] ss:$0 sm:$0xff] }
0x1f97   : > { %v4655_v39 = vsel %vm1932_vm6, %v4654_v33, %v4648_v29 }
0x1f98   : > { %v4656_v21 = vsel %vm1934_vm7, %v4655_v39, %v4652_v38 }
0x1f99   : > { %6548 = vst.msk [vmem:[%s770_s23 + $0x8] sm:$0xff] %vm865_vm1, %v4656_v21  ;;  %v5884_v0 = vpop.permute.xlu1 %5883  ;;  %s9364_s23 = sld [smem:[#allocation21_spill]] }
0x1f9a   : > { %v5894_v53 = vsel %vm1489_vm2, %v9076_v14, %v5884_v0 }
0x1f9c   : > { %v7818_v48 = vpop.eup %7817 }
0x1f9d   : > { %v6081_v41 = vmul.f32 %v7818_v48, %v6073_v31  ;;  %v3242_v43 = vpop.permute.xlu1 %3241 }
0x1f9e   : > { %v3249_v51 = vsel %vm1932_vm6, %v3248_v49, %v3242_v43 }
0x1f9f   : > { %v6088_v45 = vmul.f32 %v6675_v62, %v6081_v41  ;;  %s9241_s5 = scalar_lea.hbm %s9364_s23, %s6681_s26 }
0x1fa1   : > { %v5888_v60 = vpop.permute.xlu1 %5887  ;;  %v6095_v46 = vadd.f32 %v6676_v44, %v6088_v45 }
0x1fa2   : > { %v5895_v12 = vsel %vm1932_vm6, %v5894_v53, %v5888_v60 }
0x1fa3   : > { %v6096_v47 = vpack.c.bf16 %v6095_v46, %v6095_v46 }
0x1fa5   : > { %7578 = vmatmul.mubr.msk.bf16.vlgmr.msra.gmra.mrb[172].mxu1 %vm865_vm1, %v6096_v47  ;;  %v3246_v20 = vpop.permute.xlu1 %3245 }
0x1fa6   : > { %v3250_v52 = vsel %vm1934_vm7, %v3249_v51, %v3246_v20 }
0x1fa7   : > { %3278 = vst.msk [vmem:[%s775_s4] sm:$0xff] %vm865_vm1, %v3250_v52 }
0x1fa9   : > { %v5892_v55 = vpop.permute.xlu1 %5891 }
0x1faa   : > { %v5896_v32 = vsel %vm1934_vm7, %v5895_v12, %v5892_v55 }
0x1fab   : > { %6652 = vst.msk [vmem:[%s775_s4 + $0x8] sm:$0xff] %vm865_vm1, %v5896_v32  ;;  %s6158_s4 = scalar_lea.sflag [#allocation3], %s735_s27 }
0x2078   : > { %v6150_v14 = vpop.f32.mrb[172].mxu1 }
0x2079   : > { %6156 = vst [vmem:[%s737_s6] sm:$0xff] %v6150_v14  ;;  %v7579_v57 = vpop.f32.mrb[173].mxu1 }
0x207a   : > { %v6153_v59 = vpop.f32.mrb[174].mxu1 }
0x207b   : > { %7833 = shalt.err (!%p7830_p3)
}
0x207c   : > { %s7834_s27 = scalar_lea.hbm %s9241_s5, 128  ;;  %s7838_s7 = scalar_lea.hbm %s9364_s23, 256 }
0x207d   : > { %p7835_p4 = scmp.ne.s32.totalorder %s9241_s5, %s7834_s27  ;;  %p7839_p9 = scmp.lt.u32.totalorder %s9241_s5, %s9364_s23 }
0x207e   : > { %p7840_p10 = scmp.lt.u32.totalorder %s7838_s7, %s7834_s27  ;;  %p7842_p12 = scmp.lt.u32.totalorder %s7834_s27, %s9241_s5 }
0x207f   : > { %p7836_p7 = pnand %p7835_p4, %p8048_p5 }
0x2080   : > { %p7841_p11 = por %p7840_p10, %p7839_p9 }
0x2081   : > { %p7837_p8 = pneg %p7836_p7 }
0x2082   : > { %p7843_p13 = por %p7842_p12, %p7841_p11 }
0x2084   : > { %p7844_p0 = pnand %p7843_p13, %p7837_p8 }
0x2086   : > { %7847 = shalt.err (!%p7844_p0)
}
0x2087   : > { %7581 = dma.vmem_to_hbm [thread:$0]  (%p8048_p5), %s9236_s25, 128, %s9241_s5, %s6158_s4   ;;  %v7580_v61 = vpop.f32.mrb[175].mxu1 }
0x2088 PF: > { %s9365_s0 = sld [smem:[#allocation7_spill]]  ;;  %s9366_s3 = sld [smem:[#allocation5_spill]] }
0x208e   : > { %p7587_p1 = scmp.ge.s32.totalorder %s9365_s0, 2  ;;  %s6199_s6 = sand.u32 1, %s9366_s3  }
0x208f   : > { %s6200_s26 = scalar_lea.sflag [#allocation3], %s6199_s6 }
0x2090   : > { %p7584_p2 = pnand %p7587_p1, %p8052_p6 }
0x2092   : > { %7865 = dma.done.wait (!%p7584_p2), %s6200_s26, 128  }
0x2093   : > { %7867 = vsyncadd (!%p7584_p2), %s6200_s26, 4294967168  ;;  %s9368_s25 = sld [smem:[#allocation9_spill]]  ;;  %s9369_s27 = sld [smem:[#allocation6_spill]] }
0x2094   : > { %s9370_s24 = sld [smem:[#allocation10_spill]]  ;;  %s9371_s4 = smov %s7874_s30 }
0x2099   : > { %p34_p3 = scmp.ge.s32.totalorder %s9368_s25, 4   ;;  %s9372_s30 = smov %s9369_s27 }
0x209b   :  { %36 = sbr.rel (!%p34_p3) target bundleno = 14 (0xe), region = 190 }
0x20a2   :  { %6221 = vsyncpa [#allocation3], 1 }
0x20a3   :  { %6223 = vsyncpa [#allocation3 + $0x1], 1 }

</bundles_post_ra>
